<compile_context>
chip_gen: v5e
topology: v5e:2x2
jax: 0.10.0
libtpu: 0.0.40
codegen_flags: <defaults>
</compile_context>

<pallas_src>
import math
from functools import partial

import numpy as np

import jax
import jax.numpy as jnp
from jax.experimental import pallas as pl
from jax.experimental.pallas import tpu as pltpu

_EPS = 1e-5


# ----------------------------------------------------------------------------
# small helpers
# ----------------------------------------------------------------------------
def _round_up(x, m):
    return ((x + m - 1) // m) * m


def _vmem_limit_bytes():
    """~75% of this generation's per-core VMEM (48 MiB v7x, 96 MiB v5e/v6e)."""
    try:
        cap = int(pltpu.get_tpu_info().vmem_capacity_bytes)
    except Exception:                       # conservative fallback
        cap = 64 * 1024 * 1024
    return max(32 * 1024 * 1024, min(cap * 3 // 4, 96 * 1024 * 1024))


def _tile(dim, pref, align):
    """Largest tile <= pref, multiple of `align`, dividing `dim`; raises on
    big ragged dims instead of silently emitting an oversized block."""
    if dim <= pref:
        return dim
    if dim % align == 0:
        t = (pref // align) * align
        while t >= align:
            if dim % t == 0:
                return t
            t -= align
    raise ValueError(
        f"cannot tile dim={dim} (pref={pref}, align={align}); "
        f"pad the dimension to a multiple of {align}")


# ----------------------------------------------------------------------------
# Pallas kernels
# ----------------------------------------------------------------------------
def _mm_kernel(x_ref, w_ref, b_ref, o_ref, acc_ref, *, relu):
    """Tiled matmul: acc init = broadcast bias at k==0, ReLU+cast epilogue."""
    @pl.when(pl.program_id(2) == 0)
    def _init():
        acc_ref[...] = jnp.broadcast_to(b_ref[...], acc_ref.shape)

    acc_ref[...] += jnp.dot(x_ref[...], w_ref[...],
                            preferred_element_type=jnp.float32)

    @pl.when(pl.program_id(2) == pl.num_programs(2) - 1)
    def _fin():
        r = acc_ref[...]
        if relu:
            r = jnp.maximum(r, 0.0)
        o_ref[...] = r.astype(o_ref.dtype)


def _conv3x3_kernel(x_ref, w_ref, corr_ref, o_ref, acc_ref, *, offs):
    """3x3 conv on a flattened (W+2)-wide extended grid.

    x_ref   : (M_in, tc)  bf16 contiguous flattened padded rows of one image
    w_ref   : (9, tc, toc) bf16 tap-major weights (BN scale folded)
    corr_ref: (M_out, toc) f32  low-rank pyramid contribution + BN bias
    o_ref   : (M_out, toc) f32  extended-grid output (junk cols sliced later)
    acc_ref : (M_out, toc) f32  VMEM scratch accumulator
    Each tap is a *contiguous* static row window of x_ref -> pure vmatmul,
    no slice+reshape relayout of a padded plane.
    """
    m_out = o_ref.shape[0]

    @pl.when(pl.program_id(2) == 0)
    def _init():
        acc_ref[...] = corr_ref[...]

    for t, off in enumerate(offs):                     # static, unrolled (9)
        acc_ref[...] += jnp.dot(x_ref[pl.ds(off, m_out), :], w_ref[t],
                                preferred_element_type=jnp.float32)

    @pl.when(pl.program_id(2) == pl.num_programs(2) - 1)
    def _fin():
        o_ref[...] = jnp.maximum(acc_ref[...], 0.0).astype(o_ref.dtype)


# ----------------------------------------------------------------------------
# pallas_call wrappers
# ----------------------------------------------------------------------------
def matmul_bias_act(x, w, bias, relu=True):
    """x: [M, K]; w: [K, N] (BN scale pre-folded); bias: [N]. Returns f32."""
    M, K = x.shape
    K2, N = w.shape
    assert K == K2
    tm = _tile(M, 256, 8)
    tn = _tile(N, 256, 128)
    tk = _tile(K, 512, 128)     # v5e note: 256-384 preferred there
    grid = (M // tm, N // tn, K // tk)
    return pl.pallas_call(
        partial(_mm_kernel, relu=relu),
        grid=grid,
        in_specs=[
            pl.BlockSpec((tm, tk), lambda i, j, k: (i, k)),
            pl.BlockSpec((tk, tn), lambda i, j, k: (k, j)),
            pl.BlockSpec((1, tn), lambda i, j, k: (0, j)),
        ],
        out_specs=pl.BlockSpec((tm, tn), lambda i, j, k: (i, j)),
        out_shape=jax.ShapeDtypeStruct((M, N), jnp.float32),
        scratch_shapes=[pltpu.VMEM((tm, tn), jnp.float32)],
        compiler_params=pltpu.CompilerParams(
            dimension_semantics=("parallel", "parallel", "arbitrary"),
            vmem_limit_bytes=_vmem_limit_bytes()),
    )(x.astype(jnp.bfloat16), w.astype(jnp.bfloat16),
      bias.reshape(1, N).astype(jnp.float32))


def conv3x3_fused(x_nhwc, w_taps, corr_nhwc):
    """3x3/pad=1 conv over x's channels + (corr) + ReLU, via the flattened
    extended-grid formulation.  w_taps: (9, C, OC) BN-scale folded."""
    N, H, W, C = x_nhwc.shape
    OC = w_taps.shape[-1]
    We = W + 2
    m_out = _round_up(H * We, 8)
    m_in = _round_up(max((H + 2) * We + 2, m_out + 2 * We + 2), 8)

    # padded + flattened input rows (bf16, one extra HBM pass over x only)
    xp = jnp.pad(x_nhwc.astype(jnp.bfloat16), ((0, 0), (1, 1), (1, 1), (0, 0)))
    xf = xp.reshape(N, (H + 2) * We, C)
    xf = jnp.pad(xf, ((0, 0), (0, m_in - (H + 2) * We), (0, 0)))
    xf = xf.reshape(N * m_in, C)

    # correction (low-rank pyramid contribution + BN bias) on the extended grid
    cf = jnp.pad(corr_nhwc.astype(jnp.float32), ((0, 0), (0, 0), (0, 2), (0, 0)))
    cf = cf.reshape(N, H * We, OC)
    cf = jnp.pad(cf, ((0, 0), (0, m_out - H * We), (0, 0)))
    cf = cf.reshape(N * m_out, OC)

    tc = _tile(C, 512, 128)
    toc = _tile(OC, 256, 128)
    offs = tuple(di * We + dj for di in range(3) for dj in range(3))

    grid = (N, OC // toc, C // tc)
    out = pl.pallas_call(
        partial(_conv3x3_kernel, offs=offs),
        grid=grid,
        in_specs=[
            pl.BlockSpec((m_in, tc), lambda n, j, k: (n, k)),
            pl.BlockSpec((9, tc, toc), lambda n, j, k: (0, k, j)),
            pl.BlockSpec((m_out, toc), lambda n, j, k: (n, j)),
        ],
        out_specs=pl.BlockSpec((m_out, toc), lambda n, j, k: (n, j)),
        out_shape=jax.ShapeDtypeStruct((N * m_out, OC), jnp.float32),
        scratch_shapes=[pltpu.VMEM((m_out, toc), jnp.float32)],
        compiler_params=pltpu.CompilerParams(
            dimension_semantics=("parallel", "parallel", "arbitrary"),
            vmem_limit_bytes=_vmem_limit_bytes()),
    )(xf, w_taps.astype(jnp.bfloat16), cf)

    out = out.reshape(N, m_out, OC)[:, :H * We, :]
    out = out.reshape(N, H, We, OC)[:, :, :W, :]          # drop junk columns
    return out


# ----------------------------------------------------------------------------
# Trace-time constant resampling operators
# ----------------------------------------------------------------------------
def _adaptive_pool_matrix(in_size, out_size):
    """Row-stochastic averaging matrix matching nn.AdaptiveAvgPool2d."""
    m = np.zeros((out_size, in_size), np.float32)
    for o in range(out_size):
        s = (o * in_size) // out_size
        e = -((-(o + 1) * in_size) // out_size)           # ceil
        m[o, s:e] = 1.0 / (e - s)
    return m


def _bilinear_matrix(in_size, out_size):
    """F.interpolate(mode='bilinear', align_corners=True) 1-D operator."""
    m = np.zeros((out_size, in_size), np.float32)
    if in_size == 1:
        m[:, 0] = 1.0
        return m
    if out_size == 1:
        m[0, 0] = 1.0
        return m
    scale = (in_size - 1) / (out_size - 1)
    for o in range(out_size):
        src = o * scale
        i0 = min(int(math.floor(src)), in_size - 1)
        i1 = min(i0 + 1, in_size - 1)
        f = src - i0
        m[o, i0] += 1.0 - f
        m[o, i1] += f
    return m


def _conv_interp_operator(size, bin_sz):
    """C[h, di, p] = (zero-padded bilinear matrix)[h + di, p], di in {0,1,2}."""
    B = _bilinear_matrix(bin_sz, size)                    # (size, bin)
    Bp = np.zeros((size + 2, bin_sz), np.float32)
    Bp[1:size + 1] = B
    return np.stack([Bp[di:di + size] for di in range(3)], axis=1)


# ----------------------------------------------------------------------------
# Parameters (deterministic init; BN in inference form)
# ----------------------------------------------------------------------------
def _bn_inference(c):
    gamma = jnp.ones((c,), jnp.float32)
    beta = jnp.zeros((c,), jnp.float32)
    mean = jnp.zeros((c,), jnp.float32)
    var = jnp.ones((c,), jnp.float32)
    scale = gamma / jnp.sqrt(var + _EPS)
    bias = beta - mean * scale
    return scale, bias


def init_psp_params(key, in_channels, bin_sizes):
    out_channels = in_channels // len(bin_sizes)
    keys = jax.random.split(key, len(bin_sizes) + 1)
    stages = []
    for i, _ in enumerate(bin_sizes):
        std = math.sqrt(2.0 / in_channels)
        w = std * jax.random.normal(
            keys[i], (out_channels, in_channels, 1, 1), jnp.float32)
        s, b = _bn_inference(out_channels)
        stages.append({"w": w, "bn_scale": s, "bn_bias": b})
    cat_c = in_channels + out_channels * len(bin_sizes)
    std = math.sqrt(2.0 / (9 * cat_c))
    wb = std * jax.random.normal(keys[-1], (out_channels, cat_c, 3, 3),
                                 jnp.float32)
    sb, bb = _bn_inference(out_channels)
    return {"bin_sizes": tuple(bin_sizes),
            "stages": stages,
            "bottleneck_w": wb,
            "bottleneck_bn_scale": sb,
            "bottleneck_bn_bias": bb}


# ----------------------------------------------------------------------------
# _PSPModule.forward
# ----------------------------------------------------------------------------
def psp_module_forward(params, x_nchw):
    bins = params["bin_sizes"]
    nb = len(bins)
    x = jnp.transpose(x_nchw, (0, 2, 3, 1))               # NCHW -> NHWC
    N, H, W, C = x.shape
    OC = params["stages"][0]["w"].shape[0]
    xb = x.astype(jnp.bfloat16)

    # --- all adaptive average pools in ONE pass over x (stacked operator) ---
    P = jnp.asarray(np.concatenate(
        [np.einsum('ph,qw->pqhw',
                   _adaptive_pool_matrix(H, b),
                   _adaptive_pool_matrix(W, b)).reshape(b * b, H * W)
         for b in bins], axis=0))                         # (R, H*W)
    R = sum(b * b for b in bins)
    pooled = jnp.einsum('rs,nsc->nrc', P, xb.reshape(N, H * W, C),
                        preferred_element_type=jnp.float32)   # (N, R, C)

    # --- all 1x1 conv + BN + ReLU stages as ONE fused Pallas matmul ---------
    w_all = jnp.concatenate(
        [(st["w"][:, :, 0, 0] * st["bn_scale"][:, None]).T
         for st in params["stages"]], axis=1)             # (C, nb*OC)
    b_all = jnp.concatenate([st["bn_bias"] for st in params["stages"]])
    M = N * R
    Mp = _round_up(M, 8)
    pooled_flat = jnp.pad(pooled.reshape(M, C), ((0, Mp - M), (0, 0)))
    y_all = matmul_bias_act(pooled_flat, w_all, b_all, relu=True)
    y_all = y_all[:M].reshape(N, R, nb * OC)

    # --- low-rank contribution of the upsampled pyramids to the bottleneck
    #     conv (+ BN bias), via constant interpolation matrices -------------
    kw = (params["bottleneck_w"] *
          params["bottleneck_bn_scale"][:, None, None, None])  # (OC, cat_c,3,3)
    corr = jnp.broadcast_to(params["bottleneck_bn_bias"],
                            (N, H, W, OC)).astype(jnp.float32)
    roff = 0
    for bi, b in enumerate(bins):
        y_b = y_all[:, roff:roff + b * b,
                    bi * OC:(bi + 1) * OC].reshape(N, b, b, OC)
        roff += b * b
        k_b = kw[:, C + bi * OC:C + (bi + 1) * OC, :, :]  # (OC, OC, 3, 3)
        t_b = jnp.einsum('npqc,ocij->nijpqo', y_b, k_b)
        Ch = jnp.asarray(_conv_interp_operator(H, b))     # (H, 3, b)
        Cw = jnp.asarray(_conv_interp_operator(W, b))     # (W, 3, b)
        corr = corr + jnp.einsum('hip,wjq,nijpqo->nhwo', Ch, Cw, t_b)

    # --- heavy part: 3x3 conv over x's channels (Pallas, tiled, BN folded) --
    w_taps = jnp.transpose(kw[:, :C, :, :], (2, 3, 1, 0)).reshape(9, C, OC)
    out = conv3x3_fused(xb, w_taps, corr)                 # (N, H, W, OC)

    # Dropout2d(0.1): identity in inference mode.
    return jnp.transpose(out, (0, 3, 1, 2))               # back to NCHW


# ----------------------------------------------------------------------------
if __name__ == "__main__":
    key = jax.random.PRNGKey(0)
    pkey, xkey = jax.random.split(key)

    in_channels = 32
    bin_sizes = (1, 2, 3, 6)
    params = init_psp_params(pkey, in_channels, bin_sizes)

    x = jax.random.normal(xkey, (2, in_channels, 16, 16), dtype=jnp.float32)

    fwd = jax.jit(lambda inp: psp_module_forward(params, inp))
    out = jax.block_until_ready(fwd(x))

    out_channels = in_channels // len(bin_sizes)
    assert out.shape == (2, out_channels, 16, 16), out.shape
    assert bool(jnp.all(jnp.isfinite(out)))
    print("KERNEL_OK")
</pallas_src>

<mosaic_0001>
module attributes {stable_mosaic.version = 11 : i64} {
  func.func @_mm_kernel(%arg0: i32, %arg1: i32, %arg2: i32, %arg3: memref<104x32xbf16, #tpu.memory_space<vmem>>, %arg4: memref<32x32xbf16, #tpu.memory_space<vmem>>, %arg5: memref<1x32xf32, #tpu.memory_space<vmem>>, %arg6: memref<104x32xf32, #tpu.memory_space<vmem>>, %arg7: memref<104x32xf32, #tpu.memory_space<vmem>>) attributes {dimension_semantics = [#tpu.dimension_semantics<parallel>, #tpu.dimension_semantics<parallel>, #tpu.dimension_semantics<arbitrary>], iteration_bounds = array<i64: 1, 1, 1>, scalar_prefetch = 0 : i64, scratch_operands = 1 : i64, tpu.core_type = #tpu.core_type<tc>, window_params = [{transform_indices = @transform_0, window_bounds = array<i64: 104, 32>}, {transform_indices = @transform_1, window_bounds = array<i64: 32, 32>}, {transform_indices = @transform_2, window_bounds = array<i64: 1, 32>}, {transform_indices = @transform_3, window_bounds = array<i64: 104, 32>}]} {
    %c0_i32 = arith.constant 0 : i32
    %0 = arith.cmpi eq, %arg2, %c0_i32 : i32
    %1 = arith.extui %0 : i1 to i32
    %c0_i32_0 = arith.constant 0 : i32
    %2 = arith.cmpi ne, %1, %c0_i32_0 : i32
    scf.if %2 {
      %c0_10 = arith.constant 0 : index
      %c0_11 = arith.constant 0 : index
      %12 = vector.load %arg5[%c0_10, %c0_11] : memref<1x32xf32, #tpu.memory_space<vmem>>, vector<1x32xf32>
      %13 = vector.shape_cast %12 : vector<1x32xf32> to vector<1x32xf32>
      %14 = vector.broadcast %13 : vector<1x32xf32> to vector<104x32xf32>
      %c0_12 = arith.constant 0 : index
      %c0_13 = arith.constant 0 : index
      %15 = vector.load %arg7[%c0_12, %c0_13] : memref<104x32xf32, #tpu.memory_space<vmem>>, vector<104x32xf32>
      tpu.vector_store %arg7[%c0_12, %c0_13], %14 {strides = array<i32>} : memref<104x32xf32, #tpu.memory_space<vmem>>, vector<104x32xf32>,
    } else {
    }
    %c0 = arith.constant 0 : index
    %c0_1 = arith.constant 0 : index
    %3 = vector.load %arg7[%c0, %c0_1] : memref<104x32xf32, #tpu.memory_space<vmem>>, vector<104x32xf32>
    %c0_2 = arith.constant 0 : index
    %c0_3 = arith.constant 0 : index
    %4 = vector.load %arg3[%c0_2, %c0_3] : memref<104x32xbf16, #tpu.memory_space<vmem>>, vector<104x32xbf16>
    %c0_4 = arith.constant 0 : index
    %c0_5 = arith.constant 0 : index
    %5 = vector.load %arg4[%c0_4, %c0_5] : memref<32x32xbf16, #tpu.memory_space<vmem>>, vector<32x32xbf16>
    %cst = arith.constant dense<0.000000e+00> : vector<104x32xf32>
    %6 = tpu.matmul %4, %5, %cst {dimension_numbers = #tpu.dot_dimension_numbers<[1], [0], [0], [1], [0, 0, 1, 1], [], []>} : vector<104x32xbf16>, vector<32x32xbf16>, vector<104x32xf32> -> vector<104x32xf32>
    %7 = arith.addf %3, %6 : vector<104x32xf32>
    %c0_6 = arith.constant 0 : index
    %c0_7 = arith.constant 0 : index
    %8 = vector.load %arg7[%c0_6, %c0_7] : memref<104x32xf32, #tpu.memory_space<vmem>>, vector<104x32xf32>
    tpu.vector_store %arg7[%c0_6, %c0_7], %7 {strides = array<i32>} : memref<104x32xf32, #tpu.memory_space<vmem>>, vector<104x32xf32>,
    %c0_i32_8 = arith.constant 0 : i32
    %9 = arith.cmpi eq, %arg2, %c0_i32_8 : i32
    %10 = arith.extui %9 : i1 to i32
    %c0_i32_9 = arith.constant 0 : i32
    %11 = arith.cmpi ne, %10, %c0_i32_9 : i32
    scf.if %11 {
      %c0_10 = arith.constant 0 : index
      %c0_11 = arith.constant 0 : index
      %12 = vector.load %arg7[%c0_10, %c0_11] : memref<104x32xf32, #tpu.memory_space<vmem>>, vector<104x32xf32>
      %cst_12 = arith.constant 0.000000e+00 : f32
      %13 = vector.broadcast %cst_12 : f32 to vector<104x32xf32>
      %14 = arith.maximumf %12, %13 : vector<104x32xf32>
      %c0_13 = arith.constant 0 : index
      %c0_14 = arith.constant 0 : index
      %15 = vector.load %arg6[%c0_13, %c0_14] : memref<104x32xf32, #tpu.memory_space<vmem>>, vector<104x32xf32>
      tpu.vector_store %arg6[%c0_13, %c0_14], %14 {strides = array<i32>} : memref<104x32xf32, #tpu.memory_space<vmem>>, vector<104x32xf32>,
    } else {
    }
    return
  }
  func.func @transform_0(%arg0: i32, %arg1: i32, %arg2: i32) -> (i32, i32) {
    %c0_i32 = arith.constant 0 : i32
    return %arg0, %arg2 : i32, i32
  }
  func.func @transform_1(%arg0: i32, %arg1: i32, %arg2: i32) -> (i32, i32) {
    %c0_i32 = arith.constant 0 : i32
    return %arg2, %arg1 : i32, i32
  }
  func.func @transform_2(%arg0: i32, %arg1: i32, %arg2: i32) -> (i32, i32) {
    %c0_i32 = arith.constant 0 : i32
    %c0_i32_0 = arith.constant 0 : i32
    return %c0_i32, %arg1 : i32, i32
  }
  func.func @transform_3(%arg0: i32, %arg1: i32, %arg2: i32) -> (i32, i32) {
    %c0_i32 = arith.constant 0 : i32
    return %arg0, %arg1 : i32, i32
  }
}

module attributes {stable_mosaic.version = 11 : i64} {
  func.func @_conv3x3_kernel(%arg0: i32, %arg1: i32, %arg2: i32, %arg3: memref<328x32xbf16, #tpu.memory_space<vmem>>, %arg4: memref<9x32x8xbf16, #tpu.memory_space<vmem>>, %arg5: memref<288x8xf32, #tpu.memory_space<vmem>>, %arg6: memref<288x8xf32, #tpu.memory_space<vmem>>, %arg7: memref<288x8xf32, #tpu.memory_space<vmem>>) attributes {dimension_semantics = [#tpu.dimension_semantics<parallel>, #tpu.dimension_semantics<parallel>, #tpu.dimension_semantics<arbitrary>], iteration_bounds = array<i64: 2, 1, 1>, scalar_prefetch = 0 : i64, scratch_operands = 1 : i64, tpu.core_type = #tpu.core_type<tc>, window_params = [{transform_indices = @transform_0, window_bounds = array<i64: 328, 32>}, {transform_indices = @transform_1, window_bounds = array<i64: 9, 32, 8>}, {transform_indices = @transform_2, window_bounds = array<i64: 288, 8>}, {transform_indices = @transform_3, window_bounds = array<i64: 288, 8>}]} {
    %c0_i32 = arith.constant 0 : i32
    %0 = arith.cmpi eq, %arg2, %c0_i32 : i32
    %1 = arith.extui %0 : i1 to i32
    %c0_i32_0 = arith.constant 0 : i32
    %2 = arith.cmpi ne, %1, %c0_i32_0 : i32
    scf.if %2 {
      %c0_77 = arith.constant 0 : index
      %c0_78 = arith.constant 0 : index
      %69 = vector.load %arg5[%c0_77, %c0_78] : memref<288x8xf32, #tpu.memory_space<vmem>>, vector<288x8xf32>
      %c0_79 = arith.constant 0 : index
      %c0_80 = arith.constant 0 : index
      %70 = vector.load %arg7[%c0_79, %c0_80] : memref<288x8xf32, #tpu.memory_space<vmem>>, vector<288x8xf32>
      tpu.vector_store %arg7[%c0_79, %c0_80], %69 {strides = array<i32>} : memref<288x8xf32, #tpu.memory_space<vmem>>, vector<288x8xf32>,
    } else {
    }
    %c0 = arith.constant 0 : index
    %c0_1 = arith.constant 0 : index
    %3 = vector.load %arg7[%c0, %c0_1] : memref<288x8xf32, #tpu.memory_space<vmem>>, vector<288x8xf32>
    %c0_2 = arith.constant 0 : index
    %c0_3 = arith.constant 0 : index
    %4 = vector.load %arg3[%c0_2, %c0_3] : memref<328x32xbf16, #tpu.memory_space<vmem>>, vector<288x32xbf16>
    %c0_4 = arith.constant 0 : index
    %c0_5 = arith.constant 0 : index
    %c0_6 = arith.constant 0 : index
    %5 = vector.load %arg4[%c0_4, %c0_5, %c0_6] : memref<9x32x8xbf16, #tpu.memory_space<vmem>>, vector<1x32x8xbf16>
    %6 = vector.shape_cast %5 : vector<1x32x8xbf16> to vector<32x8xbf16>
    %cst = arith.constant dense<0.000000e+00> : vector<288x8xf32>
    %7 = tpu.matmul %4, %6, %cst {dimension_numbers = #tpu.dot_dimension_numbers<[1], [0], [0], [1], [0, 0, 1, 1], [], []>} : vector<288x32xbf16>, vector<32x8xbf16>, vector<288x8xf32> -> vector<288x8xf32>
    %8 = arith.addf %3, %7 : vector<288x8xf32>
    %c0_7 = arith.constant 0 : index
    %c0_8 = arith.constant 0 : index
    %9 = vector.load %arg7[%c0_7, %c0_8] : memref<288x8xf32, #tpu.memory_space<vmem>>, vector<288x8xf32>
    tpu.vector_store %arg7[%c0_7, %c0_8], %8 {strides = array<i32>} : memref<288x8xf32, #tpu.memory_space<vmem>>, vector<288x8xf32>,
    %c0_9 = arith.constant 0 : index
    %c0_10 = arith.constant 0 : index
    %10 = vector.load %arg7[%c0_9, %c0_10] : memref<288x8xf32, #tpu.memory_space<vmem>>, vector<288x8xf32>
    %c1 = arith.constant 1 : index
    %c0_11 = arith.constant 0 : index
    %11 = vector.load %arg3[%c1, %c0_11] : memref<328x32xbf16, #tpu.memory_space<vmem>>, vector<288x32xbf16>
    %c1_12 = arith.constant 1 : index
    %c0_13 = arith.constant 0 : index
    %c0_14 = arith.constant 0 : index
    %12 = vector.load %arg4[%c1_12, %c0_13, %c0_14] : memref<9x32x8xbf16, #tpu.memory_space<vmem>>, vector<1x32x8xbf16>
    %13 = vector.shape_cast %12 : vector<1x32x8xbf16> to vector<32x8xbf16>
    %cst_15 = arith.constant dense<0.000000e+00> : vector<288x8xf32>
    %14 = tpu.matmul %11, %13, %cst_15 {dimension_numbers = #tpu.dot_dimension_numbers<[1], [0], [0], [1], [0, 0, 1, 1], [], []>} : vector<288x32xbf16>, vector<32x8xbf16>, vector<288x8xf32> -> vector<288x8xf32>
    %15 = arith.addf %10, %14 : vector<288x8xf32>
    %c0_16 = arith.constant 0 : index
    %c0_17 = arith.constant 0 : index
    %16 = vector.load %arg7[%c0_16, %c0_17] : memref<288x8xf32, #tpu.memory_space<vmem>>, vector<288x8xf32>
    tpu.vector_store %arg7[%c0_16, %c0_17], %15 {strides = array<i32>} : memref<288x8xf32, #tpu.memory_space<vmem>>, vector<288x8xf32>,
    %c0_18 = arith.constant 0 : index
    %c0_19 = arith.constant 0 : index
    %17 = vector.load %arg7[%c0_18, %c0_19] : memref<288x8xf32, #tpu.memory_space<vmem>>, vector<288x8xf32>
    %c2 = arith.constant 2 : index
    %c0_20 = arith.constant 0 : index
    %18 = vector.load %arg3[%c2, %c0_20] : memref<328x32xbf16, #tpu.memory_space<vmem>>, vector<288x32xbf16>
    %c2_21 = arith.constant 2 : index
    %c0_22 = arith.constant 0 : index
    %c0_23 = arith.constant 0 : index
    %19 = vector.load %arg4[%c2_21, %c0_22, %c0_23] : memref<9x32x8xbf16, #tpu.memory_space<vmem>>, vector<1x32x8xbf16>
    %20 = vector.shape_cast %19 : vector<1x32x8xbf16> to vector<32x8xbf16>
    %cst_24 = arith.constant dense<0.000000e+00> : vector<288x8xf32>
    %21 = tpu.matmul %18, %20, %cst_24 {dimension_numbers = #tpu.dot_dimension_numbers<[1], [0], [0], [1], [0, 0, 1, 1], [], []>} : vector<288x32xbf16>, vector<32x8xbf16>, vector<288x8xf32> -> vector<288x8xf32>
    %22 = arith.addf %17, %21 : vector<288x8xf32>
    %c0_25 = arith.constant 0 : index
    %c0_26 = arith.constant 0 : index
    %23 = vector.load %arg7[%c0_25, %c0_26] : memref<288x8xf32, #tpu.memory_space<vmem>>, vector<288x8xf32>
    tpu.vector_store %arg7[%c0_25, %c0_26], %22 {strides = array<i32>} : memref<288x8xf32, #tpu.memory_space<vmem>>, vector<288x8xf32>,
    %c0_27 = arith.constant 0 : index
    %c0_28 = arith.constant 0 : index
    %24 = vector.load %arg7[%c0_27, %c0_28] : memref<288x8xf32, #tpu.memory_space<vmem>>, vector<288x8xf32>
    %c18 = arith.constant 18 : index
    %c0_29 = arith.constant 0 : index
    %25 = vector.load %arg3[%c18, %c0_29] : memref<328x32xbf16, #tpu.memory_space<vmem>>, vector<288x32xbf16>
    %c3 = arith.constant 3 : index
    %c0_30 = arith.constant 0 : index
    %c0_31 = arith.constant 0 : index
    %26 = vector.load %arg4[%c3, %c0_30, %c0_31] : memref<9x32x8xbf16, #tpu.memory_space<vmem>>, vector<1x32x8xbf16>
    %27 = vector.shape_cast %26 : vector<1x32x8xbf16> to vector<32x8xbf16>
    %cst_32 = arith.constant dense<0.000000e+00> : vector<288x8xf32>
    %28 = tpu.matmul %25, %27, %cst_32 {dimension_numbers = #tpu.dot_dimension_numbers<[1], [0], [0], [1], [0, 0, 1, 1], [], []>} : vector<288x32xbf16>, vector<32x8xbf16>, vector<288x8xf32> -> vector<288x8xf32>
    %29 = arith.addf %24, %28 : vector<288x8xf32>
    %c0_33 = arith.constant 0 : index
    %c0_34 = arith.constant 0 : index
    %30 = vector.load %arg7[%c0_33, %c0_34] : memref<288x8xf32, #tpu.memory_space<vmem>>, vector<288x8xf32>
    tpu.vector_store %arg7[%c0_33, %c0_34], %29 {strides = array<i32>} : memref<288x8xf32, #tpu.memory_space<vmem>>, vector<288x8xf32>,
    %c0_35 = arith.constant 0 : index
    %c0_36 = arith.constant 0 : index
    %31 = vector.load %arg7[%c0_35, %c0_36] : memref<288x8xf32, #tpu.memory_space<vmem>>, vector<288x8xf32>
    %c19 = arith.constant 19 : index
    %c0_37 = arith.constant 0 : index
    %32 = vector.load %arg3[%c19, %c0_37] : memref<328x32xbf16, #tpu.memory_space<vmem>>, vector<288x32xbf16>
    %c4 = arith.constant 4 : index
    %c0_38 = arith.constant 0 : index
    %c0_39 = arith.constant 0 : index
    %33 = vector.load %arg4[%c4, %c0_38, %c0_39] : memref<9x32x8xbf16, #tpu.memory_space<vmem>>, vector<1x32x8xbf16>
    %34 = vector.shape_cast %33 : vector<1x32x8xbf16> to vector<32x8xbf16>
    %cst_40 = arith.constant dense<0.000000e+00> : vector<288x8xf32>
    %35 = tpu.matmul %32, %34, %cst_40 {dimension_numbers = #tpu.dot_dimension_numbers<[1], [0], [0], [1], [0, 0, 1, 1], [], []>} : vector<288x32xbf16>, vector<32x8xbf16>, vector<288x8xf32> -> vector<288x8xf32>
    %36 = arith.addf %31, %35 : vector<288x8xf32>
    %c0_41 = arith.constant 0 : index
    %c0_42 = arith.constant 0 : index
    %37 = vector.load %arg7[%c0_41, %c0_42] : memref<288x8xf32, #tpu.memory_space<vmem>>, vector<288x8xf32>
    tpu.vector_store %arg7[%c0_41, %c0_42], %36 {strides = array<i32>} : memref<288x8xf32, #tpu.memory_space<vmem>>, vector<288x8xf32>,
    %c0_43 = arith.constant 0 : index
    %c0_44 = arith.constant 0 : index
    %38 = vector.load %arg7[%c0_43, %c0_44] : memref<288x8xf32, #tpu.memory_space<vmem>>, vector<288x8xf32>
    %c20 = arith.constant 20 : index
    %c0_45 = arith.constant 0 : index
    %39 = vector.load %arg3[%c20, %c0_45] : memref<328x32xbf16, #tpu.memory_space<vmem>>, vector<288x32xbf16>
    %c5 = arith.constant 5 : index
    %c0_46 = arith.constant 0 : index
    %c0_47 = arith.constant 0 : index
    %40 = vector.load %arg4[%c5, %c0_46, %c0_47] : memref<9x32x8xbf16, #tpu.memory_space<vmem>>, vector<1x32x8xbf16>
    %41 = vector.shape_cast %40 : vector<1x32x8xbf16> to vector<32x8xbf16>
    %cst_48 = arith.constant dense<0.000000e+00> : vector<288x8xf32>
    %42 = tpu.matmul %39, %41, %cst_48 {dimension_numbers = #tpu.dot_dimension_numbers<[1], [0], [0], [1], [0, 0, 1, 1], [], []>} : vector<288x32xbf16>, vector<32x8xbf16>, vector<288x8xf32> -> vector<288x8xf32>
    %43 = arith.addf %38, %42 : vector<288x8xf32>
    %c0_49 = arith.constant 0 : index
    %c0_50 = arith.constant 0 : index
    %44 = vector.load %arg7[%c0_49, %c0_50] : memref<288x8xf32, #tpu.memory_space<vmem>>, vector<288x8xf32>
    tpu.vector_store %arg7[%c0_49, %c0_50], %43 {strides = array<i32>} : memref<288x8xf32, #tpu.memory_space<vmem>>, vector<288x8xf32>,
    %c0_51 = arith.constant 0 : index
    %c0_52 = arith.constant 0 : index
    %45 = vector.load %arg7[%c0_51, %c0_52] : memref<288x8xf32, #tpu.memory_space<vmem>>, vector<288x8xf32>
    %c36 = arith.constant 36 : index
    %c0_53 = arith.constant 0 : index
    %46 = vector.load %arg3[%c36, %c0_53] : memref<328x32xbf16, #tpu.memory_space<vmem>>, vector<288x32xbf16>
    %c6 = arith.constant 6 : index
    %c0_54 = arith.constant 0 : index
    %c0_55 = arith.constant 0 : index
    %47 = vector.load %arg4[%c6, %c0_54, %c0_55] : memref<9x32x8xbf16, #tpu.memory_space<vmem>>, vector<1x32x8xbf16>
    %48 = vector.shape_cast %47 : vector<1x32x8xbf16> to vector<32x8xbf16>
    %cst_56 = arith.constant dense<0.000000e+00> : vector<288x8xf32>
    %49 = tpu.matmul %46, %48, %cst_56 {dimension_numbers = #tpu.dot_dimension_numbers<[1], [0], [0], [1], [0, 0, 1, 1], [], []>} : vector<288x32xbf16>, vector<32x8xbf16>, vector<288x8xf32> -> vector<288x8xf32>
    %50 = arith.addf %45, %49 : vector<288x8xf32>
    %c0_57 = arith.constant 0 : index
    %c0_58 = arith.constant 0 : index
    %51 = vector.load %arg7[%c0_57, %c0_58] : memref<288x8xf32, #tpu.memory_space<vmem>>, vector<288x8xf32>
    tpu.vector_store %arg7[%c0_57, %c0_58], %50 {strides = array<i32>} : memref<288x8xf32, #tpu.memory_space<vmem>>, vector<288x8xf32>,
    %c0_59 = arith.constant 0 : index
    %c0_60 = arith.constant 0 : index
    %52 = vector.load %arg7[%c0_59, %c0_60] : memref<288x8xf32, #tpu.memory_space<vmem>>, vector<288x8xf32>
    %c37 = arith.constant 37 : index
    %c0_61 = arith.constant 0 : index
    %53 = vector.load %arg3[%c37, %c0_61] : memref<328x32xbf16, #tpu.memory_space<vmem>>, vector<288x32xbf16>
    %c7 = arith.constant 7 : index
    %c0_62 = arith.constant 0 : index
    %c0_63 = arith.constant 0 : index
    %54 = vector.load %arg4[%c7, %c0_62, %c0_63] : memref<9x32x8xbf16, #tpu.memory_space<vmem>>, vector<1x32x8xbf16>
    %55 = vector.shape_cast %54 : vector<1x32x8xbf16> to vector<32x8xbf16>
    %cst_64 = arith.constant dense<0.000000e+00> : vector<288x8xf32>
    %56 = tpu.matmul %53, %55, %cst_64 {dimension_numbers = #tpu.dot_dimension_numbers<[1], [0], [0], [1], [0, 0, 1, 1], [], []>} : vector<288x32xbf16>, vector<32x8xbf16>, vector<288x8xf32> -> vector<288x8xf32>
    %57 = arith.addf %52, %56 : vector<288x8xf32>
    %c0_65 = arith.constant 0 : index
    %c0_66 = arith.constant 0 : index
    %58 = vector.load %arg7[%c0_65, %c0_66] : memref<288x8xf32, #tpu.memory_space<vmem>>, vector<288x8xf32>
    tpu.vector_store %arg7[%c0_65, %c0_66], %57 {strides = array<i32>} : memref<288x8xf32, #tpu.memory_space<vmem>>, vector<288x8xf32>,
    %c0_67 = arith.constant 0 : index
    %c0_68 = arith.constant 0 : index
    %59 = vector.load %arg7[%c0_67, %c0_68] : memref<288x8xf32, #tpu.memory_space<vmem>>, vector<288x8xf32>
    %c38 = arith.constant 38 : index
    %c0_69 = arith.constant 0 : index
    %60 = vector.load %arg3[%c38, %c0_69] : memref<328x32xbf16, #tpu.memory_space<vmem>>, vector<288x32xbf16>
    %c8 = arith.constant 8 : index
    %c0_70 = arith.constant 0 : index
    %c0_71 = arith.constant 0 : index
    %61 = vector.load %arg4[%c8, %c0_70, %c0_71] : memref<9x32x8xbf16, #tpu.memory_space<vmem>>, vector<1x32x8xbf16>
    %62 = vector.shape_cast %61 : vector<1x32x8xbf16> to vector<32x8xbf16>
    %cst_72 = arith.constant dense<0.000000e+00> : vector<288x8xf32>
    %63 = tpu.matmul %60, %62, %cst_72 {dimension_numbers = #tpu.dot_dimension_numbers<[1], [0], [0], [1], [0, 0, 1, 1], [], []>} : vector<288x32xbf16>, vector<32x8xbf16>, vector<288x8xf32> -> vector<288x8xf32>
    %64 = arith.addf %59, %63 : vector<288x8xf32>
    %c0_73 = arith.constant 0 : index
    %c0_74 = arith.constant 0 : index
    %65 = vector.load %arg7[%c0_73, %c0_74] : memref<288x8xf32, #tpu.memory_space<vmem>>, vector<288x8xf32>
    tpu.vector_store %arg7[%c0_73, %c0_74], %64 {strides = array<i32>} : memref<288x8xf32, #tpu.memory_space<vmem>>, vector<288x8xf32>,
    %c0_i32_75 = arith.constant 0 : i32
    %66 = arith.cmpi eq, %arg2, %c0_i32_75 : i32
    %67 = arith.extui %66 : i1 to i32
    %c0_i32_76 = arith.constant 0 : i32
    %68 = arith.cmpi ne, %67, %c0_i32_76 : i32
    scf.if %68 {
      %c0_77 = arith.constant 0 : index
      %c0_78 = arith.constant 0 : index
      %69 = vector.load %arg7[%c0_77, %c0_78] : memref<288x8xf32, #tpu.memory_space<vmem>>, vector<288x8xf32>
      %cst_79 = arith.constant 0.000000e+00 : f32
      %70 = vector.broadcast %cst_79 : f32 to vector<288x8xf32>
      %71 = arith.maximumf %69, %70 : vector<288x8xf32>
      %c0_80 = arith.constant 0 : index
      %c0_81 = arith.constant 0 : index
      %72 = vector.load %arg6[%c0_80, %c0_81] : memref<288x8xf32, #tpu.memory_space<vmem>>, vector<288x8xf32>
      tpu.vector_store %arg6[%c0_80, %c0_81], %71 {strides = array<i32>} : memref<288x8xf32, #tpu.memory_space<vmem>>, vector<288x8xf32>,
    } else {
    }
    return
  }
  func.func @transform_0(%arg0: i32, %arg1: i32, %arg2: i32) -> (i32, i32) {
    %c0_i32 = arith.constant 0 : i32
    return %arg0, %arg2 : i32, i32
  }
  func.func @transform_1(%arg0: i32, %arg1: i32, %arg2: i32) -> (i32, i32, i32) {
    %c0_i32 = arith.constant 0 : i32
    %c0_i32_0 = arith.constant 0 : i32
    return %c0_i32, %arg2, %arg1 : i32, i32, i32
  }
  func.func @transform_2(%arg0: i32, %arg1: i32, %arg2: i32) -> (i32, i32) {
    %c0_i32 = arith.constant 0 : i32
    return %arg0, %arg1 : i32, i32
  }
  func.func @transform_3(%arg0: i32, %arg1: i32, %arg2: i32) -> (i32, i32) {
    %c0_i32 = arith.constant 0 : i32
    return %arg0, %arg1 : i32, i32
  }
}

</mosaic_0001>

<bundles_post_ra>
// kernel: _lambda_.2
= control target key start
LH: loop header
LB: loop body
LE: loop exit
PB: predicated region body
PF: predicated region fallthrough
CT: control target
= control target key end

     0   :  { %vm23_vm0 = vcmask 261120   ;;  %s438_s1 = inlined_call_operand.vmem [shape: bf16[32,32], index: 1, kind: input, shape index: {}]   ;;  %s439_s2 = inlined_call_operand.vmem [shape: f32[1,32], index: 2, kind: input, shape index: {}]   ;;  %s440_s0 = inlined_call_operand.vmem [shape: bf16[104,32], index: 0, kind: input, shape index: {}]   ;;  %s441_s3 = inlined_call_operand.vmem [shape: f32[104,32], index: 3, kind: output, shape index: {}]  }
   0x1   :  { %v295_v0 = vld [vmem:[%s438_s1 + $0x8] sm:$0xff]  ;;  %v294_v1 = vld [vmem:[%s438_s1] sm:$0xff]  ;;  %v290_v4 = vld [vmem:[%s440_s0 + $0x10] sm:$0xff] }
   0x2   :  { %140 = vmatpush.bf16.msra.mxu0 %v295_v0  ;;  %296 = vmatpush.bf16.msra.mxu1 %v295_v0  ;;  %v302_v2 = vld [vmem:[%s439_s2] ss:$0 sm:$0xff]  ;;  %v293_v5 = vld [vmem:[%s440_s0 + $0x28] sm:$0xff]  ;;  %v62_v7 = vld [vmem:[%s440_s0 + $0x30] sm:$0xf] }
   0x3   :  { %298 = vmatpush.bf16.msra.mxu3 %v295_v0  ;;  %297 = vmatpush.bf16.msra.mxu2 %v295_v0  ;;  %v288_v3 = vld [vmem:[%s440_s0] sm:$0xff]  ;;  %24 = vst.msk [vmem:[#allocation2] sm:$0xff] %vm23_vm0, %v302_v2  ;;  %v92_v8 = vunpack.c.l.b16 %v62_v7  ;;  %v289_v9 = vld [vmem:[%s440_s0 + $0x8] sm:$0xff]  ;;  %v291_v10 = vld [vmem:[%s440_s0 + $0x18] sm:$0xff] }
   0x4   :  { %v292_v6 = vld [vmem:[%s440_s0 + $0x20] sm:$0xff]  ;;  %25 = vst.msk [vmem:[#allocation2 + $0x8] sm:$0xff] %vm23_vm0, %v302_v2 }
   0x5   :  { %26 = vst.msk [vmem:[#allocation2 + $0x10] sm:$0xff] %vm23_vm0, %v302_v2  ;;  %v99_v11 = vpack.c.b16 %v92_v8, %v92_v8 }
   0x6   :  { %141 = vmatpush.bf16.msra.mxu0 %v294_v1  ;;  %299 = vmatpush.bf16.msra.mxu1 %v294_v1  ;;  %27 = vst.msk [vmem:[#allocation2 + $0x18] sm:$0xff] %vm23_vm0, %v302_v2 }
   0x7   :  { %301 = vmatpush.bf16.msra.mxu3 %v294_v1  ;;  %300 = vmatpush.bf16.msra.mxu2 %v294_v1  ;;  %28 = vst.msk [vmem:[#allocation2 + $0x20] sm:$0xff] %vm23_vm0, %v302_v2 }
   0x8   :  { %29 = vst.msk [vmem:[#allocation2 + $0x28] sm:$0xff] %vm23_vm0, %v302_v2 }
   0x9   :  { %281 = vmatmul.msk.bf16.vlgmr.msra.gmra.mxu0 %vm23_vm0, %v288_v3  ;;  %283 = vmatmul.msk.bf16.vlgmr.msra.gmra.mxu1 %vm23_vm0, %v290_v4  ;;  %30 = vst.msk [vmem:[#allocation2 + $0x30] sm:$0xff] %vm23_vm0, %v302_v2 }
   0xa   :  { %286 = vmatmul.msk.bf16.vlgmr.msra.gmra.mxu3 %vm23_vm0, %v293_v5  ;;  %285 = vmatmul.msk.bf16.vlgmr.msra.gmra.mxu2 %vm23_vm0, %v292_v6  ;;  %31 = vst.msk [vmem:[#allocation2 + $0x38] sm:$0xff] %vm23_vm0, %v302_v2  ;;  %v37_v12 = vld [vmem:[#allocation2] sm:$0xff] }
   0xb   :  { %32 = vst.msk [vmem:[#allocation2 + $0x40] sm:$0xff] %vm23_vm0, %v302_v2  ;;  %v38_v19 = vld [vmem:[#allocation2 + $0x8] sm:$0xff] }
   0xc   :  { %33 = vst.msk [vmem:[#allocation2 + $0x48] sm:$0xff] %vm23_vm0, %v302_v2  ;;  %v39_v35 = vld [vmem:[#allocation2 + $0x10] sm:$0xff] }
   0xd   :  { %34 = vst.msk [vmem:[#allocation2 + $0x50] sm:$0xff] %vm23_vm0, %v302_v2  ;;  %v40_v54 = vld [vmem:[#allocation2 + $0x18] sm:$0xff] }
   0xe   :  { %35 = vst.msk [vmem:[#allocation2 + $0x58] sm:$0xff] %vm23_vm0, %v302_v2  ;;  %v41_v13 = vld [vmem:[#allocation2 + $0x20] sm:$0xff] }
   0xf   :  { %36 = vst.msk [vmem:[#allocation2 + $0x60] sm:$0xff] %vm23_vm0, %v302_v2  ;;  %v42_v20 = vld [vmem:[#allocation2 + $0x28] sm:$0xff] }
  0x10   :  { %v43_v39 = vld [vmem:[#allocation2 + $0x30] sm:$0xff] }
  0x11   :  { %v44_v57 = vld [vmem:[#allocation2 + $0x38] sm:$0xff] }
  0x12   :  { %v45_v26 = vld [vmem:[#allocation2 + $0x40] sm:$0xff] }
  0x13   :  { %v46_v43 = vld [vmem:[#allocation2 + $0x48] sm:$0xff] }
  0x14   :  { %v47_v18 = vld [vmem:[#allocation2 + $0x50] sm:$0xff] }
  0x15   :  { %v48_v34 = vld [vmem:[#allocation2 + $0x58] sm:$0xff] }
  0x16   :  { %v49_v52 = vld [vmem:[#allocation2 + $0x60] sm:$0xff] }
  0x19   :  { %282 = vmatmul.msk.bf16.gmra.mxu0 %vm23_vm0, %v289_v9  ;;  %284 = vmatmul.msk.bf16.gmra.mxu1 %vm23_vm0, %v291_v10 }
  0x1a   :  { %287 = vmatmul.msk.bf16.gmra.mxu3 %vm23_vm0, %v99_v11 }
  0x86   :  { %v143_v14 = vpop.f32.mrf.mxu0  ;;  %v153_v15 = vpop.f32.mrf.mxu1 }
  0x87   :  { %v177_v16 = vadd.f32 %v143_v14, %v37_v12  ;;  %v181_v17 = vadd.f32 %v153_v15, %v41_v13 }
  0x89   :  { %190 = vst.msk [vmem:[#allocation2] sm:$0xff] %vm23_vm0, %v177_v16 }
  0x8a   :  { %194 = vst.msk [vmem:[#allocation2 + $0x20] sm:$0xff] %vm23_vm0, %v181_v17 }
  0x8d   :  { %v168_v21 = vpop.f32.mrf.mxu3  ;;  %v163_v22 = vpop.f32.mrf.mxu2 }
  0x8e   :  { %v187_v23 = vadd.f32 %v168_v21, %v47_v18  ;;  %v145_v24 = vpop.f32.mrf.mxu0  ;;  %v155_v25 = vpop.f32.mrf.mxu1  ;;  %v185_v32 = vadd.f32 %v163_v22, %v45_v26 }
  0x8f   :  { %v178_v27 = vadd.f32 %v145_v24, %v38_v19  ;;  %v182_v28 = vadd.f32 %v155_v25, %v42_v20 }
  0x90   :  { %v206_v29 = vld [vmem:[#allocation2] sm:$0xff]  ;;  %200 = vst.msk [vmem:[#allocation2 + $0x50] sm:$0xff] %vm23_vm0, %v187_v23 }
  0x91   :  { %v219_v30 = vmax.f32 %v206_v29, 0.0  ;;  %v210_v31 = vld [vmem:[#allocation2 + $0x20] sm:$0xff]  ;;  %191 = vst.msk [vmem:[#allocation2 + $0x8] sm:$0xff] %vm23_vm0, %v178_v27 }
  0x92   :  { %v223_v33 = vmax.f32 %v210_v31, 0.0  ;;  %195 = vst.msk [vmem:[#allocation2 + $0x28] sm:$0xff] %vm23_vm0, %v182_v28 }
  0x93   :  { %232 = vst.msk [vmem:[%s441_s3] sm:$0xff] %vm23_vm0, %v219_v30 }
  0x94   :  { %236 = vst.msk [vmem:[%s441_s3 + $0x20] sm:$0xff] %vm23_vm0, %v223_v33 }
  0x95   :  { %198 = vst.msk [vmem:[#allocation2 + $0x40] sm:$0xff] %vm23_vm0, %v185_v32  ;;  %v170_v36 = vpop.f32.mrf.mxu3  ;;  %v165_v44 = vpop.f32.mrf.mxu2 }
  0x96   :  { %v188_v37 = vadd.f32 %v170_v36, %v48_v34  ;;  %v148_v38 = vpop.f32.mrf.mxu0  ;;  %v158_v40 = vpop.f32.mrf.mxu1  ;;  %v186_v51 = vadd.f32 %v165_v44, %v46_v43 }
  0x97   :  { %v216_v41 = vld [vmem:[#allocation2 + $0x50] sm:$0xff]  ;;  %v179_v42 = vadd.f32 %v148_v38, %v39_v35  ;;  %v183_v49 = vadd.f32 %v158_v40, %v43_v39 }
  0x98   :  { %v229_v45 = vmax.f32 %v216_v41, 0.0  ;;  %v207_v46 = vld [vmem:[#allocation2 + $0x8] sm:$0xff]  ;;  %201 = vst.msk [vmem:[#allocation2 + $0x58] sm:$0xff] %vm23_vm0, %v188_v37 }
  0x99   :  { %v220_v47 = vmax.f32 %v207_v46, 0.0  ;;  %v211_v48 = vld [vmem:[#allocation2 + $0x28] sm:$0xff]  ;;  %192 = vst.msk [vmem:[#allocation2 + $0x10] sm:$0xff] %vm23_vm0, %v179_v42 }
  0x9a   :  { %242 = vst.msk [vmem:[%s441_s3 + $0x50] sm:$0xff] %vm23_vm0, %v229_v45  ;;  %v224_v50 = vmax.f32 %v211_v48, 0.0 }
  0x9b   :  { %233 = vst.msk [vmem:[%s441_s3 + $0x8] sm:$0xff] %vm23_vm0, %v220_v47 }
  0x9c   :  { %237 = vst.msk [vmem:[%s441_s3 + $0x28] sm:$0xff] %vm23_vm0, %v224_v50  ;;  %v214_v53 = vld [vmem:[#allocation2 + $0x40] sm:$0xff] }
  0x9d   :  { %v227_v55 = vmax.f32 %v214_v53, 0.0  ;;  %196 = vst.msk [vmem:[#allocation2 + $0x30] sm:$0xff] %vm23_vm0, %v183_v49  ;;  %v173_v56 = vpop.f32.mrf.mxu3 }
  0x9e   :  { %199 = vst.msk [vmem:[#allocation2 + $0x48] sm:$0xff] %vm23_vm0, %v186_v51  ;;  %v189_v58 = vadd.f32 %v173_v56, %v49_v52  ;;  %v150_v59 = vpop.f32.mrf.mxu0  ;;  %v160_v60 = vpop.f32.mrf.mxu1 }
  0x9f   :  { %240 = vst.msk [vmem:[%s441_s3 + $0x40] sm:$0xff] %vm23_vm0, %v227_v55  ;;  %v217_v61 = vld [vmem:[#allocation2 + $0x58] sm:$0xff]  ;;  %v180_v62 = vadd.f32 %v150_v59, %v40_v54  ;;  %v184_v1 = vadd.f32 %v160_v60, %v44_v57 }
  0xa0   :  { %v230_v63 = vmax.f32 %v217_v61, 0.0  ;;  %v208_v0 = vld [vmem:[#allocation2 + $0x10] sm:$0xff]  ;;  %202 = vst.msk [vmem:[#allocation2 + $0x60] sm:$0xff] %vm23_vm0, %v189_v58 }
  0xa1   :  { %v221_v2 = vmax.f32 %v208_v0, 0.0  ;;  %193 = vst.msk [vmem:[#allocation2 + $0x18] sm:$0xff] %vm23_vm0, %v180_v62 }
  0xa2   :  { %243 = vst.msk [vmem:[%s441_s3 + $0x58] sm:$0xff] %vm23_vm0, %v230_v63 }
  0xa3   :  { %234 = vst.msk [vmem:[%s441_s3 + $0x10] sm:$0xff] %vm23_vm0, %v221_v2 }
  0xa4   :  { %v212_v3 = vld [vmem:[#allocation2 + $0x30] sm:$0xff]  ;;  %197 = vst.msk [vmem:[#allocation2 + $0x38] sm:$0xff] %vm23_vm0, %v184_v1 }
  0xa5   :  { %v225_v4 = vmax.f32 %v212_v3, 0.0  ;;  %v215_v5 = vld [vmem:[#allocation2 + $0x48] sm:$0xff]  ;;  %v175_v6 = vpop.f32.mrf.mxu3 }
  0xa6   :  { %v228_v7 = vmax.f32 %v215_v5, 0.0 }
  0xa7   :  { %238 = vst.msk [vmem:[%s441_s3 + $0x30] sm:$0xff] %vm23_vm0, %v225_v4  ;;  %v218_v8 = vld [vmem:[#allocation2 + $0x60] sm:$0xff] }
  0xa8   :  { %241 = vst.msk [vmem:[%s441_s3 + $0x48] sm:$0xff] %vm23_vm0, %v228_v7  ;;  %v231_v9 = vmax.f32 %v218_v8, 0.0  ;;  %v209_v10 = vld [vmem:[#allocation2 + $0x18] sm:$0xff] }
  0xa9   :  { %v222_v11 = vmax.f32 %v209_v10, 0.0 }
  0xaa   :  { %244 = vst.msk [vmem:[%s441_s3 + $0x60] sm:$0xff] %vm23_vm0, %v231_v9 }
  0xab   :  { %235 = vst.msk [vmem:[%s441_s3 + $0x18] sm:$0xff] %vm23_vm0, %v222_v11  ;;  %v213_v12 = vld [vmem:[#allocation2 + $0x38] sm:$0xff] }
  0xac   :  { %v226_v13 = vmax.f32 %v213_v12, 0.0 }
  0xae   :  { %239 = vst.msk [vmem:[%s441_s3 + $0x38] sm:$0xff] %vm23_vm0, %v226_v13 }

// kernel: _lambda_.3
= control target key start
LH: loop header
LB: loop body
LE: loop exit
PB: predicated region body
PF: predicated region fallthrough
CT: control target
= control target key end

     0   :  { %s6108_s12 = smov 0   ;;  %s6110_s13 = smov 0   ;;  %s8189_s0 = inlined_call_operand.vmem [shape: bf16[656,32], index: 0, kind: input, shape index: {}]   ;;  %s8190_s1 = inlined_call_operand.vmem [shape: bf16[9,32,8], index: 1, kind: input, shape index: {}]   ;;  %s8191_s2 = inlined_call_operand.vmem [shape: f32[576,8], index: 2, kind: input, shape index: {}]   ;;  %s8192_s3 = inlined_call_operand.vmem [shape: f32[576,8], index: 3, kind: output, shape index: {}]  }
   0x1   :  { %s6112_s14 = smov 0  }
   0x2 LB: > { %s32_s15 = sadd.s32 1, %s6082_s13  ;;  %p4934_p0 = scmp.ge.s32.totalorder %s6086_s14, 1  ;;  %s6086_s14 = sphi %s6112_s14, %s13_s14   ;;  %s6082_s13 = sphi %s6110_s13, %s8195_s13   ;;  %s6078_s12 = sphi %s6108_s12, %s8194_s12  }
   0x3   : > { %p34_p1 = scmp.ge.s32.totalorder %s32_s15, 2  ;;  %p196_p2 = scmp.lt.s32.totalorder %s6086_s14, 3 }
   0x5   : > { %s8197_s15 = smov (%p34_p1, %s32_s15), 0  ;;  %p197_p3 = pnand %p4934_p0, %p196_p2 }
   0x6   : > { %s242_s18 = smul.u32 (!%p197_p3), 41, %s6078_s12 }
   0x7   : > { %200 = sbr.rel (%p197_p3) target bundleno = 838 (0x346), region = 32 }
   0x8   : > { %p243_p4 = scmp.lt.s32.totalorder (!%p197_p3), %s242_s18, 81  ;;  %s260_s24 = smul.u32 (!%p197_p3), 36, %s6078_s12 }
   0xa   : > { %p6225_p5 = scmp.lt.s32.totalorder (!%p197_p3), %s260_s24, 71 }
   0xc   : > { %v5873_v0 = vld [vmem:[%s8190_s1 + $0x8] sm:$0xff]  ;;  %v5872_v1 = vld [vmem:[%s8190_s1] sm:$0xff]  ;;  %v5893_v2 = vld [vmem:[%s8190_s1 + $0x18] sm:$0xff]  ;;  %s8199_s18 = smov (!%p243_p4, %s242_s18), 81  ;;  %vm534_vm0 = vcmask 261120   ;;  %vm1489_vm1 = vcmask 1046528  }
   0xd   : > { %6034 = vmatpush.bf16.msra.mxu1 %v5873_v0  ;;  %6035 = vmatpush.bf16.msra.mxu2 %v5873_v0  ;;  %v5913_v3 = vld [vmem:[%s8190_s1 + $0x28] sm:$0xff]  ;;  %s4935_s27 = sshll.u32 %s8199_s18, 2  ;;  %v5892_v9 = vld [vmem:[%s8190_s1 + $0x10] sm:$0xff]  ;;  %v5912_v10 = vld [vmem:[%s8190_s1 + $0x20] sm:$0xff]  ;;  %s8201_s24 = smov (!%p6225_p5, %s260_s24), 71  ;;  %vm319_vm4 = vcmask 64512  }
   0xe   : > { %595 = vmatpush.bf16.msra.mxu0 %v5873_v0  ;;  %6036 = vmatpush.bf16.msra.mxu3 %v5873_v0  ;;  %v5953_v4 = vld [vmem:[%s8190_s1 + $0x48] sm:$0xff]  ;;  %s6147_s30 = scalar_lea.vmem %s8189_s0, %s4935_s27  ;;  %v5933_v11 = vld [vmem:[%s8190_s1 + $0x38] sm:$0xff]  ;;  %v5932_v20 = vld [vmem:[%s8190_s1 + $0x30] sm:$0xff]  ;;  %vm932_vm2 = vsmask.f32 7424  ;;  %s4936_s12 = sshll.u32 %s8201_s24, 3 }
   0xf   : > { %v5859_v5 = vld [vmem:[%s6147_s30 + $0x28] sm:$0xff]  ;;  %v5864_v6 = vld [vmem:[%s6147_s30 + $0x50] sm:$0xff]  ;;  %v5854_v7 = vld [vmem:[%s6147_s30] sm:$0xff]  ;;  %vm2380_vm3 = vsmask.f32 6400  ;;  %s6245_s4 = scalar_lea.vmem %s8191_s2, %s4936_s12  ;;  %vm2959_vm6 = vcmask 1045504   ;;  %s7642_s19 = scalar_lea.vmem %s8192_s3, %s4936_s12 }
  0x10   : > { %v5869_v8 = vld [vmem:[%s6147_s30 + $0x78] sm:$0xff]  ;;  %v5860_v12 = vld [vmem:[%s6147_s30 + $0x30] sm:$0xff]  ;;  %v5855_v14 = vld [vmem:[%s6147_s30 + $0x8] sm:$0xff]  ;;  %vm3850_vm5 = vsmask.f32 5376  ;;  %vm4429_vm7 = vcmask 1044480  }
  0x11   : > { %6037 = vmatpush.bf16.msra.mxu1 %v5872_v1  ;;  %6038 = vmatpush.bf16.msra.mxu2 %v5872_v1  ;;  %v5865_v13 = vld [vmem:[%s6147_s30 + $0x58] sm:$0xff]  ;;  %v5870_v15 = vld [vmem:[%s6147_s30 + $0x80] sm:$0xff]  ;;  %v5856_v18 = vld [vmem:[%s6147_s30 + $0x10] sm:$0xff] }
  0x12   : > { %596 = vmatpush.bf16.msra.mxu0 %v5872_v1  ;;  %6039 = vmatpush.bf16.msra.mxu3 %v5872_v1  ;;  %v5861_v16 = vld [vmem:[%s6147_s30 + $0x38] sm:$0xff]  ;;  %v5866_v17 = vld [vmem:[%s6147_s30 + $0x60] sm:$0xff]  ;;  %v5871_v19 = vld [vmem:[%s6147_s30 + $0x88] sm:$0xff] }
  0x13   : > { %v5952_v21 = vld [vmem:[%s8190_s1 + $0x40] sm:$0xff]  ;;  %v5867_v23 = vld [vmem:[%s6147_s30 + $0x68] sm:$0xff]  ;;  %v5857_v24 = vld [vmem:[%s6147_s30 + $0x18] sm:$0xff] }
  0x14   : > { %5023 = vmatmul.msk.bf16.vlgmr.msra.gmra.mxu1 %vm534_vm0, %v5859_v5  ;;  %5028 = vmatmul.msk.bf16.vlgmr.msra.gmra.mxu2 %vm534_vm0, %v5864_v6  ;;  %v5862_v22 = vld [vmem:[%s6147_s30 + $0x40] sm:$0xff]  ;;  %v5973_v25 = vld [vmem:[%s8190_s1 + $0x58] sm:$0xff]  ;;  %v5993_v26 = vld [vmem:[%s8190_s1 + $0x68] sm:$0xff] }
  0x15   : > { %1153 = vmatpush.bf16.msrb.mxu1 %v5893_v2  ;;  %1599 = vmatpush.bf16.msrb.mxu2 %v5913_v3  ;;  %v5246_v27 = vld [vmem:[%s6147_s30 + $0x8] sm:$0xe]  ;;  %v5914_v28 = vld [vmem:[%s6147_s30 + $0x8] sm:$0xf0]  ;;  %v5915_v29 = vld [vmem:[%s6147_s30 + $0x10] sm:$0xff] }
  0x16   : > { %2623 = vmatpush.bf16.msrb.mxu0 %v5953_v4  ;;  %5033 = vmatmul.msk.bf16.vlgmr.msra.gmra.mxu3 %vm534_vm0, %v5869_v8  ;;  %v5247_v30 = vor.u32 %v5914_v28, %v5246_v27  ;;  %v6013_v31 = vld [vmem:[%s8190_s1 + $0x78] sm:$0xff]  ;;  %v1936_v32 = vrot.slane %v5915_v29, 1  ;;  %v5863_v35 = vld [vmem:[%s6147_s30 + $0x48] sm:$0xff]  ;;  %v5868_v36 = vld [vmem:[%s6147_s30 + $0x70] sm:$0xff] }
  0x17   : > { %5018 = vmatmul.msk.bf16.vlgmr.msra.gmra.mxu0 %vm534_vm0, %v5854_v7  ;;  %2044 = vmatpush.bf16.msrb.mxu3 %v5933_v11  ;;  %v5348_v37 = vld [vmem:[%s6147_s30 + $0x8] sm:$0xe]  ;;  %v5934_v38 = vld [vmem:[%s6147_s30 + $0x8] sm:$0xf0]  ;;  %v5874_v39 = vld [vmem:[%s6147_s30] sm:$0xff] }
  0x18   : > { %v1935_v33 = vrot.slane %v5247_v30, 1  ;;  %v5858_v40 = vld [vmem:[%s6147_s30 + $0x20] sm:$0xff]  ;;  %v5349_v41 = vor.u32 %v5934_v38, %v5348_v37  ;;  %v5935_v42 = vld [vmem:[%s6147_s30 + $0x10] sm:$0xff]  ;;  %v5916_v43 = vld [vmem:[%s6147_s30 + $0x18] sm:$0xff]  ;;  %v936_v46 = vshll.u32 %v5874_v39, 16  ;;  %v934_v55 = vshrl.u32 %v5874_v39, 16 }
  0x19   : > { %1154 = vmatpush.bf16.msrb.mxu1 %v5892_v9  ;;  %1600 = vmatpush.bf16.msrb.mxu2 %v5912_v10  ;;  %v6033_v44 = vld [vmem:[%s8190_s1 + $0x88] sm:$0xff]  ;;  %v5144_v47 = vld [vmem:[%s6147_s30] sm:$0xe]  ;;  %v5894_v49 = vld [vmem:[%s6147_s30] sm:$0xf0]  ;;  %v1938_v50 = vrot.slane %v5916_v43, 1 }
  0x1a   : > { %2624 = vmatpush.bf16.msrb.mxu0 %v5952_v21  ;;  %v1937_v34 = vsel %vm1489_vm1, %v1935_v33, %v1936_v32  ;;  %v5875_v45 = vld [vmem:[%s6147_s30 + $0x8] sm:$0xff]  ;;  %v2382_v48 = vshrl.u32 %v5349_v41, 16  ;;  %v2385_v51 = vshll.u32 %v5349_v41, 16  ;;  %v2390_v52 = vshrl.u32 %v5935_v42, 16  ;;  %v5936_v9 = vld [vmem:[%s6147_s30 + $0x18] sm:$0xff]  ;;  %v5917_v10 = vld [vmem:[%s6147_s30 + $0x20] sm:$0xff] }
  0x1b   : > { %2045 = vmatpush.bf16.msrb.mxu3 %v5932_v20  ;;  %v2393_v53 = vshll.u32 %v5935_v42, 16  ;;  %v1939_v54 = vsel %vm1489_vm1, %v1936_v32, %v1938_v50  ;;  %v938_v56 = vrot.slane %v936_v46, 1  ;;  %v941_v57 = vshll.u32 %v5875_v45, 16  ;;  %v5895_v58 = vld [vmem:[%s6147_s30 + $0x8] sm:$0xff]  ;;  %v293_v11 = vld [vmem:[%s6245_s4 + $0x50] sm:$0xff]  ;;  %v294_v28 = vld [vmem:[%s6245_s4 + $0x58] sm:$0xff] }
  0x1c   : > { %v5145_v59 = vor.u32 %v5894_v49, %v5144_v47  ;;  %v2384_v60 = vrot.slane %v2382_v48, 1  ;;  %v2387_v61 = vrot.slane %v2385_v51, 2  ;;  %v2392_v62 = vrot.slane %v2390_v52, 1  ;;  %330 = vst.msk [vmem:[#allocation2 + $0x50] sm:$0xff] %vm319_vm4, %v293_v11  ;;  %v5937_v30 = vld [vmem:[%s6147_s30 + $0x20] sm:$0xff]  ;;  %v5877_v32 = vld [vmem:[%s6147_s30 + $0x18] sm:$0xff] }
  0x1d   : > { %3069 = vmatpush.bf16.msra.mxu1 %v5973_v25  ;;  %3514 = vmatpush.bf16.msra.mxu2 %v5993_v26  ;;  %v2395_v63 = vrot.slane %v2393_v53, 2  ;;  %v939_v0 = vor.u32 %v938_v56, %v934_v55  ;;  %v943_v1 = vrot.slane %v941_v57, 1  ;;  %v1491_v3 = vrot.slane %v5895_v58, 1  ;;  %331 = vst.msk [vmem:[#allocation2 + $0x58] sm:$0xff] %vm319_vm4, %v294_v28  ;;  %v5918_v33 = vld [vmem:[%s6147_s30 + $0x28] sm:$0xff]  ;;  %v295_v42 = vld [vmem:[%s6245_s4 + $0x60] sm:$0xff] }
  0x1e   : > { %4539 = vmatpush.bf16.msra.mxu0 %v6033_v44  ;;  %v1490_v2 = vrot.slane %v5145_v59, 1  ;;  %v2388_v4 = vor.u32 %v2387_v61, %v2384_v60  ;;  %v304_v37 = vld [vmem:[%s6245_s4 + $0xa8] sm:$0xff]  ;;  %v957_v39 = vshll.u32 %v5877_v32, 16  ;;  %332 = vst.msk [vmem:[#allocation2 + $0x60] sm:$0xff] %vm319_vm4, %v295_v42  ;;  %v283_v55 = vld [vmem:[%s6245_s4] sm:$0xff]  ;;  %v5919_v57 = vld [vmem:[%s6147_s30 + $0x30] sm:$0xff] }
  0x1f   : > { %4093 = vmatpush.bf16.msra.mxu3 %v6013_v31  ;;  %v2396_v5 = vor.u32 %v2395_v63, %v2392_v62  ;;  %v944_v6 = vsel %vm932_vm2, %v939_v0, %v943_v1  ;;  %v303_v31 = vld [vmem:[%s6245_s4 + $0xa0] sm:$0xff]  ;;  %341 = vst.msk [vmem:[#allocation2 + $0xa8] sm:$0xff] %vm319_vm4, %v304_v37  ;;  %v296_v51 = vld [vmem:[%s6245_s4 + $0x68] sm:$0xff]  ;;  %v1944_v60 = vrot.slane %v5919_v57, 1  ;;  %v306_v62 = vld [vmem:[%s6245_s4 + $0xb8] sm:$0xff]  ;;  %v961_v63 = vshrl.u32 %v5877_v32, 16 }
  0x20   : > { %v1492_v7 = vsel %vm1489_vm1, %v1490_v2, %v1491_v3  ;;  %340 = vst.msk [vmem:[#allocation2 + $0xa0] sm:$0xff] %vm319_vm4, %v303_v31  ;;  %v959_v46 = vrot.slane %v957_v39, 1  ;;  %v5938_v53 = vld [vmem:[%s6147_s30 + $0x28] sm:$0xff]  ;;  %v6291_v56 = vld [vmem:[%s6147_s30 + $0x20] sm:$0xff]  ;;  %v286_v31 = vld [vmem:[%s6245_s4 + $0x18] sm:$0xff] }
  0x21   : > { %v2397_v8 = vsel %vm2380_vm3, %v2388_v4, %v2396_v5  ;;  %333 = vst.msk [vmem:[#allocation2 + $0x68] sm:$0xff] %vm319_vm4, %v296_v51  ;;  %v2417_v58 = vshrl.u32 %v5938_v53, 16  ;;  %v2420_v59 = vshll.u32 %v5938_v53, 16  ;;  %v284_v61 = vld [vmem:[%s6245_s4 + $0x8] sm:$0xff]  ;;  %v965_v0 = vshll.u32 %v6291_v56, 16 }
  0x22   : > { %320 = vst.msk [vmem:[#allocation2] sm:$0xff] %vm319_vm4, %v283_v55  ;;  %v308_v32 = vld [vmem:[%s6245_s4 + $0xc8] sm:$0xff] }
  0x23   : > { %321 = vst.msk [vmem:[#allocation2 + $0x8] sm:$0xff] %vm319_vm4, %v284_v61  ;;  %v2419_v4 = vrot.slane %v2417_v58, 1  ;;  %v300_v61 = vld [vmem:[%s6245_s4 + $0x88] sm:$0xff] }
  0x24   : > { %5024 = vmatmul.msk.bf16.gmra.mxu1 %vm534_vm0, %v5860_v12  ;;  %5029 = vmatmul.msk.bf16.gmra.mxu2 %vm534_vm0, %v5865_v13  ;;  %v5876_v12 = vld [vmem:[%s6147_s30 + $0x10] sm:$0xff]  ;;  %v1940_v13 = vrot.slane %v5917_v10, 1  ;;  %343 = vst.msk [vmem:[#allocation2 + $0xb8] sm:$0xff] %vm319_vm4, %v306_v62 }
  0x25   : > { %v953_v38 = vshrl.u32 %v5876_v12, 16  ;;  %v366_v10 = vld [vmem:[#allocation2 + $0x50] sm:$0xff]  ;;  %323 = vst.msk [vmem:[#allocation2 + $0x18] sm:$0xff] %vm319_vm4, %v286_v31  ;;  %v368_v55 = vld [vmem:[#allocation2 + $0x60] sm:$0xff] }
  0x26   : > { %5034 = vmatmul.msk.bf16.gmra.mxu3 %vm534_vm0, %v5870_v15  ;;  %v2402_v15 = vshll.u32 %v5936_v9, 16  ;;  %345 = vst.msk [vmem:[#allocation2 + $0xc8] sm:$0xff] %vm319_vm4, %v308_v32 }
  0x27   : > { %5019 = vmatmul.msk.bf16.gmra.mxu0 %vm534_vm0, %v5855_v14  ;;  %v2399_v14 = vshrl.u32 %v5936_v9, 16  ;;  %337 = vst.msk [vmem:[#allocation2 + $0x88] sm:$0xff] %vm319_vm4, %v300_v61 }
  0x28   : > { %v2404_v21 = vrot.slane %v2402_v15, 2  ;;  %v298_v15 = vld [vmem:[%s6245_s4 + $0x78] sm:$0xff] }
  0x29   : > { %v2401_v20 = vrot.slane %v2399_v14, 1  ;;  %v356_v11 = vld [vmem:[#allocation2] sm:$0xff]  ;;  %335 = vst.msk [vmem:[#allocation2 + $0x78] sm:$0xff] %vm319_vm4, %v298_v15  ;;  %v369_v15 = vld [vmem:[#allocation2 + $0x68] sm:$0xff] }
  0x2b   : > { %v2405_v25 = vor.u32 %v2404_v21, %v2401_v20  ;;  %v285_v21 = vld [vmem:[%s6245_s4 + $0x10] sm:$0xff] }
  0x2c   : > { %322 = vst.msk [vmem:[#allocation2 + $0x10] sm:$0xff] %vm319_vm4, %v285_v21 }
  0x2d   : > { %v2406_v29 = vsel %vm2380_vm3, %v2396_v5, %v2405_v25  ;;  %v2422_v5 = vrot.slane %v2420_v59, 2 }
  0x2f   : > { %v6309_v9 = vor.u32 %v2422_v5, %v2419_v4  ;;  %v287_v5 = vld [vmem:[%s6245_s4 + $0x20] sm:$0xff] }
  0x30   : > { %324 = vst.msk [vmem:[#allocation2 + $0x20] sm:$0xff] %vm319_vm4, %v287_v5 }
  0x33   : > { %v358_v57 = vld [vmem:[#allocation2 + $0x10] sm:$0xff] }
  0x34   : > { %5025 = vmatmul.msk.bf16.gmra.mxu1 %vm534_vm0, %v5861_v16  ;;  %5030 = vmatmul.msk.bf16.gmra.mxu2 %vm534_vm0, %v5866_v17  ;;  %v1941_v16 = vsel %vm1489_vm1, %v1938_v50, %v1940_v13  ;;  %v945_v17 = vshrl.u32 %v5875_v45, 16 }
  0x36   : > { %5035 = vmatmul.msk.bf16.gmra.mxu3 %vm534_vm0, %v5871_v19  ;;  %v5896_v19 = vld [vmem:[%s6147_s30 + $0x10] sm:$0xff] }
  0x37   : > { %5020 = vmatmul.msk.bf16.gmra.mxu0 %vm534_vm0, %v5856_v18  ;;  %v949_v18 = vshll.u32 %v5876_v12, 16 }
  0x44   : > { %5026 = vmatmul.msk.bf16.gmra.mxu1 %vm534_vm0, %v5862_v22  ;;  %5031 = vmatmul.msk.bf16.gmra.mxu2 %vm534_vm0, %v5867_v23  ;;  %v947_v22 = vor.u32 %v945_v17, %v943_v1  ;;  %v951_v23 = vrot.slane %v949_v18, 1  ;;  %v6301_v1 = vld [vmem:[%s6147_s30 + $0x20] sm:$0xff] }
  0x46   : > { %5324 = vmatmul.msk.bf16.vlgmr.msrb.gmra.mxu3 %vm534_vm0, %v1937_v34  ;;  %v952_v26 = vsel %vm932_vm2, %v947_v22, %v951_v23  ;;  %v2408_v34 = vshrl.u32 %v5937_v30, 16  ;;  %v955_v45 = vor.u32 %v953_v38, %v951_v23  ;;  %v307_v22 = vld [vmem:[%s6245_s4 + $0xc0] sm:$0xff]  ;;  %v6342_v38 = vld [vmem:[%s6147_s30 + $0x28] sm:$0xff] }
  0x47   : > { %5021 = vmatmul.msk.bf16.gmra.mxu0 %vm534_vm0, %v5857_v24  ;;  %v1493_v24 = vrot.slane %v5896_v19, 1  ;;  %v5939_v19 = vld [vmem:[%s6147_s30 + $0x30] sm:$0xff]  ;;  %v376_v23 = vld [vmem:[#allocation2 + $0xa0] sm:$0xff]  ;;  %344 = vst.msk [vmem:[#allocation2 + $0xc0] sm:$0xff] %vm319_vm4, %v307_v22  ;;  %v1499_v51 = vrot.slane %v6342_v38, 1  ;;  %v6443_v38 = vld [vmem:[%s6147_s30 + $0x38] sm:$0xff] }
  0x48   : > { %v2410_v43 = vrot.slane %v2408_v34, 1  ;;  %v960_v49 = vsel %vm932_vm2, %v955_v45, %v959_v46  ;;  %v357_v34 = vld [vmem:[#allocation2 + $0x8] sm:$0xff] }
  0x49   : > { %v1494_v27 = vsel %vm1489_vm1, %v1491_v3, %v1493_v24  ;;  %v297_v3 = vld [vmem:[%s6245_s4 + $0x70] sm:$0xff] }
  0x4a   : > { %334 = vst.msk [vmem:[#allocation2 + $0x70] sm:$0xff] %vm319_vm4, %v297_v3 }
  0x54   : > { %5027 = vmatmul.msk.bf16.gmra.mxu1 %vm534_vm0, %v5863_v35  ;;  %5032 = vmatmul.msk.bf16.gmra.mxu2 %vm534_vm0, %v5868_v36  ;;  %v2411_v35 = vshll.u32 %v5937_v30, 16  ;;  %v1942_v36 = vrot.slane %v5918_v33, 1 }
  0x56   : > { %5325 = vmatmul.msk.bf16.gmra.mxu3 %vm534_vm0, %v1939_v54  ;;  %v1943_v41 = vsel %vm1489_vm1, %v1940_v13, %v1942_v36  ;;  %v2413_v44 = vrot.slane %v2411_v35, 2  ;;  %v305_v54 = vld [vmem:[%s6245_s4 + $0xb0] sm:$0xff]  ;;  %v1945_v2 = vsel %vm1489_vm1, %v1942_v36, %v1944_v60  ;;  %v969_v36 = vshrl.u32 %v6291_v56, 16 }
  0x57   : > { %5022 = vmatmul.msk.bf16.gmra.mxu0 %vm534_vm0, %v5858_v40  ;;  %v5897_v40 = vld [vmem:[%s6147_s30 + $0x18] sm:$0xff]  ;;  %342 = vst.msk [vmem:[#allocation2 + $0xb0] sm:$0xff] %vm319_vm4, %v305_v54 }
  0x58   : > { %v1495_v47 = vrot.slane %v5897_v40, 1  ;;  %v2414_v48 = vor.u32 %v2413_v44, %v2410_v43  ;;  %v299_v40 = vld [vmem:[%s6245_s4 + $0x80] sm:$0xff] }
  0x59   : > { %336 = vst.msk [vmem:[#allocation2 + $0x80] sm:$0xff] %vm319_vm4, %v299_v40 }
  0x5a   : > { %v1496_v50 = vsel %vm1489_vm1, %v1493_v24, %v1495_v47  ;;  %v2415_v52 = vsel %vm2380_vm3, %v2405_v25, %v2414_v48  ;;  %v2424_v18 = vsel %vm2380_vm3, %v2414_v48, %v6309_v9  ;;  %v6326_v24 = vld [vmem:[%s6147_s30 + $0x28] sm:$0xff]  ;;  %v6331_v25 = vld [vmem:[%s6147_s30 + $0x38] sm:$0xff] }
  0x5b   : > { %v1946_v30 = vrot.slane %v6331_v25, 1  ;;  %v973_v37 = vshll.u32 %v6326_v24, 16  ;;  %v377_v48 = vld [vmem:[#allocation2 + $0xa8] sm:$0xff]  ;;  %v977_v22 = vshrl.u32 %v6326_v24, 16  ;;  %v310_v25 = vld [vmem:[%s6245_s4 + $0xd8] sm:$0xff] }
  0x5c   : > { %347 = vst.msk [vmem:[#allocation2 + $0xd8] sm:$0xff] %vm319_vm4, %v310_v25 }
  0x5d   : > { %v1947_v39 = vsel %vm1489_vm1, %v1944_v60, %v1946_v30 }
  0x64   : > { %5120 = vmatmul.msk.bf16.vlgmr.msrb.gmra.mxu1 %vm534_vm0, %v944_v6  ;;  %5222 = vmatmul.msk.bf16.vlgmr.msrb.gmra.mxu2 %vm534_vm0, %v1492_v7  ;;  %v963_v6 = vor.u32 %v961_v63, %v959_v46  ;;  %v967_v7 = vrot.slane %v965_v0, 1  ;;  %v313_v46 = vld [vmem:[%s6245_s4 + $0xf0] sm:$0xff] }
  0x65   : > { %350 = vst.msk [vmem:[#allocation2 + $0xf0] sm:$0xff] %vm319_vm4, %v313_v46 }
  0x66   : > { %5326 = vmatmul.msk.bf16.gmra.mxu3 %vm534_vm0, %v1941_v16  ;;  %v968_v13 = vsel %vm932_vm2, %v963_v6, %v967_v7  ;;  %v309_v6 = vld [vmem:[%s6245_s4 + $0xd0] sm:$0xff] }
  0x67   : > { %5426 = vmatmul.msk.bf16.vlgmr.msrb.gmra.mxu0 %vm534_vm0, %v2397_v8  ;;  %v1497_v8 = vrot.slane %v6301_v1, 1  ;;  %v378_v1 = vld [vmem:[#allocation2 + $0xb0] sm:$0xff]  ;;  %346 = vst.msk [vmem:[#allocation2 + $0xd0] sm:$0xff] %vm319_vm4, %v309_v6 }
  0x69   : > { %v1498_v14 = vsel %vm1489_vm1, %v1495_v47, %v1497_v8  ;;  %v1500_v60 = vsel %vm1489_vm1, %v1497_v8, %v1499_v51 }
  0x6c   : > { %v386_v8 = vld [vmem:[#allocation2 + $0xf0] sm:$0xff] }
  0x74   : > { %5121 = vmatmul.msk.bf16.gmra.mxu1 %vm534_vm0, %v952_v26  ;;  %5223 = vmatmul.msk.bf16.gmra.mxu2 %vm534_vm0, %v1494_v27  ;;  %v2426_v26 = vshrl.u32 %v5939_v19, 16  ;;  %v2429_v27 = vshll.u32 %v5939_v19, 16  ;;  %v359_v19 = vld [vmem:[#allocation2 + $0x18] sm:$0xff] }
  0x76   : > { %5327 = vmatmul.msk.bf16.gmra.mxu3 %vm534_vm0, %v1943_v41  ;;  %v2428_v43 = vrot.slane %v2426_v26, 1  ;;  %v2431_v44 = vrot.slane %v2429_v27, 2  ;;  %v6398_v26 = vld [vmem:[%s6147_s30 + $0x30] sm:$0xff] }
  0x77   : > { %5427 = vmatmul.msk.bf16.gmra.mxu0 %vm534_vm0, %v2406_v29  ;;  %v367_v29 = vld [vmem:[#allocation2 + $0x58] sm:$0xff] }
  0x78   : > { %v6359_v53 = vor.u32 %v2431_v44, %v2428_v43  ;;  %v370_v43 = vld [vmem:[#allocation2 + $0x70] sm:$0xff] }
  0x7a   : > { %v2433_v0 = vsel %vm2380_vm3, %v6309_v9, %v6359_v53  ;;  %v6388_v9 = vld [vmem:[%s6147_s30 + $0x40] sm:$0xff] }
  0x84   : > { %5122 = vmatmul.msk.bf16.gmra.mxu1 %vm534_vm0, %v960_v49  ;;  %5224 = vmatmul.msk.bf16.gmra.mxu2 %vm534_vm0, %v1496_v50  ;;  %v971_v49 = vor.u32 %v969_v36, %v967_v7  ;;  %v6354_v50 = vrot.slane %v973_v37, 1  ;;  %v6383_v7 = vld [vmem:[%s6147_s30 + $0x30] sm:$0xff]  ;;  %v1501_v37 = vrot.slane %v6398_v26, 1  ;;  %v6498_v26 = vld [vmem:[%s6147_s30 + $0x40] sm:$0xff] }
  0x86   : > { %5328 = vmatmul.msk.bf16.gmra.mxu3 %vm534_vm0, %v1945_v2  ;;  %v976_v59 = vsel %vm932_vm2, %v971_v49, %v6354_v50  ;;  %v5940_v2 = vld [vmem:[%s6147_s30 + $0x38] sm:$0xff] }
  0x87   : > { %5428 = vmatmul.msk.bf16.gmra.mxu0 %vm534_vm0, %v2415_v52  ;;  %v314_v52 = vld [vmem:[%s6245_s4 + $0xf8] sm:$0xff] }
  0x88   : > { %351 = vst.msk [vmem:[#allocation2 + $0xf8] sm:$0xff] %vm319_vm4, %v314_v52  ;;  %v302_v49 = vld [vmem:[%s6245_s4 + $0x98] sm:$0xff] }
  0x89   : > { %339 = vst.msk [vmem:[#allocation2 + $0x98] sm:$0xff] %vm319_vm4, %v302_v49 }
  0x91   : > { %v623_v12 = vpop.f32.mrf.mxu1 }
  0x92   : > { %v698_v16 = vadd.f32 %v623_v12, %v366_v10  ;;  %v2435_v12 = vshrl.u32 %v5940_v2, 16 }
  0x94   : > { %v598_v17 = vpop.f32.mrf.mxu0  ;;  %735 = vst.msk [vmem:[#allocation2 + $0x50] sm:$0xff] %vm319_vm4, %v698_v16  ;;  %5123 = vmatmul.msk.bf16.gmra.mxu1 %vm534_vm0, %v968_v13  ;;  %5225 = vmatmul.msk.bf16.gmra.mxu2 %vm534_vm0, %v1498_v14  ;;  %v2438_v13 = vshll.u32 %v5940_v2, 16  ;;  %v2437_v31 = vrot.slane %v2435_v12, 1  ;;  %v371_v2 = vld [vmem:[#allocation2 + $0x78] sm:$0xff] }
  0x95   : > { %v688_v20 = vadd.f32 %v598_v17, %v356_v11  ;;  %v387_v11 = vld [vmem:[#allocation2 + $0xf8] sm:$0xff]  ;;  %v1948_v17 = vrot.slane %v6388_v9, 1 }
  0x96   : > { %5329 = vmatmul.msk.bf16.gmra.mxu3 %vm534_vm0, %v1947_v39  ;;  %v2440_v24 = vrot.slane %v2438_v13, 2  ;;  %v301_v39 = vld [vmem:[%s6245_s4 + $0x90] sm:$0xff]  ;;  %v6460_v12 = vld [vmem:[%s6147_s30 + $0x38] sm:$0xff] }
  0x97   : > { %725 = vst.msk [vmem:[#allocation2] sm:$0xff] %vm319_vm4, %v688_v20  ;;  %5429 = vmatmul.msk.bf16.gmra.mxu0 %vm534_vm0, %v2424_v18  ;;  %v648_v28 = vpop.f32.mrf.mxu2  ;;  %v288_v20 = vld [vmem:[%s6245_s4 + $0x28] sm:$0xff]  ;;  %v1949_v27 = vsel %vm1489_vm1, %v1946_v30, %v1948_v17  ;;  %v979_v30 = vor.u32 %v977_v22, %v6354_v50 }
  0x98   : > { %v708_v33 = vadd.f32 %v648_v28, %v376_v23  ;;  %v981_v23 = vshll.u32 %v6383_v7, 16  ;;  %325 = vst.msk [vmem:[#allocation2 + $0x28] sm:$0xff] %vm319_vm4, %v288_v20  ;;  %v6418_v40 = vor.u32 %v2440_v24, %v2437_v31  ;;  %v317_v20 = vld [vmem:[%s6245_s4 + $0x110] sm:$0xff]  ;;  %v372_v24 = vld [vmem:[#allocation2 + $0x80] sm:$0xff] }
  0x99   : > { %v625_v35 = vpop.f32.mrf.mxu1  ;;  %v673_v47 = vpop.f32.mrf.mxu3  ;;  %338 = vst.msk [vmem:[#allocation2 + $0x90] sm:$0xff] %vm319_vm4, %v301_v39 }
  0x9a   : > { %745 = vst.msk [vmem:[#allocation2 + $0xa0] sm:$0xff] %vm319_vm4, %v708_v33  ;;  %v699_v41 = vadd.f32 %v625_v35, %v367_v29  ;;  %v718_v10 = vadd.f32 %v673_v47, %v386_v8  ;;  %v315_v33 = vld [vmem:[%s6245_s4 + $0x100] sm:$0xff]  ;;  %v379_v35 = vld [vmem:[#allocation2 + $0xb8] sm:$0xff]  ;;  %v6413_v36 = vrot.slane %v981_v23, 1 }
  0x9b   : > { %352 = vst.msk [vmem:[#allocation2 + $0x100] sm:$0xff] %vm319_vm4, %v315_v33 }
  0x9c   : > { %v600_v42 = vpop.f32.mrf.mxu0  ;;  %736 = vst.msk [vmem:[#allocation2 + $0x58] sm:$0xff] %vm319_vm4, %v699_v41  ;;  %v316_v41 = vld [vmem:[%s6245_s4 + $0x108] sm:$0xff]  ;;  %v984_v47 = vsel %vm932_vm2, %v979_v30, %v6413_v36 }
  0x9d   : > { %v689_v45 = vadd.f32 %v600_v42, %v357_v34  ;;  %755 = vst.msk [vmem:[#allocation2 + $0xf0] sm:$0xff] %vm319_vm4, %v718_v10  ;;  %v985_v10 = vshrl.u32 %v6383_v7, 16 }
  0x9e   : > { %353 = vst.msk [vmem:[#allocation2 + $0x108] sm:$0xff] %vm319_vm4, %v316_v41  ;;  %v5942_v41 = vld [vmem:[%s6147_s30 + $0x48] sm:$0xff] }
  0x9f   : > { %726 = vst.msk [vmem:[#allocation2 + $0x8] sm:$0xff] %vm319_vm4, %v689_v45  ;;  %v650_v54 = vpop.f32.mrf.mxu2  ;;  %v360_v45 = vld [vmem:[#allocation2 + $0x20] sm:$0xff]  ;;  %v361_v5 = vld [vmem:[#allocation2 + $0x28] sm:$0xff]  ;;  %v987_v22 = vor.u32 %v985_v10, %v6413_v36 }
  0xa0   : > { %v709_v56 = vadd.f32 %v650_v54, %v377_v48  ;;  %v1502_v48 = vsel %vm1489_vm1, %v1499_v51, %v1501_v37  ;;  %v2442_v54 = vsel %vm2380_vm3, %v6359_v53, %v6418_v40  ;;  %354 = vst.msk [vmem:[#allocation2 + $0x110] sm:$0xff] %vm319_vm4, %v317_v20 }
  0xa1   : > { %v628_v58 = vpop.f32.mrf.mxu1  ;;  %v675_v4 = vpop.f32.mrf.mxu3 }
  0xa2   : > { %746 = vst.msk [vmem:[#allocation2 + $0xa8] sm:$0xff] %vm319_vm4, %v709_v56  ;;  %v700_v62 = vadd.f32 %v628_v58, %v368_v55  ;;  %v719_v16 = vadd.f32 %v675_v4, %v387_v11  ;;  %v5941_v55 = vld [vmem:[%s6147_s30 + $0x40] sm:$0xff]  ;;  %v989_v11 = vshll.u32 %v6443_v38, 16 }
  0xa3   : > { %v311_v58 = vld [vmem:[%s6245_s4 + $0xe0] sm:$0xff] }
  0xa4   : > { %v603_v63 = vpop.f32.mrf.mxu0  ;;  %737 = vst.msk [vmem:[#allocation2 + $0x60] sm:$0xff] %vm319_vm4, %v700_v62  ;;  %5124 = vmatmul.msk.bf16.gmra.mxu1 %vm534_vm0, %v976_v59  ;;  %5226 = vmatmul.msk.bf16.gmra.mxu2 %vm534_vm0, %v1500_v60  ;;  %v380_v59 = vld [vmem:[#allocation2 + $0xc0] sm:$0xff]  ;;  %v6450_v60 = vld [vmem:[%s6147_s30 + $0x48] sm:$0xff]  ;;  %v2444_v62 = vshrl.u32 %v5941_v55, 16  ;;  %v991_v23 = vrot.slane %v989_v11, 1  ;;  %v374_v11 = vld [vmem:[#allocation2 + $0x90] sm:$0xff] }
  0xa5   : > { %v690_v3 = vadd.f32 %v603_v63, %v358_v57  ;;  %756 = vst.msk [vmem:[#allocation2 + $0xf8] sm:$0xff] %vm319_vm4, %v719_v16  ;;  %v289_v57 = vld [vmem:[%s6245_s4 + $0x30] sm:$0xff]  ;;  %v388_v53 = vld [vmem:[#allocation2 + $0x100] sm:$0xff]  ;;  %v2447_v63 = vshll.u32 %v5941_v55, 16  ;;  %v389_v6 = vld [vmem:[#allocation2 + $0x108] sm:$0xff] }
  0xa6   : > { %5330 = vmatmul.msk.bf16.gmra.mxu3 %vm534_vm0, %v1949_v27  ;;  %326 = vst.msk [vmem:[#allocation2 + $0x30] sm:$0xff] %vm319_vm4, %v289_v57  ;;  %v2446_v7 = vrot.slane %v2444_v62, 1  ;;  %v1503_v27 = vrot.slane %v6460_v12, 1  ;;  %v992_v25 = vsel %vm932_vm2, %v987_v22, %v991_v23  ;;  %v292_v55 = vld [vmem:[%s6245_s4 + $0x48] sm:$0xff]  ;;  %v5924_v22 = vld [vmem:[%s6147_s30 + $0x58] sm:$0xff] }
  0xa7   : > { %727 = vst.msk [vmem:[#allocation2 + $0x10] sm:$0xff] %vm319_vm4, %v690_v3  ;;  %5430 = vmatmul.msk.bf16.gmra.mxu0 %vm534_vm0, %v2433_v0  ;;  %v653_v14 = vpop.f32.mrf.mxu2  ;;  %v1950_v3 = vrot.slane %v6450_v60, 1  ;;  %v6544_v12 = vld [vmem:[%s6147_s30 + $0x48] sm:$0xff] }
  0xa8   : > { %v710_v18 = vadd.f32 %v653_v14, %v378_v1  ;;  %348 = vst.msk [vmem:[#allocation2 + $0xe0] sm:$0xff] %vm319_vm4, %v311_v58  ;;  %v290_v1 = vld [vmem:[%s6245_s4 + $0x38] sm:$0xff] }
  0xa9   : > { %v630_v21 = vpop.f32.mrf.mxu1  ;;  %v678_v34 = vpop.f32.mrf.mxu3  ;;  %v1951_v14 = vsel %vm1489_vm1, %v1948_v17, %v1950_v3  ;;  %327 = vst.msk [vmem:[#allocation2 + $0x38] sm:$0xff] %vm319_vm4, %v290_v1  ;;  %v381_v17 = vld [vmem:[#allocation2 + $0xc8] sm:$0xff] }
  0xaa   : > { %747 = vst.msk [vmem:[#allocation2 + $0xb0] sm:$0xff] %vm319_vm4, %v710_v18  ;;  %v701_v28 = vadd.f32 %v630_v21, %v369_v15  ;;  %v720_v61 = vadd.f32 %v678_v34, %v388_v53  ;;  %v2449_v18 = vrot.slane %v2447_v63, 2  ;;  %v312_v21 = vld [vmem:[%s6245_s4 + $0xe8] sm:$0xff]  ;;  %v997_v53 = vshll.u32 %v6498_v26, 16 }
  0xab   : > { %349 = vst.msk [vmem:[#allocation2 + $0xe8] sm:$0xff] %vm319_vm4, %v312_v21 }
  0xac   : > { %v605_v29 = vpop.f32.mrf.mxu0  ;;  %738 = vst.msk [vmem:[#allocation2 + $0x68] sm:$0xff] %vm319_vm4, %v701_v28  ;;  %v318_v28 = vld [vmem:[%s6245_s4 + $0x118] sm:$0xff]  ;;  %v999_v60 = vrot.slane %v997_v53, 1 }
  0xad   : > { %v691_v32 = vadd.f32 %v605_v29, %v359_v19  ;;  %757 = vst.msk [vmem:[#allocation2 + $0x100] sm:$0xff] %vm319_vm4, %v720_v61  ;;  %v6478_v29 = vor.u32 %v2449_v18, %v2446_v7  ;;  %v362_v33 = vld [vmem:[#allocation2 + $0x30] sm:$0xff]  ;;  %v6513_v61 = vld [vmem:[%s6147_s30 + $0x40] sm:$0xff]  ;;  %v5944_v53 = vld [vmem:[%s6147_s30 + $0x58] sm:$0xff] }
  0xae   : > { %355 = vst.msk [vmem:[#allocation2 + $0x118] sm:$0xff] %vm319_vm4, %v318_v28 }
  0xaf   : > { %728 = vst.msk [vmem:[#allocation2 + $0x18] sm:$0xff] %vm319_vm4, %v691_v32  ;;  %v655_v42 = vpop.f32.mrf.mxu2  ;;  %v2451_v39 = vsel %vm2380_vm3, %v6418_v40, %v6478_v29  ;;  %v6504_v40 = vld [vmem:[%s6147_s30 + $0x50] sm:$0xff] }
  0xb0   : > { %v711_v44 = vadd.f32 %v655_v42, %v379_v35  ;;  %v1504_v35 = vsel %vm1489_vm1, %v1501_v37, %v1503_v27  ;;  %329 = vst.msk [vmem:[#allocation2 + $0x48] sm:$0xff] %vm319_vm4, %v292_v55 }
  0xb1   : > { %v633_v46 = vpop.f32.mrf.mxu1  ;;  %v680_v51 = vpop.f32.mrf.mxu3 }
  0xb2   : > { %748 = vst.msk [vmem:[#allocation2 + $0xb8] sm:$0xff] %vm319_vm4, %v711_v44  ;;  %v702_v50 = vadd.f32 %v633_v46, %v370_v43  ;;  %v721_v13 = vadd.f32 %v680_v51, %v389_v6  ;;  %v291_v43 = vld [vmem:[%s6245_s4 + $0x40] sm:$0xff]  ;;  %v382_v44 = vld [vmem:[#allocation2 + $0xd0] sm:$0xff]  ;;  %v363_v51 = vld [vmem:[#allocation2 + $0x38] sm:$0xff] }
  0xb3   : > { %328 = vst.msk [vmem:[#allocation2 + $0x40] sm:$0xff] %vm319_vm4, %v291_v43 }
  0xb4   : > { %v608_v52 = vpop.f32.mrf.mxu0  ;;  %739 = vst.msk [vmem:[#allocation2 + $0x70] sm:$0xff] %vm319_vm4, %v702_v50  ;;  %5125 = vmatmul.msk.bf16.gmra.mxu1 %vm534_vm0, %v984_v47  ;;  %5227 = vmatmul.msk.bf16.gmra.mxu2 %vm534_vm0, %v1502_v48  ;;  %v2453_v47 = vshrl.u32 %v5942_v41, 16  ;;  %v2456_v48 = vshll.u32 %v5942_v41, 16  ;;  %v373_v50 = vld [vmem:[#allocation2 + $0x88] sm:$0xff] }
  0xb5   : > { %v692_v56 = vadd.f32 %v608_v52, %v360_v45  ;;  %758 = vst.msk [vmem:[#allocation2 + $0x108] sm:$0xff] %vm319_vm4, %v721_v13  ;;  %v390_v45 = vld [vmem:[#allocation2 + $0x110] sm:$0xff]  ;;  %v391_v52 = vld [vmem:[#allocation2 + $0x118] sm:$0xff] }
  0xb6   : > { %5331 = vmatmul.msk.bf16.gmra.mxu3 %vm534_vm0, %v1951_v14  ;;  %v2458_v1 = vrot.slane %v2456_v48, 2 }
  0xb7   : > { %729 = vst.msk [vmem:[#allocation2 + $0x20] sm:$0xff] %vm319_vm4, %v692_v56  ;;  %5431 = vmatmul.msk.bf16.gmra.mxu0 %vm534_vm0, %v2442_v54  ;;  %v658_v0 = vpop.f32.mrf.mxu2  ;;  %v1952_v54 = vrot.slane %v6504_v40, 1 }
  0xb8   : > { %v712_v4 = vadd.f32 %v658_v0, %v380_v59  ;;  %v993_v59 = vshrl.u32 %v6443_v38, 16  ;;  %v383_v38 = vld [vmem:[#allocation2 + $0xd8] sm:$0xff] }
  0xb9   : > { %v635_v8 = vpop.f32.mrf.mxu1  ;;  %v683_v9 = vpop.f32.mrf.mxu3  ;;  %v1953_v62 = vsel %vm1489_vm1, %v1950_v3, %v1952_v54  ;;  %v1505_v3 = vrot.slane %v6513_v61, 1  ;;  %v6584_v61 = vld [vmem:[%s6147_s30 + $0x50] sm:$0xff] }
  0xba   : > { %749 = vst.msk [vmem:[#allocation2 + $0xc0] sm:$0xff] %vm319_vm4, %v712_v4  ;;  %v703_v15 = vadd.f32 %v635_v8, %v371_v2  ;;  %v722_v46 = vadd.f32 %v683_v9, %v390_v45  ;;  %v2455_v2 = vrot.slane %v2453_v47, 1  ;;  %v364_v14 = vld [vmem:[#allocation2 + $0x40] sm:$0xff]  ;;  %v5943_v9 = vld [vmem:[%s6147_s30 + $0x50] sm:$0xff] }
  0xbb   : > { %v1506_v7 = vsel %vm1489_vm1, %v1503_v27, %v1505_v3  ;;  %v2462_v27 = vshrl.u32 %v5943_v9, 16  ;;  %v2465_v28 = vshll.u32 %v5943_v9, 16 }
  0xbc   : > { %v610_v16 = vpop.f32.mrf.mxu0  ;;  %740 = vst.msk [vmem:[#allocation2 + $0x78] sm:$0xff] %vm319_vm4, %v703_v15  ;;  %v6527_v6 = vor.u32 %v2458_v1, %v2455_v2  ;;  %v2474_v2 = vshll.u32 %v5944_v53, 16 }
  0xbd   : > { %v693_v19 = vadd.f32 %v610_v16, %v361_v5  ;;  %759 = vst.msk [vmem:[#allocation2 + $0x110] sm:$0xff] %vm319_vm4, %v722_v46  ;;  %v995_v5 = vor.u32 %v993_v59, %v991_v23  ;;  %v2467_v43 = vrot.slane %v2465_v28, 2 }
  0xbe   : > { %v2460_v20 = vsel %vm2380_vm3, %v6478_v29, %v6527_v6 }
  0xbf   : > { %730 = vst.msk [vmem:[#allocation2 + $0x28] sm:$0xff] %vm319_vm4, %v693_v19  ;;  %v660_v31 = vpop.f32.mrf.mxu2  ;;  %v1000_v16 = vsel %vm932_vm2, %v995_v5, %v999_v60 }
  0xc0   : > { %v713_v32 = vadd.f32 %v660_v31, %v381_v17  ;;  %v384_v17 = vld [vmem:[#allocation2 + $0xe0] sm:$0xff]  ;;  %v375_v31 = vld [vmem:[#allocation2 + $0x98] sm:$0xff] }
  0xc1   : > { %v638_v34 = vpop.f32.mrf.mxu1  ;;  %v685_v37 = vpop.f32.mrf.mxu3 }
  0xc2   : > { %750 = vst.msk [vmem:[#allocation2 + $0xc8] sm:$0xff] %vm319_vm4, %v713_v32  ;;  %v704_v30 = vadd.f32 %v638_v34, %v372_v24  ;;  %v723_v57 = vadd.f32 %v685_v37, %v391_v52  ;;  %v1954_v24 = vrot.slane %v5924_v22, 1  ;;  %v5972_v34 = vld [vmem:[%s8190_s1 + $0x50] sm:$0xff]  ;;  %v2464_v37 = vrot.slane %v2462_v27, 1  ;;  %v761_v52 = vld [vmem:[#allocation2] sm:$0xff] }
  0xc3   : > { %3070 = vmatpush.bf16.msra.mxu1 %v5972_v34  ;;  %v763_v22 = vld [vmem:[#allocation2 + $0x10] sm:$0xff] }
  0xc4   : > { %v613_v36 = vpop.f32.mrf.mxu0  ;;  %741 = vst.msk [vmem:[#allocation2 + $0x80] sm:$0xff] %vm319_vm4, %v704_v30  ;;  %5126 = vmatmul.msk.bf16.gmra.mxu1 %vm534_vm0, %v992_v25  ;;  %5228 = vmatmul.msk.bf16.gmra.mxu2 %vm534_vm0, %v1504_v35  ;;  %v1001_v35 = vshrl.u32 %v6498_v26, 16  ;;  %v1005_v30 = vshll.u32 %v6544_v12, 16  ;;  %v385_v26 = vld [vmem:[#allocation2 + $0xe8] sm:$0xff]  ;;  %v2468_v47 = vor.u32 %v2467_v43, %v2464_v37 }
  0xc5   : > { %v694_v42 = vadd.f32 %v613_v36, %v362_v33  ;;  %760 = vst.msk [vmem:[#allocation2 + $0x118] sm:$0xff] %vm319_vm4, %v723_v57  ;;  %v365_v33 = vld [vmem:[#allocation2 + $0x48] sm:$0xff] }
  0xc6   : > { %5332 = vmatmul.msk.bf16.gmra.mxu3 %vm534_vm0, %v1953_v62  ;;  %v6557_v36 = vld [vmem:[%s6147_s30 + $0x48] sm:$0xff]  ;;  %v1003_v45 = vor.u32 %v1001_v35, %v999_v60  ;;  %v1007_v46 = vrot.slane %v1005_v30, 1  ;;  %v2469_v59 = vsel %vm2380_vm3, %v6527_v6, %v2468_v47  ;;  %v5925_v62 = vld [vmem:[%s6147_s30 + $0x60] sm:$0xff]  ;;  %v1009_v60 = vshrl.u32 %v6544_v12, 16  ;;  %v6593_v6 = vld [vmem:[%s6147_s30 + $0x50] sm:$0xff] }
  0xc7   : > { %731 = vst.msk [vmem:[#allocation2 + $0x30] sm:$0xff] %vm319_vm4, %v694_v42  ;;  %5432 = vmatmul.msk.bf16.gmra.mxu0 %vm534_vm0, %v2451_v39  ;;  %v663_v49 = vpop.f32.mrf.mxu2  ;;  %v1955_v39 = vsel %vm1489_vm1, %v1952_v54, %v1954_v24  ;;  %v1507_v40 = vrot.slane %v6557_v36, 1  ;;  %v1509_v9 = vrot.slane %v6593_v6, 1  ;;  %v6620_v30 = vld [vmem:[%s6147_s30 + $0x58] sm:$0xff]  ;;  %v6624_v36 = vld [vmem:[%s6147_s30 + $0x68] sm:$0xff] }
  0xc8   : > { %v714_v56 = vadd.f32 %v663_v49, %v382_v44  ;;  %v1008_v55 = vsel %vm932_vm2, %v1003_v45, %v1007_v46 }
  0xc9   : > { %v640_v58 = vpop.f32.mrf.mxu1  ;;  %v6529_v8 = vpop.f32.mrf.mxu3 }
  0xca   : > { %751 = vst.msk [vmem:[#allocation2 + $0xd0] sm:$0xff] %vm319_vm4, %v714_v56  ;;  %v705_v63 = vadd.f32 %v640_v58, %v373_v50  ;;  %v1508_v56 = vsel %vm1489_vm1, %v1505_v3, %v1507_v40  ;;  %v5992_v58 = vld [vmem:[%s8190_s1 + $0x60] sm:$0xff]  ;;  %v1013_v3 = vshll.u32 %v6584_v61, 16 }
  0xcb   : > { %3515 = vmatpush.bf16.msra.mxu2 %v5992_v58 }
  0xcc   : > { %v615_v0 = vpop.f32.mrf.mxu0  ;;  %742 = vst.msk [vmem:[#allocation2 + $0x88] sm:$0xff] %vm319_vm4, %v705_v63 }
  0xcd   : > { %v695_v4 = vadd.f32 %v615_v0, %v363_v51  ;;  %v2471_v0 = vshrl.u32 %v5944_v53, 16 }
  0xcf   : > { %732 = vst.msk [vmem:[#allocation2 + $0x38] sm:$0xff] %vm319_vm4, %v695_v4  ;;  %v665_v10 = vpop.f32.mrf.mxu2  ;;  %v1956_v4 = vrot.slane %v5925_v62, 1 }
  0xd0   : > { %v715_v13 = vadd.f32 %v665_v10, %v383_v38  ;;  %v762_v38 = vld [vmem:[#allocation2 + $0x8] sm:$0xff] }
  0xd1   : > { %v643_v15 = vpop.f32.mrf.mxu1  ;;  %v6549_v23 = vpop.f32.mrf.mxu3  ;;  %v1957_v10 = vsel %vm1489_vm1, %v1954_v24, %v1956_v4 }
  0xd2   : > { %752 = vst.msk [vmem:[#allocation2 + $0xd8] sm:$0xff] %vm319_vm4, %v715_v13  ;;  %v706_v18 = vadd.f32 %v643_v15, %v374_v11  ;;  %v2473_v15 = vrot.slane %v2471_v0, 1 }
  0xd4   : > { %v618_v19 = vpop.f32.mrf.mxu0  ;;  %743 = vst.msk [vmem:[#allocation2 + $0x90] sm:$0xff] %vm319_vm4, %v706_v18  ;;  %5127 = vmatmul.msk.bf16.gmra.mxu1 %vm534_vm0, %v1000_v16  ;;  %5229 = vmatmul.msk.bf16.gmra.mxu2 %vm534_vm0, %v1506_v7  ;;  %v2476_v16 = vrot.slane %v2474_v2, 2 }
  0xd5   : > { %v696_v21 = vadd.f32 %v618_v19, %v364_v14  ;;  %v6012_v14 = vld [vmem:[%s8190_s1 + $0x70] sm:$0xff]  ;;  %v1011_v19 = vor.u32 %v1009_v60, %v1007_v46  ;;  %v1017_v46 = vshrl.u32 %v6584_v61, 16 }
  0xd6   : > { %5333 = vmatmul.msk.bf16.gmra.mxu3 %vm534_vm0, %v1955_v39 }
  0xd7   : > { %733 = vst.msk [vmem:[#allocation2 + $0x40] sm:$0xff] %vm319_vm4, %v696_v21  ;;  %5433 = vmatmul.msk.bf16.gmra.mxu0 %vm534_vm0, %v2460_v20  ;;  %v668_v29 = vpop.f32.mrf.mxu2  ;;  %4094 = vmatpush.bf16.msra.mxu3 %v6012_v14  ;;  %v1015_v20 = vrot.slane %v1013_v3, 1  ;;  %v6605_v21 = vor.u32 %v2476_v16, %v2473_v15 }
  0xd8   : > { %v716_v32 = vadd.f32 %v668_v29, %v384_v17  ;;  %v1510_v29 = vsel %vm1489_vm1, %v1507_v40, %v1509_v9  ;;  %v1021_v40 = vshll.u32 %v6620_v30, 16 }
  0xd9   : > { %v645_v25 = vpop.f32.mrf.mxu1  ;;  %v6567_v48 = vpop.f32.mrf.mxu3  ;;  %v1016_v28 = vsel %vm932_vm2, %v1011_v19, %v1015_v20 }
  0xda   : > { %753 = vst.msk [vmem:[#allocation2 + $0xe0] sm:$0xff] %vm319_vm4, %v716_v32  ;;  %v707_v41 = vadd.f32 %v645_v25, %v375_v31  ;;  %v2478_v32 = vsel %vm2380_vm3, %v2468_v47, %v6605_v21  ;;  %v6635_v47 = vld [vmem:[%s6147_s30 + $0x58] sm:$0xff]  ;;  %v1023_v53 = vrot.slane %v1021_v40, 1 }
  0xdb   : > { %v1511_v61 = vrot.slane %v6635_v47, 1 }
  0xdc   : > { %v620_v42 = vpop.f32.mrf.mxu0  ;;  %744 = vst.msk [vmem:[#allocation2 + $0x98] sm:$0xff] %vm319_vm4, %v707_v41 }
  0xdd   : > { %v697_v44 = vadd.f32 %v620_v42, %v365_v33  ;;  %v5945_v33 = vld [vmem:[%s6147_s30 + $0x60] sm:$0xff] }
  0xde   : > { %v2480_v42 = vshrl.u32 %v5945_v33, 16  ;;  %v2483_v37 = vshll.u32 %v5945_v33, 16  ;;  %v6687_v33 = vld [vmem:[%s6147_s30 + $0x60] sm:$0xff] }
  0xdf   : > { %734 = vst.msk [vmem:[#allocation2 + $0x48] sm:$0xff] %vm319_vm4, %v697_v44  ;;  %v670_v49 = vpop.f32.mrf.mxu2  ;;  %v1958_v44 = vrot.slane %v6624_v36, 1  ;;  %v1513_v36 = vrot.slane %v6687_v33, 1 }
  0xe0   : > { %v717_v50 = vadd.f32 %v670_v49, %v385_v26  ;;  %v764_v26 = vld [vmem:[#allocation2 + $0x18] sm:$0xff] }
  0xe1   : > { %v1156_v54 = vpop.f32.mrf.mxu1  ;;  %v6588_v63 = vpop.f32.mrf.mxu3 }
  0xe2   : > { %754 = vst.msk [vmem:[#allocation2 + $0xe8] sm:$0xff] %vm319_vm4, %v717_v50  ;;  %v1246_v51 = vadd.f32 %v1156_v54, %v761_v52  ;;  %v6032_v52 = vld [vmem:[%s8190_s1 + $0x80] sm:$0xff]  ;;  %v2482_v54 = vrot.slane %v2480_v42, 1 }
  0xe3   : > { %4540 = vmatpush.bf16.msra.mxu0 %v6032_v52  ;;  %v767_v52 = vld [vmem:[#allocation2 + $0x30] sm:$0xff] }
  0xe4   : > { %v6572_v57 = vpop.f32.mrf.mxu0  ;;  %1282 = vst.msk [vmem:[#allocation2] sm:$0xff] %vm319_vm4, %v1246_v51  ;;  %5128 = vmatmul.msk.bf16.gmra.mxu1 %vm534_vm0, %v1008_v55  ;;  %5230 = vmatmul.msk.bf16.gmra.mxu2 %vm534_vm0, %v1508_v56  ;;  %v2485_v55 = vrot.slane %v2483_v37, 2 }
  0xe6   : > { %5334 = vmatmul.msk.bf16.gmra.mxu3 %vm534_vm0, %v1957_v10  ;;  %v6650_v0 = vor.u32 %v2485_v55, %v2482_v54 }
  0xe7   : > { %5434 = vmatmul.msk.bf16.gmra.mxu0 %vm534_vm0, %v2469_v59  ;;  %v1602_v1 = vpop.f32.mrf.mxu2  ;;  %v1019_v59 = vor.u32 %v1017_v46, %v1015_v20 }
  0xe9   : > { %v1158_v5 = vpop.f32.mrf.mxu1  ;;  %v6607_v17 = vpop.f32.mrf.mxu3  ;;  %v1024_v3 = vsel %vm932_vm2, %v1019_v59, %v1023_v53 }
  0xea   : > { %v1247_v11 = vadd.f32 %v1158_v5, %v762_v38  ;;  %v765_v5 = vld [vmem:[#allocation2 + $0x20] sm:$0xff] }
  0xeb   : > { %v1318_v7 = vld [vmem:[#allocation2] sm:$0xff] }
  0xec   : > { %v6596_v13 = vpop.f32.mrf.mxu0  ;;  %v1692_v18 = vadd.f32 %v1602_v1, %v1318_v7  ;;  %1283 = vst.msk [vmem:[#allocation2 + $0x8] sm:$0xff] %vm319_vm4, %v1247_v11  ;;  %v2487_v11 = vsel %vm2380_vm3, %v6605_v21, %v6650_v0  ;;  %v6671_v7 = vld [vmem:[%s6147_s30 + $0x60] sm:$0xff] }
  0xee   : > { %1728 = vst.msk [vmem:[#allocation2] sm:$0xff] %vm319_vm4, %v1692_v18  ;;  %v6675_v18 = vld [vmem:[%s6147_s30 + $0x70] sm:$0xff] }
  0xef   : > { %v1604_v12 = vpop.f32.mrf.mxu2 }
  0xf1   : > { %v1161_v27 = vpop.f32.mrf.mxu1  ;;  %v6628_v41 = vpop.f32.mrf.mxu3 }
  0xf2   : > { %v1248_v31 = vadd.f32 %v1161_v27, %v763_v22  ;;  %v1960_v27 = vrot.slane %v6675_v18, 1 }
  0xf3   : > { %v1319_v34 = vld [vmem:[#allocation2 + $0x8] sm:$0xff] }
  0xf4   : > { %v6611_v24 = vpop.f32.mrf.mxu0  ;;  %v1693_v25 = vadd.f32 %v1604_v12, %v1319_v34  ;;  %1284 = vst.msk [vmem:[#allocation2 + $0x10] sm:$0xff] %vm319_vm4, %v1248_v31  ;;  %5129 = vmatmul.msk.bf16.gmra.mxu1 %vm534_vm0, %v1016_v28  ;;  %5231 = vmatmul.msk.bf16.gmra.mxu2 %vm534_vm0, %v1510_v29  ;;  %v766_v29 = vld [vmem:[#allocation2 + $0x28] sm:$0xff]  ;;  %v1961_v34 = vsel %vm1489_vm1, %v1958_v44, %v1960_v27 }
  0xf5   : > { %v1764_v35 = vld [vmem:[#allocation2] sm:$0xff] }
  0xf6   : > { %v2137_v39 = vadd.f32 %v6529_v8, %v1764_v35  ;;  %1729 = vst.msk [vmem:[#allocation2 + $0x8] sm:$0xff] %vm319_vm4, %v1693_v25  ;;  %v1959_v8 = vsel %vm1489_vm1, %v1956_v4, %v1958_v44 }
  0xf7   : > { %5435 = vmatmul.msk.bf16.gmra.mxu0 %vm534_vm0, %v2478_v32  ;;  %v1607_v43 = vpop.f32.mrf.mxu2  ;;  %5335 = vmatmul.msk.bf16.gmra.mxu3 %vm534_vm0, %v1959_v8  ;;  %v1025_v32 = vshrl.u32 %v6620_v30, 16 }
  0xf8   : > { %2173 = vst.msk [vmem:[#allocation2] sm:$0xff] %vm319_vm4, %v2137_v39 }
  0xf9   : > { %v1163_v45 = vpop.f32.mrf.mxu1  ;;  %v6652_v2 = vpop.f32.mrf.mxu3 }
  0xfa   : > { %v1249_v49 = vadd.f32 %v1163_v45, %v764_v26 }
  0xfb   : > { %v1320_v56 = vld [vmem:[#allocation2 + $0x10] sm:$0xff] }
  0xfc   : > { %v6640_v50 = vpop.f32.mrf.mxu0  ;;  %v1694_v51 = vadd.f32 %v1607_v43, %v1320_v56  ;;  %1285 = vst.msk [vmem:[#allocation2 + $0x18] sm:$0xff] %vm319_vm4, %v1249_v49  ;;  %v1027_v43 = vor.u32 %v1025_v32, %v1023_v53 }
  0xfd   : > { %v1765_v58 = vld [vmem:[#allocation2 + $0x8] sm:$0xff] }
  0xfe   : > { %v2138_v62 = vadd.f32 %v6549_v23, %v1765_v58  ;;  %1730 = vst.msk [vmem:[#allocation2 + $0x10] sm:$0xff] %vm319_vm4, %v1694_v51  ;;  %v1512_v23 = vsel %vm1489_vm1, %v1509_v9, %v1511_v61  ;;  %v5947_v58 = vld [vmem:[%s6147_s30 + $0x70] sm:$0xff] }
  0xff   : > { %v2209_v1 = vld [vmem:[#allocation2] sm:$0xff]  ;;  %v1609_v4 = vpop.f32.mrf.mxu2 }
 0x100   : > { %2174 = vst.msk [vmem:[#allocation2 + $0x8] sm:$0xff] %vm319_vm4, %v2138_v62  ;;  %v2716_v38 = vadd.f32 %v6572_v57, %v2209_v1  ;;  %v5946_v57 = vld [vmem:[%s6147_s30 + $0x68] sm:$0xff]  ;;  %v6729_v62 = vld [vmem:[%s6147_s30 + $0x78] sm:$0xff] }
 0x101   : > { %v1166_v60 = vpop.f32.mrf.mxu1  ;;  %v6679_v20 = vpop.f32.mrf.mxu3  ;;  %v2489_v9 = vshrl.u32 %v5946_v57, 16  ;;  %v2492_v21 = vshll.u32 %v5946_v57, 16  ;;  %v1033_v57 = vshrl.u32 %v6671_v7, 16 }
 0x102   : > { %2752 = vst.msk [vmem:[#allocation2] sm:$0xff] %vm319_vm4, %v2716_v38  ;;  %v1250_v6 = vadd.f32 %v1166_v60, %v765_v5  ;;  %v2501_v38 = vshll.u32 %v5947_v58, 16 }
 0x103   : > { %v1321_v14 = vld [vmem:[#allocation2 + $0x18] sm:$0xff]  ;;  %v2494_v39 = vrot.slane %v2492_v21, 2 }
 0x104   : > { %v6661_v10 = vpop.f32.mrf.mxu0  ;;  %v1695_v15 = vadd.f32 %v1609_v4, %v1321_v14  ;;  %1286 = vst.msk [vmem:[#allocation2 + $0x20] sm:$0xff] %vm319_vm4, %v1250_v6  ;;  %5130 = vmatmul.msk.bf16.gmra.mxu1 %vm534_vm0, %v1024_v3  ;;  %5232 = vmatmul.msk.bf16.gmra.mxu2 %vm534_vm0, %v1512_v23  ;;  %v2498_v4 = vshrl.u32 %v5947_v58, 16  ;;  %v1962_v3 = vrot.slane %v6729_v62, 1  ;;  %v768_v6 = vld [vmem:[#allocation2 + $0x38] sm:$0xff]  ;;  %v6741_v14 = vld [vmem:[%s6147_s30 + $0x68] sm:$0xff] }
 0x105   : > { %v1766_v16 = vld [vmem:[#allocation2 + $0x10] sm:$0xff]  ;;  %v1515_v18 = vrot.slane %v6741_v14, 1 }
 0x106   : > { %v2139_v19 = vadd.f32 %v6567_v48, %v1766_v16  ;;  %1731 = vst.msk [vmem:[#allocation2 + $0x18] sm:$0xff] %vm319_vm4, %v1695_v15  ;;  %v1029_v48 = vshll.u32 %v6671_v7, 16  ;;  %v1963_v15 = vsel %vm1489_vm1, %v1960_v27, %v1962_v3 }
 0x107   : > { %5436 = vmatmul.msk.bf16.gmra.mxu0 %vm534_vm0, %v2487_v11  ;;  %v2210_v12 = vld [vmem:[#allocation2 + $0x8] sm:$0xff]  ;;  %v1612_v22 = vpop.f32.mrf.mxu2  ;;  %5336 = vmatmul.msk.bf16.gmra.mxu3 %vm534_vm0, %v1961_v34 }
 0x108   : > { %2175 = vst.msk [vmem:[#allocation2 + $0x10] sm:$0xff] %vm319_vm4, %v2139_v19  ;;  %v2717_v28 = vadd.f32 %v6596_v13, %v2210_v12  ;;  %v2491_v13 = vrot.slane %v2489_v9, 1  ;;  %v1031_v26 = vrot.slane %v1029_v48, 1  ;;  %v2503_v9 = vrot.slane %v2501_v38, 2 }
 0x109   : > { %v1168_v31 = vpop.f32.mrf.mxu1  ;;  %v6704_v46 = vpop.f32.mrf.mxu3 }
 0x10a   : > { %2753 = vst.msk [vmem:[#allocation2 + $0x8] sm:$0xff] %vm319_vm4, %v2717_v28  ;;  %v1251_v25 = vadd.f32 %v1168_v31, %v766_v29  ;;  %v6702_v45 = vor.u32 %v2494_v39, %v2491_v13  ;;  %v1032_v55 = vsel %vm932_vm2, %v1027_v43, %v1031_v26 }
 0x10b   : > { %v1322_v42 = vld [vmem:[#allocation2 + $0x20] sm:$0xff] }
 0x10c   : > { %v6695_v35 = vpop.f32.mrf.mxu0  ;;  %v1696_v30 = vadd.f32 %v1612_v22, %v1322_v42  ;;  %1287 = vst.msk [vmem:[#allocation2 + $0x28] sm:$0xff] %vm319_vm4, %v1251_v25  ;;  %v1035_v22 = vor.u32 %v1033_v57, %v1031_v26  ;;  %v769_v25 = vld [vmem:[#allocation2 + $0x40] sm:$0xff] }
 0x10d   : > { %v1767_v37 = vld [vmem:[#allocation2 + $0x18] sm:$0xff] }
 0x10e   : > { %v2140_v44 = vadd.f32 %v6588_v63, %v1767_v37  ;;  %1732 = vst.msk [vmem:[#allocation2 + $0x20] sm:$0xff] %vm319_vm4, %v1696_v30  ;;  %v1514_v63 = vsel %vm1489_vm1, %v1511_v61, %v1513_v36  ;;  %v6725_v61 = vld [vmem:[%s6147_s30 + $0x68] sm:$0xff]  ;;  %v5948_v37 = vld [vmem:[%s6147_s30 + $0x78] sm:$0xff] }
 0x10f   : > { %v2211_v40 = vld [vmem:[#allocation2 + $0x10] sm:$0xff]  ;;  %v1614_v8 = vpop.f32.mrf.mxu2  ;;  %v1041_v58 = vshrl.u32 %v6725_v61, 16 }
 0x110   : > { %2176 = vst.msk [vmem:[#allocation2 + $0x18] sm:$0xff] %vm319_vm4, %v2140_v44  ;;  %v2718_v49 = vadd.f32 %v6611_v24, %v2211_v40  ;;  %v2496_v24 = vsel %vm2380_vm3, %v6650_v0, %v6702_v45  ;;  %v6783_v44 = vld [vmem:[%s6147_s30 + $0x80] sm:$0xff] }
 0x111   : > { %v1171_v54 = vpop.f32.mrf.mxu1  ;;  %v6733_v0 = vpop.f32.mrf.mxu3 }
 0x112   : > { %2754 = vst.msk [vmem:[#allocation2 + $0x10] sm:$0xff] %vm319_vm4, %v2718_v49  ;;  %v1252_v56 = vadd.f32 %v1171_v54, %v767_v52  ;;  %v2510_v49 = vshll.u32 %v5948_v37, 16 }
 0x113   : > { %v1323_v59 = vld [vmem:[#allocation2 + $0x28] sm:$0xff] }
 0x114   : > { %v6715_v51 = vpop.f32.mrf.mxu0  ;;  %v1697_v53 = vadd.f32 %v1614_v8, %v1323_v59  ;;  %1288 = vst.msk [vmem:[#allocation2 + $0x30] sm:$0xff] %vm319_vm4, %v1252_v56  ;;  %5131 = vmatmul.msk.bf16.gmra.mxu1 %vm534_vm0, %v1032_v55  ;;  %5233 = vmatmul.msk.bf16.gmra.mxu2 %vm534_vm0, %v1514_v63  ;;  %v2507_v8 = vshrl.u32 %v5948_v37, 16  ;;  %v1964_v55 = vrot.slane %v6783_v44, 1  ;;  %v770_v56 = vld [vmem:[#allocation2 + $0x48] sm:$0xff]  ;;  %v6795_v59 = vld [vmem:[%s6147_s30 + $0x70] sm:$0xff] }
 0x115   : > { %v1768_v47 = vld [vmem:[#allocation2 + $0x20] sm:$0xff]  ;;  %v1517_v62 = vrot.slane %v6795_v59, 1 }
 0x116   : > { %v2141_v1 = vadd.f32 %v6607_v17, %v1768_v47  ;;  %1733 = vst.msk [vmem:[#allocation2 + $0x28] sm:$0xff] %vm319_vm4, %v1697_v53  ;;  %v1037_v17 = vshll.u32 %v6725_v61, 16  ;;  %v1965_v53 = vsel %vm1489_vm1, %v1962_v3, %v1964_v55 }
 0x117   : > { %5437 = vmatmul.msk.bf16.gmra.mxu0 %vm534_vm0, %v2496_v24  ;;  %v2212_v5 = vld [vmem:[#allocation2 + $0x18] sm:$0xff]  ;;  %v1617_v60 = vpop.f32.mrf.mxu2  ;;  %5337 = vmatmul.msk.bf16.gmra.mxu3 %vm534_vm0, %v1963_v15 }
 0x118   : > { %2177 = vst.msk [vmem:[#allocation2 + $0x20] sm:$0xff] %vm319_vm4, %v2141_v1  ;;  %v2719_v23 = vadd.f32 %v6640_v50, %v2212_v5  ;;  %v2500_v50 = vrot.slane %v2498_v4, 1  ;;  %v1039_v28 = vrot.slane %v1037_v17, 1  ;;  %v2512_v4 = vrot.slane %v2510_v49, 2 }
 0x119   : > { %v1173_v11 = vpop.f32.mrf.mxu1  ;;  %v6758_v31 = vpop.f32.mrf.mxu3 }
 0x11a   : > { %2755 = vst.msk [vmem:[#allocation2 + $0x18] sm:$0xff] %vm319_vm4, %v2719_v23  ;;  %v1253_v16 = vadd.f32 %v1173_v11, %v768_v6  ;;  %v6756_v29 = vor.u32 %v2503_v9, %v2500_v50  ;;  %v1040_v39 = vsel %vm932_vm2, %v1035_v22, %v1039_v28 }
 0x11b   : > { %v1324_v21 = vld [vmem:[#allocation2 + $0x30] sm:$0xff] }
 0x11c   : > { %v6749_v19 = vpop.f32.mrf.mxu0  ;;  %v1698_v7 = vadd.f32 %v1617_v60, %v1324_v21  ;;  %1289 = vst.msk [vmem:[#allocation2 + $0x38] sm:$0xff] %vm319_vm4, %v1253_v16  ;;  %v1043_v60 = vor.u32 %v1041_v58, %v1039_v28  ;;  %v771_v16 = vld [vmem:[#allocation2 + $0x50] sm:$0xff] }
 0x11d   : > { %v1769_v12 = vld [vmem:[#allocation2 + $0x28] sm:$0xff] }
 0x11e   : > { %v2142_v27 = vadd.f32 %v6628_v41, %v1769_v12  ;;  %1734 = vst.msk [vmem:[#allocation2 + $0x30] sm:$0xff] %vm319_vm4, %v1698_v7  ;;  %v1516_v41 = vsel %vm1489_vm1, %v1513_v36, %v1515_v18  ;;  %v6779_v36 = vld [vmem:[%s6147_s30 + $0x70] sm:$0xff]  ;;  %v5949_v12 = vld [vmem:[%s6147_s30 + $0x80] sm:$0xff] }
 0x11f   : > { %v2213_v32 = vld [vmem:[#allocation2 + $0x20] sm:$0xff]  ;;  %v1619_v48 = vpop.f32.mrf.mxu2  ;;  %v1049_v37 = vshrl.u32 %v6779_v36, 16 }
 0x120   : > { %2178 = vst.msk [vmem:[#allocation2 + $0x28] sm:$0xff] %vm319_vm4, %v2142_v27  ;;  %v2720_v34 = vadd.f32 %v6661_v10, %v2213_v32  ;;  %v2505_v10 = vsel %vm2380_vm3, %v6702_v45, %v6756_v29  ;;  %v6837_v27 = vld [vmem:[%s6147_s30 + $0x88] sm:$0xff] }
 0x121   : > { %v1176_v13 = vpop.f32.mrf.mxu1  ;;  %v6787_v45 = vpop.f32.mrf.mxu3 }
 0x122   : > { %2756 = vst.msk [vmem:[#allocation2 + $0x20] sm:$0xff] %vm319_vm4, %v2720_v34  ;;  %v1254_v42 = vadd.f32 %v1176_v13, %v769_v25  ;;  %v2519_v34 = vshll.u32 %v5949_v12, 16 }
 0x123   : > { %v1325_v43 = vld [vmem:[#allocation2 + $0x38] sm:$0xff] }
 0x124   : > { %v6769_v30 = vpop.f32.mrf.mxu0  ;;  %v1699_v26 = vadd.f32 %v1619_v48, %v1325_v43  ;;  %1290 = vst.msk [vmem:[#allocation2 + $0x40] sm:$0xff] %vm319_vm4, %v1254_v42  ;;  %5132 = vmatmul.msk.bf16.gmra.mxu1 %vm534_vm0, %v1040_v39  ;;  %5234 = vmatmul.msk.bf16.gmra.mxu2 %vm534_vm0, %v1516_v41  ;;  %v2516_v48 = vshrl.u32 %v5949_v12, 16  ;;  %v1966_v39 = vrot.slane %v6837_v27, 1  ;;  %v772_v42 = vld [vmem:[#allocation2 + $0x58] sm:$0xff] }
 0x125   : > { %v1770_v33 = vld [vmem:[#allocation2 + $0x30] sm:$0xff]  ;;  %v6849_v43 = vld [vmem:[%s6147_s30 + $0x78] sm:$0xff] }
 0x126   : > { %v2143_v40 = vadd.f32 %v6652_v2, %v1770_v33  ;;  %1735 = vst.msk [vmem:[#allocation2 + $0x38] sm:$0xff] %vm319_vm4, %v1699_v26  ;;  %v1045_v2 = vshll.u32 %v6779_v36, 16  ;;  %v1967_v26 = vsel %vm1489_vm1, %v1964_v55, %v1966_v39  ;;  %v1519_v44 = vrot.slane %v6849_v43, 1 }
 0x127   : > { %5438 = vmatmul.msk.bf16.gmra.mxu0 %vm534_vm0, %v2505_v10  ;;  %v2214_v52 = vld [vmem:[#allocation2 + $0x28] sm:$0xff]  ;;  %v1622_v54 = vpop.f32.mrf.mxu2  ;;  %5338 = vmatmul.msk.bf16.gmra.mxu3 %vm534_vm0, %v1965_v53 }
 0x128   : > { %2179 = vst.msk [vmem:[#allocation2 + $0x30] sm:$0xff] %vm319_vm4, %v2143_v40  ;;  %v2721_v63 = vadd.f32 %v6695_v35, %v2214_v52  ;;  %v2509_v35 = vrot.slane %v2507_v8, 1  ;;  %v1047_v23 = vrot.slane %v1045_v2, 1  ;;  %v2521_v8 = vrot.slane %v2519_v34, 2 }
 0x129   : > { %v1178_v24 = vpop.f32.mrf.mxu1  ;;  %v6812_v11 = vpop.f32.mrf.mxu3 }
 0x12a   : > { %2757 = vst.msk [vmem:[#allocation2 + $0x28] sm:$0xff] %vm319_vm4, %v2721_v63  ;;  %v1255_v47 = vadd.f32 %v1178_v24, %v770_v56  ;;  %v6810_v6 = vor.u32 %v2512_v4, %v2509_v35  ;;  %v1048_v9 = vsel %vm932_vm2, %v1043_v60, %v1047_v23 }
 0x12b   : > { %v1326_v38 = vld [vmem:[#allocation2 + $0x40] sm:$0xff] }
 0x12c   : > { %v6803_v1 = vpop.f32.mrf.mxu0  ;;  %v1700_v61 = vadd.f32 %v1622_v54, %v1326_v38  ;;  %1291 = vst.msk [vmem:[#allocation2 + $0x48] sm:$0xff] %vm319_vm4, %v1255_v47  ;;  %v1051_v54 = vor.u32 %v1049_v37, %v1047_v23  ;;  %v773_v47 = vld [vmem:[#allocation2 + $0x60] sm:$0xff] }
 0x12d   : > { %v1771_v5 = vld [vmem:[#allocation2 + $0x38] sm:$0xff] }
 0x12e   : > { %v2144_v3 = vadd.f32 %v6679_v20, %v1771_v5  ;;  %1736 = vst.msk [vmem:[#allocation2 + $0x40] sm:$0xff] %vm319_vm4, %v1700_v61  ;;  %v1518_v20 = vsel %vm1489_vm1, %v1515_v18, %v1517_v62  ;;  %v6833_v18 = vld [vmem:[%s6147_s30 + $0x78] sm:$0xff]  ;;  %v5950_v5 = vld [vmem:[%s6147_s30 + $0x88] sm:$0xff] }
 0x12f   : > { %v2215_v57 = vld [vmem:[#allocation2 + $0x30] sm:$0xff]  ;;  %v1624_v17 = vpop.f32.mrf.mxu2  ;;  %v1057_v12 = vshrl.u32 %v6833_v18, 16 }
 0x130   : > { %2180 = vst.msk [vmem:[#allocation2 + $0x38] sm:$0xff] %vm319_vm4, %v2144_v3  ;;  %v2722_v15 = vadd.f32 %v6715_v51, %v2215_v57  ;;  %v2514_v51 = vsel %vm2380_vm3, %v6756_v29, %v6810_v6  ;;  %v6891_v3 = vld [vmem:[%s6147_s30 + $0x90] sm:$0xff] }
 0x131   : > { %v1181_v50 = vpop.f32.mrf.mxu1  ;;  %v6841_v29 = vpop.f32.mrf.mxu3 }
 0x132   : > { %2758 = vst.msk [vmem:[#allocation2 + $0x30] sm:$0xff] %vm319_vm4, %v2722_v15  ;;  %v1256_v21 = vadd.f32 %v1181_v50, %v771_v16  ;;  %v2528_v15 = vshll.u32 %v5950_v5, 16 }
 0x133   : > { %v1327_v22 = vld [vmem:[#allocation2 + $0x48] sm:$0xff] }
 0x134   : > { %v6823_v7 = vpop.f32.mrf.mxu0  ;;  %v1701_v28 = vadd.f32 %v1624_v17, %v1327_v22  ;;  %1292 = vst.msk [vmem:[#allocation2 + $0x50] sm:$0xff] %vm319_vm4, %v1256_v21  ;;  %5133 = vmatmul.msk.bf16.gmra.mxu1 %vm534_vm0, %v1048_v9  ;;  %5235 = vmatmul.msk.bf16.gmra.mxu2 %vm534_vm0, %v1518_v20  ;;  %v2525_v17 = vshrl.u32 %v5950_v5, 16  ;;  %v1968_v9 = vrot.slane %v6891_v3, 1  ;;  %v774_v21 = vld [vmem:[#allocation2 + $0x68] sm:$0xff]  ;;  %v6903_v22 = vld [vmem:[%s6147_s30 + $0x80] sm:$0xff]  ;;  %v776_v5 = vld [vmem:[#allocation2 + $0x78] sm:$0xff] }
 0x135   : > { %v1772_v14 = vld [vmem:[#allocation2 + $0x40] sm:$0xff]  ;;  %v1521_v27 = vrot.slane %v6903_v22, 1 }
 0x136   : > { %v2145_v32 = vadd.f32 %v6704_v46, %v1772_v14  ;;  %1737 = vst.msk [vmem:[#allocation2 + $0x48] sm:$0xff] %vm319_vm4, %v1701_v28  ;;  %v1053_v46 = vshll.u32 %v6833_v18, 16  ;;  %v1969_v28 = vsel %vm1489_vm1, %v1966_v39, %v1968_v9 }
 0x137   : > { %5439 = vmatmul.msk.bf16.gmra.mxu0 %vm534_vm0, %v2514_v51  ;;  %v2216_v25 = vld [vmem:[#allocation2 + $0x38] sm:$0xff]  ;;  %v1627_v13 = vpop.f32.mrf.mxu2  ;;  %5339 = vmatmul.msk.bf16.gmra.mxu3 %vm534_vm0, %v1967_v26 }
 0x138   : > { %2181 = vst.msk [vmem:[#allocation2 + $0x40] sm:$0xff] %vm319_vm4, %v2145_v32  ;;  %v2723_v41 = vadd.f32 %v6749_v19, %v2216_v25  ;;  %v2518_v19 = vrot.slane %v2516_v48, 1  ;;  %v1055_v63 = vrot.slane %v1053_v46, 1  ;;  %v2530_v48 = vrot.slane %v2528_v15, 2 }
 0x139   : > { %v1183_v10 = vpop.f32.mrf.mxu1  ;;  %v6866_v24 = vpop.f32.mrf.mxu3 }
 0x13a   : > { %2759 = vst.msk [vmem:[#allocation2 + $0x38] sm:$0xff] %vm319_vm4, %v2723_v41  ;;  %v1257_v33 = vadd.f32 %v1183_v10, %v772_v42  ;;  %v6864_v56 = vor.u32 %v2521_v8, %v2518_v19  ;;  %v1056_v4 = vsel %vm932_vm2, %v1051_v54, %v1055_v63  ;;  %v5951_v54 = vld [vmem:[%s6147_s30 + $0x90] sm:$0xff] }
 0x13b   : > { %v1328_v49 = vld [vmem:[#allocation2 + $0x50] sm:$0xff] }
 0x13c   : > { %v6857_v40 = vpop.f32.mrf.mxu0  ;;  %v1702_v36 = vadd.f32 %v1627_v13, %v1328_v49  ;;  %1293 = vst.msk [vmem:[#allocation2 + $0x58] sm:$0xff] %vm319_vm4, %v1257_v33  ;;  %v1059_v13 = vor.u32 %v1057_v12, %v1055_v63  ;;  %v775_v33 = vld [vmem:[#allocation2 + $0x70] sm:$0xff] }
 0x13d   : > { %v1773_v52 = vld [vmem:[#allocation2 + $0x48] sm:$0xff] }
 0x13e   : > { %v2146_v55 = vadd.f32 %v6733_v0, %v1773_v52  ;;  %1738 = vst.msk [vmem:[#allocation2 + $0x50] sm:$0xff] %vm319_vm4, %v1702_v36  ;;  %v1520_v0 = vsel %vm1489_vm1, %v1517_v62, %v1519_v44  ;;  %v6887_v62 = vld [vmem:[%s6147_s30 + $0x80] sm:$0xff]  ;;  %v1836_v52 = vld [vmem:[%s6147_s30 + $0x98] sm:$0x1] }
 0x13f   : > { %v2217_v58 = vld [vmem:[#allocation2 + $0x40] sm:$0xff]  ;;  %v1629_v2 = vpop.f32.mrf.mxu2 }
 0x140   : > { %2182 = vst.msk [vmem:[#allocation2 + $0x48] sm:$0xff] %vm319_vm4, %v2146_v55  ;;  %v2724_v53 = vadd.f32 %v6769_v30, %v2217_v58  ;;  %v2523_v30 = vsel %vm2380_vm3, %v6810_v6, %v6864_v56  ;;  %v1915_v55 = vunpack.c.l.b16 %v1836_v52 }
 0x141   : > { %v1186_v35 = vpop.f32.mrf.mxu1  ;;  %v6895_v6 = vpop.f32.mrf.mxu3 }
 0x142   : > { %2760 = vst.msk [vmem:[#allocation2 + $0x40] sm:$0xff] %vm319_vm4, %v2724_v53  ;;  %v1258_v38 = vadd.f32 %v1186_v35, %v773_v47  ;;  %v2534_v47 = vshrl.u32 %v5951_v54, 16  ;;  %v2537_v35 = vshll.u32 %v5951_v54, 16 }
 0x143   : > { %v1329_v60 = vld [vmem:[#allocation2 + $0x58] sm:$0xff] }
 0x144   : > { %v6877_v61 = vpop.f32.mrf.mxu0  ;;  %v1703_v23 = vadd.f32 %v1629_v2, %v1329_v60  ;;  %1294 = vst.msk [vmem:[#allocation2 + $0x60] sm:$0xff] %vm319_vm4, %v1258_v38  ;;  %5134 = vmatmul.msk.bf16.gmra.mxu1 %vm534_vm0, %v1056_v4  ;;  %5236 = vmatmul.msk.bf16.gmra.mxu2 %vm534_vm0, %v1520_v0  ;;  %v1934_v2 = vpack.c.b16 %v1915_v55, %v1915_v55 }
 0x145   : > { %v1774_v59 = vld [vmem:[#allocation2 + $0x50] sm:$0xff] }
 0x146   : > { %v2147_v57 = vadd.f32 %v6758_v31, %v1774_v59  ;;  %1739 = vst.msk [vmem:[#allocation2 + $0x58] sm:$0xff] %vm319_vm4, %v1703_v23  ;;  %v1061_v31 = vshll.u32 %v6887_v62, 16  ;;  %v1970_v38 = vrot.slane %v1934_v2, 1  ;;  %v1065_v23 = vshrl.u32 %v6887_v62, 16  ;;  %v6954_v59 = vld [vmem:[%s6147_s30 + $0x88] sm:$0xff] }
 0x147   : > { %5440 = vmatmul.msk.bf16.gmra.mxu0 %vm534_vm0, %v2523_v30  ;;  %v2218_v16 = vld [vmem:[#allocation2 + $0x48] sm:$0xff]  ;;  %v1632_v50 = vpop.f32.mrf.mxu2  ;;  %5340 = vmatmul.msk.bf16.gmra.mxu3 %vm534_vm0, %v1969_v28  ;;  %v833_v62 = vld [vmem:[%s6147_s30 + $0x90] sm:$0x1] }
 0x148   : > { %2183 = vst.msk [vmem:[#allocation2 + $0x50] sm:$0xff] %vm319_vm4, %v2147_v57  ;;  %v2725_v20 = vadd.f32 %v6803_v1, %v2218_v16  ;;  %v2527_v1 = vrot.slane %v2525_v17, 1  ;;  %v1063_v41 = vrot.slane %v1061_v31, 1  ;;  %v1971_v57 = vsel %vm1489_vm1, %v1968_v9, %v1970_v38 }
 0x149   : > { %v1188_v51 = vpop.f32.mrf.mxu1  ;;  %v6920_v10 = vpop.f32.mrf.mxu3  ;;  %v2536_v16 = vrot.slane %v2534_v47, 1  ;;  %v1523_v9 = vrot.slane %v6954_v59, 1  ;;  %v5450_v59 = vld [vmem:[%s6147_s30 + $0x8] sm:$0xc] }
 0x14a   : > { %2761 = vst.msk [vmem:[#allocation2 + $0x48] sm:$0xff] %vm319_vm4, %v2725_v20  ;;  %v1259_v14 = vadd.f32 %v1188_v51, %v774_v21  ;;  %v6918_v42 = vor.u32 %v2530_v48, %v2527_v1  ;;  %v1064_v8 = vsel %vm932_vm2, %v1059_v13, %v1063_v41  ;;  %v1067_v51 = vor.u32 %v1065_v23, %v1063_v41 }
 0x14b   : > { %v1330_v34 = vld [vmem:[#allocation2 + $0x60] sm:$0xff]  ;;  %v912_v48 = vunpack.c.l.b16 %v833_v62  ;;  %v1524_v41 = vsel %vm1489_vm1, %v1521_v27, %v1523_v9 }
 0x14c   : > { %v6911_v32 = vpop.f32.mrf.mxu0  ;;  %v1704_v18 = vadd.f32 %v1632_v50, %v1330_v34  ;;  %1295 = vst.msk [vmem:[#allocation2 + $0x68] sm:$0xff] %vm319_vm4, %v1259_v14 }
 0x14d   : > { %v1775_v25 = vld [vmem:[#allocation2 + $0x58] sm:$0xff] }
 0x14e   : > { %v2148_v39 = vadd.f32 %v6787_v45, %v1775_v25  ;;  %1740 = vst.msk [vmem:[#allocation2 + $0x60] sm:$0xff] %vm319_vm4, %v1704_v18  ;;  %v1522_v45 = vsel %vm1489_vm1, %v1519_v44, %v1521_v27  ;;  %v6942_v44 = vld [vmem:[%s6147_s30 + $0x88] sm:$0xff]  ;;  %v2281_v18 = vld [vmem:[%s6147_s30 + $0x98] sm:$0x3]  ;;  %v777_v25 = vld [vmem:[#allocation2 + $0x80] sm:$0xff] }
 0x14f   : > { %v2219_v37 = vld [vmem:[#allocation2 + $0x50] sm:$0xff]  ;;  %v1634_v46 = vpop.f32.mrf.mxu2 }
 0x150   : > { %2184 = vst.msk [vmem:[#allocation2 + $0x58] sm:$0xff] %vm319_vm4, %v2148_v39  ;;  %v2726_v26 = vadd.f32 %v6823_v7, %v2219_v37  ;;  %v2532_v7 = vsel %vm2380_vm3, %v6864_v56, %v6918_v42  ;;  %v2360_v39 = vunpack.c.l.b16 %v2281_v18  ;;  %v5654_v37 = vld [vmem:[%s6147_s30 + $0x10] sm:$0xc] }
 0x151   : > { %v1191_v19 = vpop.f32.mrf.mxu1  ;;  %v6947_v53 = vpop.f32.mrf.mxu3 }
 0x152   : > { %2762 = vst.msk [vmem:[#allocation2 + $0x50] sm:$0xff] %vm319_vm4, %v2726_v26  ;;  %v1260_v49 = vadd.f32 %v1191_v19, %v775_v33  ;;  %v1390_v33 = vld [vmem:[%s6147_s30 + $0x90] sm:$0x1]  ;;  %v2379_v22 = vpack.c.b16 %v2360_v39, %v2360_v39 }
 0x153   : > { %v1331_v63 = vld [vmem:[#allocation2 + $0x68] sm:$0xff]  ;;  %v779_v39 = vld [vmem:[#allocation2 + $0x90] sm:$0xff] }
 0x154   : > { %v6931_v36 = vpop.f32.mrf.mxu0  ;;  %v1705_v58 = vadd.f32 %v1634_v46, %v1331_v63  ;;  %1296 = vst.msk [vmem:[#allocation2 + $0x70] sm:$0xff] %vm319_vm4, %v1260_v49  ;;  %5135 = vmatmul.msk.bf16.gmra.mxu1 %vm534_vm0, %v1064_v8  ;;  %5237 = vmatmul.msk.bf16.gmra.mxu2 %vm534_vm0, %v1522_v45  ;;  %v5994_v46 = vld [vmem:[%s6147_s30 + $0x10] sm:$0xf0]  ;;  %v5995_v8 = vld [vmem:[%s6147_s30 + $0x18] sm:$0xff] }
 0x155   : > { %v1776_v43 = vld [vmem:[#allocation2 + $0x60] sm:$0xff]  ;;  %v5655_v45 = vor.u32 %v5994_v46, %v5654_v37  ;;  %v3860_v63 = vshrl.u32 %v5995_v8, 16  ;;  %v3863_v2 = vshll.u32 %v5995_v8, 16 }
 0x156   : > { %v2149_v56 = vadd.f32 %v6812_v11, %v1776_v43  ;;  %1741 = vst.msk [vmem:[#allocation2 + $0x68] sm:$0xff] %vm319_vm4, %v1705_v58  ;;  %v1069_v11 = vshll.u32 %v6942_v44, 16  ;;  %v1469_v58 = vunpack.c.l.b16 %v1390_v33  ;;  %v2546_v43 = vshll.u32 %v2379_v22, 16  ;;  %v5996_v46 = vld [vmem:[%s6147_s30 + $0x20] sm:$0xff] }
 0x157   : > { %5441 = vmatmul.msk.bf16.gmra.mxu0 %vm534_vm0, %v2532_v7  ;;  %v2220_v4 = vld [vmem:[#allocation2 + $0x58] sm:$0xff]  ;;  %v1637_v0 = vpop.f32.mrf.mxu2  ;;  %5341 = vmatmul.msk.bf16.gmra.mxu3 %vm534_vm0, %v1971_v57  ;;  %v931_v7 = vpack.c.b16 %v912_v48, %v912_v48  ;;  %v3852_v27 = vshrl.u32 %v5655_v45, 16  ;;  %v3855_v54 = vshll.u32 %v5655_v45, 16  ;;  %v3869_v8 = vshrl.u32 %v5996_v46, 16 }
 0x158   : > { %2185 = vst.msk [vmem:[#allocation2 + $0x60] sm:$0xff] %vm319_vm4, %v2149_v56  ;;  %v2727_v30 = vadd.f32 %v6857_v40, %v2220_v4  ;;  %v2539_v40 = vrot.slane %v2537_v35, 2  ;;  %v6965_v3 = vrot.slane %v1069_v11, 1  ;;  %v778_v11 = vld [vmem:[#allocation2 + $0x88] sm:$0xff]  ;;  %v3872_v45 = vshll.u32 %v5996_v46, 16 }
 0x159   : > { %v1193_v60 = vpop.f32.mrf.mxu1  ;;  %v6972_v28 = vpop.f32.mrf.mxu3  ;;  %v3854_v35 = vrot.slane %v3852_v27, 2  ;;  %v3857_v4 = vrot.slane %v3855_v54, 3  ;;  %v5552_v27 = vld [vmem:[%s6147_s30 + $0x10] sm:$0xc]  ;;  %v5974_v54 = vld [vmem:[%s6147_s30 + $0x10] sm:$0xf0] }
 0x15a   : > { %2763 = vst.msk [vmem:[#allocation2 + $0x58] sm:$0xff] %vm319_vm4, %v2727_v30  ;;  %v1261_v17 = vadd.f32 %v1193_v60, %v776_v5  ;;  %v6970_v31 = vor.u32 %v2539_v40, %v2536_v16  ;;  %v3865_v5 = vrot.slane %v3863_v2, 3  ;;  %v1488_v16 = vpack.c.b16 %v1469_v58, %v1469_v58  ;;  %v6014_v2 = vld [vmem:[%s6147_s30 + $0x10] sm:$0xf0] }
 0x15b   : > { %v1332_v50 = vld [vmem:[#allocation2 + $0x70] sm:$0xff]  ;;  %v3858_v23 = vor.u32 %v3857_v4, %v3854_v35  ;;  %v780_v35 = vld [vmem:[#allocation2 + $0x98] sm:$0xff] }
 0x15c   : > { %v6960_v15 = vpop.f32.mrf.mxu0  ;;  %v1706_v20 = vadd.f32 %v1637_v0, %v1332_v50  ;;  %1297 = vst.msk [vmem:[#allocation2 + $0x78] sm:$0xff] %vm319_vm4, %v1261_v17  ;;  %v2541_v19 = vsel %vm2380_vm3, %v6918_v42, %v6970_v31  ;;  %v2543_v42 = vshrl.u32 %v2379_v22, 16  ;;  %v3862_v0 = vrot.slane %v3860_v63, 2  ;;  %v7050_v4 = vld [vmem:[%s6147_s30 + $0x10] sm:$0xff] }
 0x15d   : > { %v1777_v21 = vld [vmem:[#allocation2 + $0x68] sm:$0xff]  ;;  %v1077_v17 = vshll.u32 %v931_v7, 16  ;;  %v1525_v48 = vrot.slane %v1488_v16, 1  ;;  %v3874_v22 = vrot.slane %v3872_v45, 3 }
 0x15e   : > { %v2150_v12 = vadd.f32 %v6841_v29, %v1777_v21  ;;  %1742 = vst.msk [vmem:[#allocation2 + $0x70] sm:$0xff] %vm319_vm4, %v1706_v20  ;;  %v1072_v29 = vsel %vm932_vm2, %v1067_v51, %v6965_v3  ;;  %v7005_v40 = vor.u32 %v3865_v5, %v3862_v0  ;;  %v2545_v62 = vrot.slane %v2543_v42, 1  ;;  %v5954_v7 = vld [vmem:[%s6147_s30 + $0x8] sm:$0xf0] }
 0x15f   : > { %v2221_v14 = vld [vmem:[#allocation2 + $0x60] sm:$0xff]  ;;  %v1639_v1 = vpop.f32.mrf.mxu2  ;;  %v2548_v21 = vrot.slane %v2546_v43, 2  ;;  %v5756_v43 = vld [vmem:[%s6147_s30 + $0x10] sm:$0x8]  ;;  %v5451_v0 = vor.u32 %v5954_v7, %v5450_v59  ;;  %v782_v7 = vld [vmem:[#allocation2 + $0xa8] sm:$0xff] }
 0x160   : > { %2186 = vst.msk [vmem:[#allocation2 + $0x68] sm:$0xff] %vm319_vm4, %v2150_v12  ;;  %v2728_v34 = vadd.f32 %v6877_v61, %v2221_v14 }
 0x161   : > { %v1196_v13 = vpop.f32.mrf.mxu1  ;;  %v7000_v47 = vpop.f32.mrf.mxu3  ;;  %v2549_v18 = vor.u32 %v2548_v21, %v2545_v62  ;;  %v2960_v16 = vrot.slane %v5451_v0, 2 }
 0x162   : > { %2764 = vst.msk [vmem:[#allocation2 + $0x60] sm:$0xff] %vm319_vm4, %v2728_v34  ;;  %v1262_v26 = vadd.f32 %v1196_v13, %v777_v25 }
 0x163   : > { %v1333_v49 = vld [vmem:[#allocation2 + $0x78] sm:$0xff] }
 0x164   : > { %v6988_v61 = vpop.f32.mrf.mxu0  ;;  %v1707_v52 = vadd.f32 %v1639_v1, %v1333_v49  ;;  %1298 = vst.msk [vmem:[#allocation2 + $0x80] sm:$0xff] %vm319_vm4, %v1262_v26  ;;  %5136 = vmatmul.msk.bf16.gmra.mxu1 %vm534_vm0, %v1072_v29  ;;  %5238 = vmatmul.msk.bf16.gmra.mxu2 %vm534_vm0, %v1524_v41  ;;  %v1079_v1 = vrot.slane %v1077_v17, 1 }
 0x165   : > { %v1778_v55 = vld [vmem:[#allocation2 + $0x70] sm:$0xff] }
 0x166   : > { %v2151_v56 = vadd.f32 %v6866_v24, %v1778_v55  ;;  %1743 = vst.msk [vmem:[#allocation2 + $0x78] sm:$0xff] %vm319_vm4, %v1707_v52  ;;  %v1073_v24 = vshrl.u32 %v6942_v44, 16 }
 0x167   : > { %5442 = vmatmul.msk.bf16.gmra.mxu0 %vm534_vm0, %v2541_v19  ;;  %v2222_v38 = vld [vmem:[#allocation2 + $0x68] sm:$0xff]  ;;  %v1642_v30 = vpop.f32.mrf.mxu2  ;;  %v2550_v19 = vsel %vm2380_vm3, %v6970_v31, %v2549_v18  ;;  %v3871_v31 = vrot.slane %v3869_v8, 2 }
 0x168   : > { %2187 = vst.msk [vmem:[#allocation2 + $0x70] sm:$0xff] %vm319_vm4, %v2151_v56  ;;  %v2729_v60 = vadd.f32 %v6911_v32, %v2222_v38  ;;  %v3867_v32 = vsel %vm3850_vm5, %v3858_v23, %v7005_v40  ;;  %v1075_v14 = vor.u32 %v1073_v24, %v6965_v3  ;;  %v7053_v38 = vld [vmem:[%s6147_s30 + $0x18] sm:$0xff] }
 0x169   : > { %v1198_v57 = vpop.f32.mrf.mxu1  ;;  %5732 = vmatmul.msk.bf16.vlgmr.msra.gmra.mxu3 %vm534_vm0, %v3867_v32  ;;  %v7017_v25 = vpop.f32.mrf.mxu3  ;;  %v7043_v42 = vor.u32 %v3874_v22, %v3871_v31  ;;  %v7099_v22 = vld [vmem:[%s6147_s30 + $0x18] sm:$0xff] }
 0x16a   : > { %2765 = vst.msk [vmem:[#allocation2 + $0x68] sm:$0xff] %vm319_vm4, %v2729_v60  ;;  %v1263_v50 = vadd.f32 %v1198_v57, %v778_v11  ;;  %v1080_v3 = vsel %vm932_vm2, %v1075_v14, %v1079_v1  ;;  %v7062_v11 = vld [vmem:[%s6147_s30 + $0x18] sm:$0xff] }
 0x16b   : > { %v1334_v51 = vld [vmem:[#allocation2 + $0x80] sm:$0xff]  ;;  %v3876_v5 = vsel %vm3850_vm5, %v7005_v40, %v7043_v42  ;;  %v3406_v40 = vrot.slane %v7053_v38, 2  ;;  %v4431_v32 = vrot.slane %v7062_v11, 3 }
 0x16c   : > { %v7008_v20 = vpop.f32.mrf.mxu0  ;;  %v1708_v12 = vadd.f32 %v1642_v30, %v1334_v51  ;;  %1299 = vst.msk [vmem:[#allocation2 + $0x88] sm:$0xff] %vm319_vm4, %v1263_v50  ;;  %v5553_v30 = vor.u32 %v5974_v54, %v5552_v27  ;;  %v2961_v50 = vrot.slane %v7050_v4, 2 }
 0x16d   : > { %v1779_v44 = vld [vmem:[#allocation2 + $0x78] sm:$0xff] }
 0x16e   : > { %v2152_v34 = vadd.f32 %v6895_v6, %v1779_v44  ;;  %1744 = vst.msk [vmem:[#allocation2 + $0x80] sm:$0xff] %vm319_vm4, %v1708_v12  ;;  %v1526_v6 = vsel %vm1489_vm1, %v1523_v9, %v1525_v48  ;;  %v3405_v62 = vrot.slane %v5553_v30, 2  ;;  %v781_v48 = vld [vmem:[#allocation2 + $0xa0] sm:$0xff] }
 0x16f   : > { %v2223_v13 = vld [vmem:[#allocation2 + $0x70] sm:$0xff]  ;;  %v1644_v29 = vpop.f32.mrf.mxu2 }
 0x170   : > { %2188 = vst.msk [vmem:[#allocation2 + $0x78] sm:$0xff] %vm319_vm4, %v2152_v34  ;;  %v2730_v41 = vadd.f32 %v6931_v36, %v2223_v13  ;;  %v3407_v18 = vsel %vm2959_vm6, %v3405_v62, %v3406_v40  ;;  %v5997_v13 = vld [vmem:[%s6147_s30 + $0x28] sm:$0xff] }
 0x171   : > { %v1201_v37 = vpop.f32.mrf.mxu1  ;;  %v7041_v63 = vpop.f32.mrf.mxu3 }
 0x172   : > { %2766 = vst.msk [vmem:[#allocation2 + $0x70] sm:$0xff] %vm319_vm4, %v2730_v41  ;;  %v1264_v26 = vadd.f32 %v1201_v37, %v779_v39  ;;  %v3878_v37 = vshrl.u32 %v5997_v13, 16 }
 0x173   : > { %v1335_v36 = vld [vmem:[#allocation2 + $0x88] sm:$0xff] }
 0x174   : > { %v7027_v33 = vpop.f32.mrf.mxu0  ;;  %v1709_v49 = vadd.f32 %v1644_v29, %v1335_v36  ;;  %1300 = vst.msk [vmem:[#allocation2 + $0x90] sm:$0xff] %vm319_vm4, %v1264_v26  ;;  %5137 = vmatmul.msk.bf16.gmra.mxu1 %vm534_vm0, %v1080_v3  ;;  %5239 = vmatmul.msk.bf16.gmra.mxu2 %vm534_vm0, %v1526_v6  ;;  %v3881_v3 = vshll.u32 %v5997_v13, 16  ;;  %v3880_v26 = vrot.slane %v3878_v37, 2  ;;  %v7156_v13 = vld [vmem:[%s6147_s30 + $0x28] sm:$0xff] }
 0x175   : > { %v1780_v9 = vld [vmem:[#allocation2 + $0x80] sm:$0xff] }
 0x176   : > { %v2153_v52 = vadd.f32 %v6920_v10, %v1780_v9  ;;  %1745 = vst.msk [vmem:[#allocation2 + $0x88] sm:$0xff] %vm319_vm4, %v1709_v49 }
 0x177   : > { %5443 = vmatmul.msk.bf16.gmra.mxu0 %vm534_vm0, %v2550_v19  ;;  %v2224_v55 = vld [vmem:[#allocation2 + $0x78] sm:$0xff]  ;;  %v1647_v58 = vpop.f32.mrf.mxu2  ;;  %v3883_v19 = vrot.slane %v3881_v3, 3 }
 0x178   : > { %2189 = vst.msk [vmem:[#allocation2 + $0x80] sm:$0xff] %vm319_vm4, %v2153_v52  ;;  %v2731_v56 = vadd.f32 %v6960_v15, %v2224_v55  ;;  %v5757_v15 = vor.u32 %v6014_v2, %v5756_v43  ;;  %v7102_v52 = vld [vmem:[%s6147_s30 + $0x20] sm:$0xff]  ;;  %v2963_v2 = vrot.slane %v7099_v22, 2 }
 0x179   : > { %v1203_v10 = vpop.f32.mrf.mxu1  ;;  %5733 = vmatmul.msk.bf16.gmra.mxu3 %vm534_vm0, %v3876_v5  ;;  %v3884_v59 = vor.u32 %v3883_v19, %v3880_v26  ;;  %v7110_v55 = vld [vmem:[%s6147_s30 + $0x20] sm:$0xff] }
 0x17a   : > { %2767 = vst.msk [vmem:[#allocation2 + $0x78] sm:$0xff] %vm319_vm4, %v2731_v56  ;;  %v1265_v60 = vadd.f32 %v1203_v10, %v780_v35  ;;  %v4430_v51 = vrot.slane %v5757_v15, 3  ;;  %v7071_v12 = vpop.f32.mrf.mxu3  ;;  %v3408_v56 = vrot.slane %v7102_v52, 2  ;;  %v4433_v35 = vrot.slane %v7110_v55, 3 }
 0x17b   : > { %v1336_v57 = vld [vmem:[#allocation2 + $0x90] sm:$0xff] }
 0x17c   : > { %v7059_v23 = vpop.f32.mrf.mxu0  ;;  %v1710_v24 = vadd.f32 %v1647_v58, %v1336_v57  ;;  %1301 = vst.msk [vmem:[#allocation2 + $0x98] sm:$0xff] %vm319_vm4, %v1265_v60  ;;  %v783_v60 = vld [vmem:[#allocation2 + $0xb0] sm:$0xff]  ;;  %v3409_v57 = vsel %vm2959_vm6, %v3406_v40, %v3408_v56 }
 0x17d   : > { %v1781_v17 = vld [vmem:[#allocation2 + $0x88] sm:$0xff] }
 0x17e   : > { %v2154_v21 = vadd.f32 %v6947_v53, %v1781_v17  ;;  %1746 = vst.msk [vmem:[#allocation2 + $0x90] sm:$0xff] %vm319_vm4, %v1710_v24  ;;  %v2962_v53 = vsel %vm2959_vm6, %v2960_v16, %v2961_v50  ;;  %v5998_v24 = vld [vmem:[%s6147_s30 + $0x30] sm:$0xff] }
 0x17f   : > { %v2225_v44 = vld [vmem:[#allocation2 + $0x80] sm:$0xff]  ;;  %v1649_v14 = vpop.f32.mrf.mxu2  ;;  %v3890_v62 = vshll.u32 %v5998_v24, 16 }
 0x180   : > { %2190 = vst.msk [vmem:[#allocation2 + $0x88] sm:$0xff] %vm319_vm4, %v2154_v21  ;;  %v2732_v1 = vadd.f32 %v6988_v61, %v2225_v44  ;;  %v4432_v61 = vsel %vm4429_vm7, %v4430_v51, %v4431_v32 }
 0x181   : > { %v1206_v34 = vpop.f32.mrf.mxu1  ;;  %v3892_v51 = vrot.slane %v3890_v62, 3 }
 0x182   : > { %2768 = vst.msk [vmem:[#allocation2 + $0x80] sm:$0xff] %vm319_vm4, %v2732_v1  ;;  %v1266_v29 = vadd.f32 %v1206_v34, %v781_v48  ;;  %v7094_v8 = vpop.f32.mrf.mxu3  ;;  %v784_v34 = vld [vmem:[#allocation2 + $0xb8] sm:$0xff] }
 0x183   : > { %v1337_v39 = vld [vmem:[#allocation2 + $0x98] sm:$0xff] }
 0x184   : > { %v7083_v41 = vpop.f32.mrf.mxu0  ;;  %v1711_v6 = vadd.f32 %v1649_v14, %v1337_v39  ;;  %1302 = vst.msk [vmem:[#allocation2 + $0xa0] sm:$0xff] %vm319_vm4, %v1266_v29  ;;  %5528 = vmatmul.msk.bf16.vlgmr.msra.gmra.mxu1 %vm534_vm0, %v2962_v53  ;;  %5630 = vmatmul.msk.bf16.vlgmr.msra.gmra.mxu2 %vm534_vm0, %v3407_v18  ;;  %v7153_v18 = vld [vmem:[%s6147_s30 + $0x20] sm:$0xff]  ;;  %v7163_v39 = vld [vmem:[%s6147_s30 + $0x28] sm:$0xff] }
 0x185   : > { %v1782_v46 = vld [vmem:[#allocation2 + $0x90] sm:$0xff]  ;;  %v4435_v19 = vrot.slane %v7163_v39, 3 }
 0x186   : > { %v2155_v36 = vadd.f32 %v6972_v28, %v1782_v46  ;;  %1747 = vst.msk [vmem:[#allocation2 + $0x98] sm:$0xff] %vm319_vm4, %v1711_v6  ;;  %v3885_v28 = vsel %vm3850_vm5, %v7043_v42, %v3884_v59  ;;  %v2965_v6 = vrot.slane %v7153_v18, 2  ;;  %v3410_v46 = vrot.slane %v7156_v13, 2 }
 0x187   : > { %5834 = vmatmul.msk.bf16.vlgmr.msra.gmra.mxu0 %vm534_vm0, %v4432_v61  ;;  %v2226_v45 = vld [vmem:[#allocation2 + $0x88] sm:$0xff]  ;;  %v1652_v49 = vpop.f32.mrf.mxu2 }
 0x188   : > { %2191 = vst.msk [vmem:[#allocation2 + $0x90] sm:$0xff] %vm319_vm4, %v2155_v36  ;;  %v2733_v9 = vadd.f32 %v7008_v20, %v2226_v45 }
 0x189   : > { %v1208_v31 = vpop.f32.mrf.mxu1  ;;  %5734 = vmatmul.msk.bf16.gmra.mxu3 %vm534_vm0, %v3885_v28  ;;  %v5999_v28 = vld [vmem:[%s6147_s30 + $0x38] sm:$0xff] }
 0x18a   : > { %2769 = vst.msk [vmem:[#allocation2 + $0x88] sm:$0xff] %vm319_vm4, %v2733_v9  ;;  %v1267_v27 = vadd.f32 %v1208_v31, %v782_v7  ;;  %v7119_v10 = vpop.f32.mrf.mxu3  ;;  %v785_v9 = vld [vmem:[#allocation2 + $0xc0] sm:$0xff]  ;;  %v3411_v31 = vsel %vm2959_vm6, %v3408_v56, %v3410_v46 }
 0x18b   : > { %v1338_v58 = vld [vmem:[#allocation2 + $0xa0] sm:$0xff] }
 0x18c   : > { %v7107_v54 = vpop.f32.mrf.mxu0  ;;  %v1712_v43 = vadd.f32 %v1652_v49, %v1338_v58  ;;  %1303 = vst.msk [vmem:[#allocation2 + $0xa8] sm:$0xff] %vm319_vm4, %v1267_v27 }
 0x18d   : > { %v1783_v20 = vld [vmem:[#allocation2 + $0x98] sm:$0xff] }
 0x18e   : > { %v2156_v42 = vadd.f32 %v7000_v47, %v1783_v20  ;;  %1748 = vst.msk [vmem:[#allocation2 + $0xa0] sm:$0xff] %vm319_vm4, %v1712_v43  ;;  %v2964_v47 = vsel %vm2959_vm6, %v2961_v50, %v2963_v2  ;;  %v3887_v50 = vshrl.u32 %v5998_v24, 16  ;;  %v3896_v43 = vshrl.u32 %v5999_v28, 16  ;;  %v7209_v24 = vld [vmem:[%s6147_s30 + $0x30] sm:$0xff] }
 0x18f   : > { %v2227_v0 = vld [vmem:[#allocation2 + $0x90] sm:$0xff]  ;;  %v1654_v30 = vpop.f32.mrf.mxu2  ;;  %v3899_v20 = vshll.u32 %v5999_v28, 16  ;;  %v7262_v28 = vld [vmem:[%s6147_s30 + $0x38] sm:$0xff] }
 0x190   : > { %2192 = vst.msk [vmem:[#allocation2 + $0x98] sm:$0xff] %vm319_vm4, %v2156_v42  ;;  %v2734_v5 = vadd.f32 %v7027_v33, %v2227_v0  ;;  %v4434_v33 = vsel %vm4429_vm7, %v4431_v32, %v4433_v35  ;;  %v3889_v40 = vrot.slane %v3887_v50, 2  ;;  %v3898_v56 = vrot.slane %v3896_v43, 2 }
 0x191   : > { %v1211_v15 = vpop.f32.mrf.mxu1  ;;  %v3901_v42 = vrot.slane %v3899_v20, 3 }
 0x192   : > { %2770 = vst.msk [vmem:[#allocation2 + $0x90] sm:$0xff] %vm319_vm4, %v2734_v5  ;;  %v1268_v17 = vadd.f32 %v1211_v15, %v783_v60  ;;  %v7148_v32 = vpop.f32.mrf.mxu3  ;;  %v3893_v1 = vor.u32 %v3892_v51, %v3889_v40  ;;  %v786_v15 = vld [vmem:[#allocation2 + $0xc8] sm:$0xff] }
 0x193   : > { %v1339_v4 = vld [vmem:[#allocation2 + $0xa8] sm:$0xff]  ;;  %v3902_v5 = vor.u32 %v3901_v42, %v3898_v56 }
 0x194   : > { %v7135_v16 = vpop.f32.mrf.mxu0  ;;  %v1713_v21 = vadd.f32 %v1654_v30, %v1339_v4  ;;  %1304 = vst.msk [vmem:[#allocation2 + $0xb0] sm:$0xff] %vm319_vm4, %v1268_v17  ;;  %5529 = vmatmul.msk.bf16.gmra.mxu1 %vm534_vm0, %v2964_v47  ;;  %5631 = vmatmul.msk.bf16.gmra.mxu2 %vm534_vm0, %v3409_v57  ;;  %v7206_v57 = vld [vmem:[%s6147_s30 + $0x28] sm:$0xff]  ;;  %v7216_v4 = vld [vmem:[%s6147_s30 + $0x30] sm:$0xff] }
 0x195   : > { %v1784_v38 = vld [vmem:[#allocation2 + $0xa0] sm:$0xff]  ;;  %v4437_v51 = vrot.slane %v7216_v4, 3 }
 0x196   : > { %v2157_v11 = vadd.f32 %v7017_v25, %v1784_v38  ;;  %1749 = vst.msk [vmem:[#allocation2 + $0xa8] sm:$0xff] %vm319_vm4, %v1713_v21  ;;  %v3894_v25 = vsel %vm3850_vm5, %v3884_v59, %v3893_v1  ;;  %v2967_v21 = vrot.slane %v7206_v57, 2  ;;  %v3412_v38 = vrot.slane %v7209_v24, 2 }
 0x197   : > { %5835 = vmatmul.msk.bf16.gmra.mxu0 %vm534_vm0, %v4434_v33  ;;  %v2228_v44 = vld [vmem:[#allocation2 + $0x98] sm:$0xff]  ;;  %v1657_v14 = vpop.f32.mrf.mxu2 }
 0x198   : > { %2193 = vst.msk [vmem:[#allocation2 + $0xa0] sm:$0xff] %vm319_vm4, %v2157_v11  ;;  %v2735_v48 = vadd.f32 %v7059_v23, %v2228_v44 }
 0x199   : > { %v1213_v53 = vpop.f32.mrf.mxu1  ;;  %5735 = vmatmul.msk.bf16.gmra.mxu3 %vm534_vm0, %v3894_v25  ;;  %v6000_v25 = vld [vmem:[%s6147_s30 + $0x40] sm:$0xff] }
 0x19a   : > { %2771 = vst.msk [vmem:[#allocation2 + $0x98] sm:$0xff] %vm319_vm4, %v2735_v48  ;;  %v1269_v29 = vadd.f32 %v1213_v53, %v784_v34  ;;  %v7172_v36 = vpop.f32.mrf.mxu3  ;;  %v787_v48 = vld [vmem:[#allocation2 + $0xd0] sm:$0xff]  ;;  %v3413_v53 = vsel %vm2959_vm6, %v3410_v46, %v3412_v38 }
 0x19b   : > { %v1340_v37 = vld [vmem:[#allocation2 + $0xb0] sm:$0xff] }
 0x19c   : > { %v7160_v61 = vpop.f32.mrf.mxu0  ;;  %v1714_v3 = vadd.f32 %v1657_v14, %v1340_v37  ;;  %1305 = vst.msk [vmem:[#allocation2 + $0xb8] sm:$0xff] %vm319_vm4, %v1269_v29 }
 0x19d   : > { %v1785_v23 = vld [vmem:[#allocation2 + $0xa8] sm:$0xff] }
 0x19e   : > { %v2158_v26 = vadd.f32 %v7041_v63, %v1785_v23  ;;  %1750 = vst.msk [vmem:[#allocation2 + $0xb0] sm:$0xff] %vm319_vm4, %v1714_v3  ;;  %v2966_v63 = vsel %vm2959_vm6, %v2963_v2, %v2965_v6  ;;  %v3905_v3 = vshrl.u32 %v6000_v25, 16  ;;  %v3908_v23 = vshll.u32 %v6000_v25, 16  ;;  %v7315_v25 = vld [vmem:[%s6147_s30 + $0x40] sm:$0xff] }
 0x19f   : > { %v2229_v45 = vld [vmem:[#allocation2 + $0xa0] sm:$0xff]  ;;  %v1659_v49 = vpop.f32.mrf.mxu2 }
 0x1a0   : > { %2194 = vst.msk [vmem:[#allocation2 + $0xa8] sm:$0xff] %vm319_vm4, %v2158_v26  ;;  %v2736_v59 = vadd.f32 %v7083_v41, %v2229_v45  ;;  %v4436_v41 = vsel %vm4429_vm7, %v4433_v35, %v4435_v19  ;;  %v3907_v46 = vrot.slane %v3905_v3, 2  ;;  %v3910_v26 = vrot.slane %v3908_v23, 3 }
 0x1a1   : > { %v1216_v7 = vpop.f32.mrf.mxu1 }
 0x1a2   : > { %2772 = vst.msk [vmem:[#allocation2 + $0xa0] sm:$0xff] %vm319_vm4, %v2736_v59  ;;  %v1270_v27 = vadd.f32 %v1216_v7, %v785_v9  ;;  %v7201_v35 = vpop.f32.mrf.mxu3  ;;  %v3911_v59 = vor.u32 %v3910_v26, %v3907_v46  ;;  %v788_v7 = vld [vmem:[#allocation2 + $0xd8] sm:$0xff] }
 0x1a3   : > { %v1341_v22 = vld [vmem:[#allocation2 + $0xb8] sm:$0xff] }
 0x1a4   : > { %v7188_v58 = vpop.f32.mrf.mxu0  ;;  %v1715_v2 = vadd.f32 %v1659_v49, %v1341_v22  ;;  %1306 = vst.msk [vmem:[#allocation2 + $0xc0] sm:$0xff] %vm319_vm4, %v1270_v27  ;;  %5530 = vmatmul.msk.bf16.gmra.mxu1 %vm534_vm0, %v2966_v63  ;;  %5632 = vmatmul.msk.bf16.gmra.mxu2 %vm534_vm0, %v3411_v31  ;;  %v7259_v31 = vld [vmem:[%s6147_s30 + $0x30] sm:$0xff]  ;;  %v7269_v22 = vld [vmem:[%s6147_s30 + $0x38] sm:$0xff] }
 0x1a5   : > { %v1786_v52 = vld [vmem:[#allocation2 + $0xb0] sm:$0xff]  ;;  %v4439_v42 = vrot.slane %v7269_v22, 3 }
 0x1a6   : > { %v2159_v55 = vadd.f32 %v7071_v12, %v1786_v52  ;;  %1751 = vst.msk [vmem:[#allocation2 + $0xb8] sm:$0xff] %vm319_vm4, %v1715_v2  ;;  %v3903_v12 = vsel %vm3850_vm5, %v3893_v1, %v3902_v5  ;;  %v2969_v2 = vrot.slane %v7259_v31, 2  ;;  %v3414_v52 = vrot.slane %v7262_v28, 2 }
 0x1a7   : > { %5836 = vmatmul.msk.bf16.gmra.mxu0 %vm534_vm0, %v4436_v41  ;;  %v2230_v0 = vld [vmem:[#allocation2 + $0xa8] sm:$0xff]  ;;  %v1662_v30 = vpop.f32.mrf.mxu2 }
 0x1a8   : > { %2195 = vst.msk [vmem:[#allocation2 + $0xb0] sm:$0xff] %vm319_vm4, %v2159_v55  ;;  %v2737_v60 = vadd.f32 %v7107_v54, %v2230_v0 }
 0x1a9   : > { %v1218_v47 = vpop.f32.mrf.mxu1  ;;  %5736 = vmatmul.msk.bf16.gmra.mxu3 %vm534_vm0, %v3903_v12  ;;  %v6001_v12 = vld [vmem:[%s6147_s30 + $0x48] sm:$0xff] }
 0x1aa   : > { %2773 = vst.msk [vmem:[#allocation2 + $0xa8] sm:$0xff] %vm319_vm4, %v2737_v60  ;;  %v1271_v17 = vadd.f32 %v1218_v47, %v786_v15  ;;  %v7225_v11 = vpop.f32.mrf.mxu3  ;;  %v789_v60 = vld [vmem:[#allocation2 + $0xe0] sm:$0xff]  ;;  %v3415_v47 = vsel %vm2959_vm6, %v3412_v38, %v3414_v52 }
 0x1ab   : > { %v1342_v50 = vld [vmem:[#allocation2 + $0xc0] sm:$0xff] }
 0x1ac   : > { %v7213_v33 = vpop.f32.mrf.mxu0  ;;  %v1716_v62 = vadd.f32 %v1662_v30, %v1342_v50  ;;  %1307 = vst.msk [vmem:[#allocation2 + $0xc8] sm:$0xff] %vm319_vm4, %v1271_v17 }
 0x1ad   : > { %v1787_v54 = vld [vmem:[#allocation2 + $0xb8] sm:$0xff] }
 0x1ae   : > { %v2160_v40 = vadd.f32 %v7094_v8, %v1787_v54  ;;  %1752 = vst.msk [vmem:[#allocation2 + $0xc0] sm:$0xff] %vm319_vm4, %v1716_v62  ;;  %v2968_v8 = vsel %vm2959_vm6, %v2965_v6, %v2967_v21  ;;  %v3914_v62 = vshrl.u32 %v6001_v12, 16  ;;  %v3917_v54 = vshll.u32 %v6001_v12, 16  ;;  %v7368_v12 = vld [vmem:[%s6147_s30 + $0x48] sm:$0xff] }
 0x1af   : > { %v2231_v44 = vld [vmem:[#allocation2 + $0xb0] sm:$0xff]  ;;  %v1664_v14 = vpop.f32.mrf.mxu2 }
 0x1b0   : > { %2196 = vst.msk [vmem:[#allocation2 + $0xb8] sm:$0xff] %vm319_vm4, %v2160_v40  ;;  %v2738_v1 = vadd.f32 %v7135_v16, %v2231_v44  ;;  %v4438_v16 = vsel %vm4429_vm7, %v4435_v19, %v4437_v51  ;;  %v3916_v38 = vrot.slane %v3914_v62, 2  ;;  %v3919_v40 = vrot.slane %v3917_v54, 3 }
 0x1b1   : > { %v1221_v34 = vpop.f32.mrf.mxu1 }
 0x1b2   : > { %2774 = vst.msk [vmem:[#allocation2 + $0xb0] sm:$0xff] %vm319_vm4, %v2738_v1  ;;  %v1272_v29 = vadd.f32 %v1221_v34, %v787_v48  ;;  %v7254_v19 = vpop.f32.mrf.mxu3  ;;  %v3920_v1 = vor.u32 %v3919_v40, %v3916_v38  ;;  %v790_v34 = vld [vmem:[#allocation2 + $0xe8] sm:$0xff] }
 0x1b3   : > { %v1343_v18 = vld [vmem:[#allocation2 + $0xc8] sm:$0xff] }
 0x1b4   : > { %v7241_v37 = vpop.f32.mrf.mxu0  ;;  %v1717_v6 = vadd.f32 %v1664_v14, %v1343_v18  ;;  %1308 = vst.msk [vmem:[#allocation2 + $0xd0] sm:$0xff] %vm319_vm4, %v1272_v29  ;;  %5531 = vmatmul.msk.bf16.gmra.mxu1 %vm534_vm0, %v2968_v8  ;;  %5633 = vmatmul.msk.bf16.gmra.mxu2 %vm534_vm0, %v3413_v53  ;;  %v7312_v53 = vld [vmem:[%s6147_s30 + $0x38] sm:$0xff]  ;;  %v7322_v18 = vld [vmem:[%s6147_s30 + $0x40] sm:$0xff] }
 0x1b5   : > { %v1788_v13 = vld [vmem:[#allocation2 + $0xc0] sm:$0xff]  ;;  %v4441_v26 = vrot.slane %v7322_v18, 3 }
 0x1b6   : > { %v2161_v39 = vadd.f32 %v7119_v10, %v1788_v13  ;;  %1753 = vst.msk [vmem:[#allocation2 + $0xc8] sm:$0xff] %vm319_vm4, %v1717_v6  ;;  %v3912_v10 = vsel %vm3850_vm5, %v3902_v5, %v3911_v59  ;;  %v2971_v6 = vrot.slane %v7312_v53, 2  ;;  %v3416_v13 = vrot.slane %v7315_v25, 2 }
 0x1b7   : > { %5837 = vmatmul.msk.bf16.gmra.mxu0 %vm534_vm0, %v4438_v16  ;;  %v2232_v45 = vld [vmem:[#allocation2 + $0xb8] sm:$0xff]  ;;  %v1667_v49 = vpop.f32.mrf.mxu2 }
 0x1b8   : > { %2197 = vst.msk [vmem:[#allocation2 + $0xc0] sm:$0xff] %vm319_vm4, %v2161_v39  ;;  %v2739_v9 = vadd.f32 %v7160_v61, %v2232_v45 }
 0x1b9   : > { %v1223_v63 = vpop.f32.mrf.mxu1  ;;  %5737 = vmatmul.msk.bf16.gmra.mxu3 %vm534_vm0, %v3912_v10  ;;  %v6002_v10 = vld [vmem:[%s6147_s30 + $0x50] sm:$0xff] }
 0x1ba   : > { %2775 = vst.msk [vmem:[#allocation2 + $0xb8] sm:$0xff] %vm319_vm4, %v2739_v9  ;;  %v1273_v27 = vadd.f32 %v1223_v63, %v788_v7  ;;  %v7278_v55 = vpop.f32.mrf.mxu3  ;;  %v791_v9 = vld [vmem:[#allocation2 + $0xf0] sm:$0xff]  ;;  %v3417_v63 = vsel %vm2959_vm6, %v3414_v52, %v3416_v13 }
 0x1bb   : > { %v1344_v43 = vld [vmem:[#allocation2 + $0xd0] sm:$0xff] }
 0x1bc   : > { %v7266_v41 = vpop.f32.mrf.mxu0  ;;  %v1718_v20 = vadd.f32 %v1667_v49, %v1344_v43  ;;  %1309 = vst.msk [vmem:[#allocation2 + $0xd8] sm:$0xff] %vm319_vm4, %v1273_v27 }
 0x1bd   : > { %v1789_v61 = vld [vmem:[#allocation2 + $0xc8] sm:$0xff] }
 0x1be   : > { %v2162_v56 = vadd.f32 %v7148_v32, %v1789_v61  ;;  %1754 = vst.msk [vmem:[#allocation2 + $0xd0] sm:$0xff] %vm319_vm4, %v1718_v20  ;;  %v2970_v32 = vsel %vm2959_vm6, %v2967_v21, %v2969_v2  ;;  %v3923_v20 = vshrl.u32 %v6002_v10, 16  ;;  %v3926_v61 = vshll.u32 %v6002_v10, 16  ;;  %v7421_v10 = vld [vmem:[%s6147_s30 + $0x50] sm:$0xff] }
 0x1bf   : > { %v2233_v0 = vld [vmem:[#allocation2 + $0xc0] sm:$0xff]  ;;  %v1669_v30 = vpop.f32.mrf.mxu2 }
 0x1c0   : > { %2198 = vst.msk [vmem:[#allocation2 + $0xc8] sm:$0xff] %vm319_vm4, %v2162_v56  ;;  %v2740_v5 = vadd.f32 %v7188_v58, %v2233_v0  ;;  %v4440_v58 = vsel %vm4429_vm7, %v4437_v51, %v4439_v42  ;;  %v3925_v52 = vrot.slane %v3923_v20, 2  ;;  %v3928_v56 = vrot.slane %v3926_v61, 3 }
 0x1c1   : > { %v1226_v15 = vpop.f32.mrf.mxu1 }
 0x1c2   : > { %2776 = vst.msk [vmem:[#allocation2 + $0xc0] sm:$0xff] %vm319_vm4, %v2740_v5  ;;  %v1274_v17 = vadd.f32 %v1226_v15, %v789_v60  ;;  %v7307_v51 = vpop.f32.mrf.mxu3  ;;  %v3929_v5 = vor.u32 %v3928_v56, %v3925_v52  ;;  %v792_v15 = vld [vmem:[#allocation2 + $0xf8] sm:$0xff] }
 0x1c3   : > { %v1345_v57 = vld [vmem:[#allocation2 + $0xd8] sm:$0xff] }
 0x1c4   : > { %v7294_v50 = vpop.f32.mrf.mxu0  ;;  %v1719_v21 = vadd.f32 %v1669_v30, %v1345_v57  ;;  %1310 = vst.msk [vmem:[#allocation2 + $0xe0] sm:$0xff] %vm319_vm4, %v1274_v17  ;;  %5532 = vmatmul.msk.bf16.gmra.mxu1 %vm534_vm0, %v2970_v32  ;;  %5634 = vmatmul.msk.bf16.gmra.mxu2 %vm534_vm0, %v3415_v47  ;;  %v7365_v47 = vld [vmem:[%s6147_s30 + $0x40] sm:$0xff]  ;;  %v7375_v57 = vld [vmem:[%s6147_s30 + $0x48] sm:$0xff] }
 0x1c5   : > { %v1790_v24 = vld [vmem:[#allocation2 + $0xd0] sm:$0xff]  ;;  %v4443_v40 = vrot.slane %v7375_v57, 3 }
 0x1c6   : > { %v2163_v4 = vadd.f32 %v7172_v36, %v1790_v24  ;;  %1755 = vst.msk [vmem:[#allocation2 + $0xd8] sm:$0xff] %vm319_vm4, %v1719_v21  ;;  %v3921_v36 = vsel %vm3850_vm5, %v3911_v59, %v3920_v1  ;;  %v2973_v21 = vrot.slane %v7365_v47, 2  ;;  %v3418_v24 = vrot.slane %v7368_v12, 2 }
 0x1c7   : > { %5838 = vmatmul.msk.bf16.gmra.mxu0 %vm534_vm0, %v4440_v58  ;;  %v2234_v44 = vld [vmem:[#allocation2 + $0xc8] sm:$0xff]  ;;  %v1672_v14 = vpop.f32.mrf.mxu2 }
 0x1c8   : > { %2199 = vst.msk [vmem:[#allocation2 + $0xd0] sm:$0xff] %vm319_vm4, %v2163_v4  ;;  %v2741_v48 = vadd.f32 %v7213_v33, %v2234_v44 }
 0x1c9   : > { %v1228_v8 = vpop.f32.mrf.mxu1  ;;  %5738 = vmatmul.msk.bf16.gmra.mxu3 %vm534_vm0, %v3921_v36  ;;  %v6003_v36 = vld [vmem:[%s6147_s30 + $0x58] sm:$0xff] }
 0x1ca   : > { %2777 = vst.msk [vmem:[#allocation2 + $0xc8] sm:$0xff] %vm319_vm4, %v2741_v48  ;;  %v1275_v29 = vadd.f32 %v1228_v8, %v790_v34  ;;  %v7331_v39 = vpop.f32.mrf.mxu3  ;;  %v793_v48 = vld [vmem:[#allocation2 + $0x100] sm:$0xff]  ;;  %v3419_v8 = vsel %vm2959_vm6, %v3416_v13, %v3418_v24 }
 0x1cb   : > { %v1346_v3 = vld [vmem:[#allocation2 + $0xe0] sm:$0xff] }
 0x1cc   : > { %v7319_v16 = vpop.f32.mrf.mxu0  ;;  %v1720_v23 = vadd.f32 %v1672_v14, %v1346_v3  ;;  %1311 = vst.msk [vmem:[#allocation2 + $0xe8] sm:$0xff] %vm319_vm4, %v1275_v29 }
 0x1cd   : > { %v1791_v33 = vld [vmem:[#allocation2 + $0xd8] sm:$0xff] }
 0x1ce   : > { %v2164_v46 = vadd.f32 %v7201_v35, %v1791_v33  ;;  %1756 = vst.msk [vmem:[#allocation2 + $0xe0] sm:$0xff] %vm319_vm4, %v1720_v23  ;;  %v2972_v35 = vsel %vm2959_vm6, %v2969_v2, %v2971_v6  ;;  %v3932_v23 = vshrl.u32 %v6003_v36, 16  ;;  %v3935_v33 = vshll.u32 %v6003_v36, 16  ;;  %v7476_v36 = vld [vmem:[%s6147_s30 + $0x58] sm:$0xff] }
 0x1cf   : > { %v2235_v45 = vld [vmem:[#allocation2 + $0xd0] sm:$0xff]  ;;  %v1674_v49 = vpop.f32.mrf.mxu2 }
 0x1d0   : > { %2200 = vst.msk [vmem:[#allocation2 + $0xd8] sm:$0xff] %vm319_vm4, %v2164_v46  ;;  %v2742_v59 = vadd.f32 %v7241_v37, %v2235_v45  ;;  %v4442_v37 = vsel %vm4429_vm7, %v4439_v42, %v4441_v26  ;;  %v3934_v13 = vrot.slane %v3932_v23, 2  ;;  %v3937_v46 = vrot.slane %v3935_v33, 3 }
 0x1d1   : > { %v1231_v7 = vpop.f32.mrf.mxu1 }
 0x1d2   : > { %2778 = vst.msk [vmem:[#allocation2 + $0xd0] sm:$0xff] %vm319_vm4, %v2742_v59  ;;  %v1276_v27 = vadd.f32 %v1231_v7, %v791_v9  ;;  %v7360_v42 = vpop.f32.mrf.mxu3  ;;  %v3938_v59 = vor.u32 %v3937_v46, %v3934_v13  ;;  %v794_v7 = vld [vmem:[#allocation2 + $0x108] sm:$0xff] }
 0x1d3   : > { %v1347_v31 = vld [vmem:[#allocation2 + $0xe8] sm:$0xff] }
 0x1d4   : > { %v7347_v43 = vpop.f32.mrf.mxu0  ;;  %v1721_v2 = vadd.f32 %v1674_v49, %v1347_v31  ;;  %1312 = vst.msk [vmem:[#allocation2 + $0xf0] sm:$0xff] %vm319_vm4, %v1276_v27  ;;  %5533 = vmatmul.msk.bf16.gmra.mxu1 %vm534_vm0, %v2972_v35  ;;  %5635 = vmatmul.msk.bf16.gmra.mxu2 %vm534_vm0, %v3417_v63  ;;  %v7418_v63 = vld [vmem:[%s6147_s30 + $0x48] sm:$0xff]  ;;  %v7428_v31 = vld [vmem:[%s6147_s30 + $0x50] sm:$0xff] }
 0x1d5   : > { %v1792_v28 = vld [vmem:[#allocation2 + $0xe0] sm:$0xff]  ;;  %v4445_v56 = vrot.slane %v7428_v31, 3 }
 0x1d6   : > { %v2165_v22 = vadd.f32 %v7225_v11, %v1792_v28  ;;  %1757 = vst.msk [vmem:[#allocation2 + $0xe8] sm:$0xff] %vm319_vm4, %v1721_v2  ;;  %v3930_v11 = vsel %vm3850_vm5, %v3920_v1, %v3929_v5  ;;  %v2975_v2 = vrot.slane %v7418_v63, 2  ;;  %v3420_v28 = vrot.slane %v7421_v10, 2  ;;  %v6005_v63 = vld [vmem:[%s6147_s30 + $0x68] sm:$0xff] }
 0x1d7   : > { %5839 = vmatmul.msk.bf16.gmra.mxu0 %vm534_vm0, %v4442_v37  ;;  %v2236_v0 = vld [vmem:[#allocation2 + $0xd8] sm:$0xff]  ;;  %v1677_v30 = vpop.f32.mrf.mxu2  ;;  %v3950_v10 = vshrl.u32 %v6005_v63, 16 }
 0x1d8   : > { %2201 = vst.msk [vmem:[#allocation2 + $0xe0] sm:$0xff] %vm319_vm4, %v2165_v22  ;;  %v2743_v60 = vadd.f32 %v7266_v41, %v2236_v0 }
 0x1d9   : > { %v1233_v32 = vpop.f32.mrf.mxu1  ;;  %5739 = vmatmul.msk.bf16.gmra.mxu3 %vm534_vm0, %v3930_v11  ;;  %v6004_v11 = vld [vmem:[%s6147_s30 + $0x60] sm:$0xff] }
 0x1da   : > { %2779 = vst.msk [vmem:[#allocation2 + $0xd8] sm:$0xff] %vm319_vm4, %v2743_v60  ;;  %v1277_v17 = vadd.f32 %v1233_v32, %v792_v15  ;;  %v7384_v4 = vpop.f32.mrf.mxu3  ;;  %v795_v60 = vld [vmem:[#allocation2 + $0x110] sm:$0xff]  ;;  %v3421_v32 = vsel %vm2959_vm6, %v3418_v24, %v3420_v28 }
 0x1db   : > { %v1348_v62 = vld [vmem:[#allocation2 + $0xf0] sm:$0xff] }
 0x1dc   : > { %v7372_v58 = vpop.f32.mrf.mxu0  ;;  %v1722_v54 = vadd.f32 %v1677_v30, %v1348_v62  ;;  %1313 = vst.msk [vmem:[#allocation2 + $0xf8] sm:$0xff] %vm319_vm4, %v1277_v17 }
 0x1dd   : > { %v1793_v41 = vld [vmem:[#allocation2 + $0xe8] sm:$0xff] }
 0x1de   : > { %v2166_v38 = vadd.f32 %v7254_v19, %v1793_v41  ;;  %1758 = vst.msk [vmem:[#allocation2 + $0xf0] sm:$0xff] %vm319_vm4, %v1722_v54  ;;  %v2974_v19 = vsel %vm2959_vm6, %v2971_v6, %v2973_v21  ;;  %v3941_v54 = vshrl.u32 %v6004_v11, 16  ;;  %v3944_v41 = vshll.u32 %v6004_v11, 16 }
 0x1df   : > { %v2237_v44 = vld [vmem:[#allocation2 + $0xe0] sm:$0xff]  ;;  %v1679_v14 = vpop.f32.mrf.mxu2 }
 0x1e0   : > { %2202 = vst.msk [vmem:[#allocation2 + $0xe8] sm:$0xff] %vm319_vm4, %v2166_v38  ;;  %v2744_v1 = vadd.f32 %v7294_v50, %v2237_v44  ;;  %v4444_v50 = vsel %vm4429_vm7, %v4441_v26, %v4443_v40  ;;  %v3943_v24 = vrot.slane %v3941_v54, 2  ;;  %v3946_v38 = vrot.slane %v3944_v41, 3 }
 0x1e1   : > { %v1236_v34 = vpop.f32.mrf.mxu1 }
 0x1e2   : > { %2780 = vst.msk [vmem:[#allocation2 + $0xe0] sm:$0xff] %vm319_vm4, %v2744_v1  ;;  %v1278_v29 = vadd.f32 %v1236_v34, %v793_v48  ;;  %v7413_v26 = vpop.f32.mrf.mxu3  ;;  %v7468_v1 = vor.u32 %v3946_v38, %v3943_v24  ;;  %v796_v34 = vld [vmem:[#allocation2 + $0x118] sm:$0xff] }
 0x1e3   : > { %v1349_v53 = vld [vmem:[#allocation2 + $0xf8] sm:$0xff] }
 0x1e4   : > { %v7400_v3 = vpop.f32.mrf.mxu0  ;;  %v1723_v6 = vadd.f32 %v1679_v14, %v1349_v53  ;;  %1314 = vst.msk [vmem:[#allocation2 + $0x100] sm:$0xff] %vm319_vm4, %v1278_v29  ;;  %5534 = vmatmul.msk.bf16.gmra.mxu1 %vm534_vm0, %v2974_v19  ;;  %5636 = vmatmul.msk.bf16.gmra.mxu2 %vm534_vm0, %v3419_v8  ;;  %v7473_v8 = vld [vmem:[%s6147_s30 + $0x50] sm:$0xff]  ;;  %v7484_v53 = vld [vmem:[%s6147_s30 + $0x58] sm:$0xff] }
 0x1e5   : > { %v1794_v25 = vld [vmem:[#allocation2 + $0xf0] sm:$0xff]  ;;  %v4447_v46 = vrot.slane %v7484_v53, 3 }
 0x1e6   : > { %v2167_v18 = vadd.f32 %v7278_v55, %v1794_v25  ;;  %1759 = vst.msk [vmem:[#allocation2 + $0xf8] sm:$0xff] %vm319_vm4, %v1723_v6  ;;  %v3939_v55 = vsel %vm3850_vm5, %v3929_v5, %v3938_v59  ;;  %v2977_v6 = vrot.slane %v7473_v8, 2  ;;  %v3422_v25 = vrot.slane %v7476_v36, 2  ;;  %v6006_v8 = vld [vmem:[%s6147_s30 + $0x70] sm:$0xff] }
 0x1e7   : > { %5840 = vmatmul.msk.bf16.gmra.mxu0 %vm534_vm0, %v4444_v50  ;;  %v2238_v45 = vld [vmem:[#allocation2 + $0xe8] sm:$0xff]  ;;  %v1682_v49 = vpop.f32.mrf.mxu2 }
 0x1e8   : > { %2203 = vst.msk [vmem:[#allocation2 + $0xf0] sm:$0xff] %vm319_vm4, %v2167_v18  ;;  %v2745_v9 = vadd.f32 %v7319_v16, %v2238_v45 }
 0x1e9   : > { %v1238_v35 = vpop.f32.mrf.mxu1  ;;  %5740 = vmatmul.msk.bf16.gmra.mxu3 %vm534_vm0, %v3939_v55 }
 0x1ea   : > { %2781 = vst.msk [vmem:[#allocation2 + $0xe8] sm:$0xff] %vm319_vm4, %v2745_v9  ;;  %v1279_v27 = vadd.f32 %v1238_v35, %v794_v7  ;;  %v2788_v9 = vld [vmem:[#allocation2] sm:$0xff]  ;;  %v3423_v35 = vsel %vm2959_vm6, %v3420_v28, %v3422_v25  ;;  %v3952_v28 = vrot.slane %v3950_v10, 2 }
 0x1eb   : > { %v1350_v20 = vld [vmem:[#allocation2 + $0x100] sm:$0xff] }
 0x1ec   : > { %v7425_v37 = vpop.f32.mrf.mxu0  ;;  %v1724_v61 = vadd.f32 %v1682_v49, %v1350_v20  ;;  %1315 = vst.msk [vmem:[#allocation2 + $0x108] sm:$0xff] %vm319_vm4, %v1279_v27  ;;  %v7437_v30 = vpop.f32.mrf.mxu3 }
 0x1ed   : > { %v1795_v16 = vld [vmem:[#allocation2 + $0xf8] sm:$0xff] }
 0x1ee   : > { %v2168_v52 = vadd.f32 %v7307_v51, %v1795_v16  ;;  %1760 = vst.msk [vmem:[#allocation2 + $0x100] sm:$0xff] %vm319_vm4, %v1724_v61  ;;  %v2976_v51 = vsel %vm2959_vm6, %v2973_v21, %v2975_v2  ;;  %v3953_v16 = vshll.u32 %v6005_v63, 16  ;;  %v7593_v63 = vld [vmem:[%s6147_s30 + $0x68] sm:$0xff] }
 0x1ef   : > { %v2239_v22 = vld [vmem:[#allocation2 + $0xf0] sm:$0xff]  ;;  %v1684_v0 = vpop.f32.mrf.mxu2 }
 0x1f0   : > { %2204 = vst.msk [vmem:[#allocation2 + $0xf8] sm:$0xff] %vm319_vm4, %v2168_v52  ;;  %v2746_v5 = vadd.f32 %v7347_v43, %v2239_v22  ;;  %v4446_v43 = vsel %vm4429_vm7, %v4443_v40, %v4445_v56  ;;  %v3955_v52 = vrot.slane %v3953_v16, 3 }
 0x1f1   : > { %v1241_v15 = vpop.f32.mrf.mxu1 }
 0x1f2   : > { %2782 = vst.msk [vmem:[#allocation2 + $0xf0] sm:$0xff] %vm319_vm4, %v2746_v5  ;;  %v1280_v17 = vadd.f32 %v1241_v15, %v795_v60  ;;  %v7526_v60 = vor.u32 %v3955_v52, %v3952_v28  ;;  %v2789_v15 = vld [vmem:[#allocation2 + $0x8] sm:$0xff]  ;;  %v4451_v28 = vrot.slane %v7593_v63, 3 }
 0x1f3   : > { %v1351_v47 = vld [vmem:[#allocation2 + $0x108] sm:$0xff] }
 0x1f4   : > { %v7453_v62 = vpop.f32.mrf.mxu0  ;;  %v1725_v21 = vadd.f32 %v1684_v0, %v1351_v47  ;;  %1316 = vst.msk [vmem:[#allocation2 + $0x110] sm:$0xff] %vm319_vm4, %v1280_v17  ;;  %5535 = vmatmul.msk.bf16.gmra.mxu1 %vm534_vm0, %v2976_v51  ;;  %5637 = vmatmul.msk.bf16.gmra.mxu2 %vm534_vm0, %v3421_v32  ;;  %v7466_v14 = vpop.f32.mrf.mxu3  ;;  %v7529_v32 = vld [vmem:[%s6147_s30 + $0x58] sm:$0xff]  ;;  %v7541_v47 = vld [vmem:[%s6147_s30 + $0x60] sm:$0xff] }
 0x1f5   : > { %v1796_v12 = vld [vmem:[#allocation2 + $0x100] sm:$0xff]  ;;  %v4449_v38 = vrot.slane %v7541_v47, 3 }
 0x1f6   : > { %v2169_v57 = vadd.f32 %v7331_v39, %v1796_v12  ;;  %1761 = vst.msk [vmem:[#allocation2 + $0x108] sm:$0xff] %vm319_vm4, %v1725_v21  ;;  %v3948_v39 = vsel %vm3850_vm5, %v3938_v59, %v7468_v1  ;;  %v2979_v21 = vrot.slane %v7529_v32, 2  ;;  %v6007_v32 = vld [vmem:[%s6147_s30 + $0x78] sm:$0xff] }
 0x1f7   : > { %5841 = vmatmul.msk.bf16.gmra.mxu0 %vm534_vm0, %v4446_v43  ;;  %v2240_v40 = vld [vmem:[#allocation2 + $0xf8] sm:$0xff]  ;;  %v1687_v44 = vpop.f32.mrf.mxu2  ;;  %v3957_v43 = vsel %vm3850_vm5, %v7468_v1, %v7526_v60 }
 0x1f8   : > { %2205 = vst.msk [vmem:[#allocation2 + $0x100] sm:$0xff] %vm319_vm4, %v2169_v57  ;;  %v2747_v48 = vadd.f32 %v7372_v58, %v2240_v40 }
 0x1f9   : > { %v1243_v19 = vpop.f32.mrf.mxu1  ;;  %5741 = vmatmul.msk.bf16.gmra.mxu3 %vm534_vm0, %v3948_v39 }
 0x1fa   : > { %2783 = vst.msk [vmem:[#allocation2 + $0xf8] sm:$0xff] %vm319_vm4, %v2747_v48  ;;  %v1281_v29 = vadd.f32 %v1243_v19, %v796_v34  ;;  %v2790_v48 = vld [vmem:[#allocation2 + $0x10] sm:$0xff] }
 0x1fb   : > { %v1352_v23 = vld [vmem:[#allocation2 + $0x110] sm:$0xff] }
 0x1fc   : > { %v7481_v50 = vpop.f32.mrf.mxu0  ;;  %v1726_v33 = vadd.f32 %v1687_v44, %v1352_v23  ;;  %1317 = vst.msk [vmem:[#allocation2 + $0x118] sm:$0xff] %vm319_vm4, %v1281_v29  ;;  %v7493_v49 = vpop.f32.mrf.mxu3 }
 0x1fd   : > { %v1797_v58 = vld [vmem:[#allocation2 + $0x108] sm:$0xff] }
 0x1fe   : > { %v2170_v13 = vadd.f32 %v7360_v42, %v1797_v58  ;;  %1762 = vst.msk [vmem:[#allocation2 + $0x110] sm:$0xff] %vm319_vm4, %v1726_v33  ;;  %v2978_v42 = vsel %vm2959_vm6, %v2975_v2, %v2977_v6  ;;  %v3959_v58 = vshrl.u32 %v6006_v8, 16 }
 0x1ff   : > { %v2241_v18 = vld [vmem:[#allocation2 + $0x100] sm:$0xff]  ;;  %v1689_v45 = vpop.f32.mrf.mxu2 }
 0x200   : > { %2206 = vst.msk [vmem:[#allocation2 + $0x108] sm:$0xff] %vm319_vm4, %v2170_v13  ;;  %v2748_v59 = vadd.f32 %v7400_v3, %v2241_v18  ;;  %v4448_v3 = vsel %vm4429_vm7, %v4445_v56, %v4447_v46  ;;  %v3961_v18 = vrot.slane %v3959_v58, 2 }
 0x201   : > { %v3072_v7 = vpop.f32.mrf.mxu1 }
 0x202   : > { %2784 = vst.msk [vmem:[#allocation2 + $0x100] sm:$0xff] %vm319_vm4, %v2748_v59  ;;  %v3162_v55 = vadd.f32 %v3072_v7, %v2788_v9  ;;  %v2791_v9 = vld [vmem:[#allocation2 + $0x18] sm:$0xff] }
 0x203   : > { %v1353_v20 = vld [vmem:[#allocation2 + $0x118] sm:$0xff] }
 0x204   : > { %v7508_v27 = vpop.f32.mrf.mxu0  ;;  %v1727_v61 = vadd.f32 %v1689_v45, %v1353_v20  ;;  %3198 = vst.msk [vmem:[#allocation2] sm:$0xff] %vm319_vm4, %v3162_v55  ;;  %5536 = vmatmul.msk.bf16.gmra.mxu1 %vm534_vm0, %v2978_v42  ;;  %5638 = vmatmul.msk.bf16.gmra.mxu2 %vm534_vm0, %v3423_v35  ;;  %v7522_v0 = vpop.f32.mrf.mxu3  ;;  %v7584_v42 = vld [vmem:[%s6147_s30 + $0x60] sm:$0xff]  ;;  %v7587_v35 = vld [vmem:[%s6147_s30 + $0x68] sm:$0xff] }
 0x205   : > { %v1798_v2 = vld [vmem:[#allocation2 + $0x110] sm:$0xff]  ;;  %v2981_v16 = vrot.slane %v7584_v42, 2 }
 0x206   : > { %v2171_v31 = vadd.f32 %v7384_v4, %v1798_v2  ;;  %1763 = vst.msk [vmem:[#allocation2 + $0x118] sm:$0xff] %vm319_vm4, %v1727_v61  ;;  %v7532_v4 = vld [vmem:[%s6147_s30 + $0x60] sm:$0xff]  ;;  %v3426_v2 = vrot.slane %v7587_v35, 2 }
 0x207   : > { %5842 = vmatmul.msk.bf16.gmra.mxu0 %vm534_vm0, %v4448_v3  ;;  %v2242_v56 = vld [vmem:[#allocation2 + $0x108] sm:$0xff]  ;;  %v3517_v22 = vpop.f32.mrf.mxu2  ;;  %v3424_v12 = vrot.slane %v7532_v4, 2 }
 0x208   : > { %2207 = vst.msk [vmem:[#allocation2 + $0x110] sm:$0xff] %vm319_vm4, %v2171_v31  ;;  %v2749_v5 = vadd.f32 %v7425_v37, %v2242_v56 }
 0x209   : > { %v3074_v51 = vpop.f32.mrf.mxu1  ;;  %5742 = vmatmul.msk.bf16.gmra.mxu3 %vm534_vm0, %v3957_v43  ;;  %v3425_v19 = vsel %vm2959_vm6, %v3422_v25, %v3424_v12 }
 0x20a   : > { %2785 = vst.msk [vmem:[#allocation2 + $0x108] sm:$0xff] %vm319_vm4, %v2749_v5  ;;  %v3163_v11 = vadd.f32 %v3074_v51, %v2789_v15  ;;  %v3427_v51 = vsel %vm2959_vm6, %v3424_v12, %v3426_v2 }
 0x20b   : > { %v3234_v37 = vld [vmem:[#allocation2] sm:$0xff] }
 0x20c   : > { %v7535_v17 = vpop.f32.mrf.mxu0  ;;  %v3607_v54 = vadd.f32 %v3517_v22, %v3234_v37  ;;  %3199 = vst.msk [vmem:[#allocation2 + $0x8] sm:$0xff] %vm319_vm4, %v3163_v11  ;;  %v7550_v44 = vpop.f32.mrf.mxu3 }
 0x20d   : > { %v1799_v41 = vld [vmem:[#allocation2 + $0x118] sm:$0xff] }
 0x20e   : > { %v2172_v24 = vadd.f32 %v7413_v26, %v1799_v41  ;;  %3643 = vst.msk [vmem:[#allocation2] sm:$0xff] %vm319_vm4, %v3607_v54  ;;  %v2980_v26 = vsel %vm2959_vm6, %v2977_v6, %v2979_v21  ;;  %v3962_v6 = vshll.u32 %v6006_v8, 16  ;;  %v3968_v41 = vshrl.u32 %v6007_v32, 16 }
 0x20f   : > { %v2243_v57 = vld [vmem:[#allocation2 + $0x110] sm:$0xff]  ;;  %v3519_v40 = vpop.f32.mrf.mxu2 }
 0x210   : > { %2208 = vst.msk [vmem:[#allocation2 + $0x118] sm:$0xff] %vm319_vm4, %v2172_v24  ;;  %v2750_v1 = vadd.f32 %v7453_v62, %v2243_v57  ;;  %v4450_v62 = vsel %vm4429_vm7, %v4447_v46, %v4449_v38  ;;  %v3964_v45 = vrot.slane %v3962_v6, 3  ;;  %v3970_v57 = vrot.slane %v3968_v41, 2 }
 0x211   : > { %v3077_v34 = vpop.f32.mrf.mxu1 }
 0x212   : > { %2786 = vst.msk [vmem:[#allocation2 + $0x110] sm:$0xff] %vm319_vm4, %v2750_v1  ;;  %v3164_v39 = vadd.f32 %v3077_v34, %v2790_v48  ;;  %v2793_v48 = vld [vmem:[#allocation2 + $0x28] sm:$0xff] }
 0x213   : > { %v3235_v23 = vld [vmem:[#allocation2 + $0x8] sm:$0xff] }
 0x214   : > { %v7565_v29 = vpop.f32.mrf.mxu0  ;;  %v3608_v33 = vadd.f32 %v3519_v40, %v3235_v23  ;;  %3200 = vst.msk [vmem:[#allocation2 + $0x10] sm:$0xff] %vm319_vm4, %v3164_v39  ;;  %5537 = vmatmul.msk.bf16.gmra.mxu1 %vm534_vm0, %v2980_v26  ;;  %5639 = vmatmul.msk.bf16.gmra.mxu2 %vm534_vm0, %v3425_v19  ;;  %v7579_v46 = vpop.f32.mrf.mxu3  ;;  %v7645_v26 = vld [vmem:[%s6147_s30 + $0x68] sm:$0xff]  ;;  %v7648_v19 = vld [vmem:[%s6147_s30 + $0x70] sm:$0xff] }
 0x215   : > { %v3679_v36 = vld [vmem:[#allocation2] sm:$0xff]  ;;  %v7656_v23 = vld [vmem:[%s6147_s30 + $0x70] sm:$0xff] }
 0x216   : > { %v4186_v53 = vadd.f32 %v7437_v30, %v3679_v36  ;;  %3644 = vst.msk [vmem:[#allocation2 + $0x8] sm:$0xff] %vm319_vm4, %v3608_v33  ;;  %v3965_v30 = vor.u32 %v3964_v45, %v3961_v18  ;;  %v4453_v18 = vrot.slane %v7656_v23, 3 }
 0x217   : > { %5843 = vmatmul.msk.bf16.gmra.mxu0 %vm534_vm0, %v4450_v62  ;;  %v2244_v25 = vld [vmem:[#allocation2 + $0x118] sm:$0xff]  ;;  %v3522_v13 = vpop.f32.mrf.mxu2 }
 0x218   : > { %4222 = vst.msk [vmem:[#allocation2] sm:$0xff] %vm319_vm4, %v4186_v53  ;;  %v2751_v59 = vadd.f32 %v7481_v50, %v2244_v25  ;;  %v3966_v61 = vsel %vm3850_vm5, %v7526_v60, %v3965_v30  ;;  %v2792_v60 = vld [vmem:[#allocation2 + $0x20] sm:$0xff]  ;;  %v2983_v53 = vrot.slane %v7645_v26, 2  ;;  %v3428_v25 = vrot.slane %v7648_v19, 2 }
 0x219   : > { %v3079_v7 = vpop.f32.mrf.mxu1  ;;  %5743 = vmatmul.msk.bf16.gmra.mxu3 %vm534_vm0, %v3966_v61  ;;  %v4454_v42 = vsel %vm4429_vm7, %v4451_v28, %v4453_v18 }
 0x21a   : > { %2787 = vst.msk [vmem:[#allocation2 + $0x118] sm:$0xff] %vm319_vm4, %v2751_v59  ;;  %v3165_v55 = vadd.f32 %v3079_v7, %v2791_v9  ;;  %v3429_v61 = vsel %vm2959_vm6, %v3426_v2, %v3428_v25 }
 0x21b   : > { %v3236_v20 = vld [vmem:[#allocation2 + $0x10] sm:$0xff] }
 0x21c   : > { %v7590_v3 = vpop.f32.mrf.mxu0  ;;  %v3609_v10 = vadd.f32 %v3522_v13, %v3236_v20  ;;  %3201 = vst.msk [vmem:[#allocation2 + $0x18] sm:$0xff] %vm319_vm4, %v3165_v55  ;;  %v7604_v22 = vpop.f32.mrf.mxu3  ;;  %v2794_v55 = vld [vmem:[#allocation2 + $0x30] sm:$0xff] }
 0x21d   : > { %v3680_v50 = vld [vmem:[#allocation2 + $0x8] sm:$0xff] }
 0x21e   : > { %v4187_v31 = vadd.f32 %v7466_v14, %v3680_v50  ;;  %3645 = vst.msk [vmem:[#allocation2 + $0x10] sm:$0xff] %vm319_vm4, %v3609_v10  ;;  %v2982_v14 = vsel %vm2959_vm6, %v2979_v21, %v2981_v16  ;;  %v3971_v21 = vshll.u32 %v6007_v32, 16 }
 0x21f   : > { %v4258_v52 = vld [vmem:[#allocation2] sm:$0xff]  ;;  %v3524_v56 = vpop.f32.mrf.mxu2 }
 0x220   : > { %4223 = vst.msk [vmem:[#allocation2 + $0x8] sm:$0xff] %vm319_vm4, %v4187_v31  ;;  %v4632_v5 = vadd.f32 %v7508_v27, %v4258_v52  ;;  %v4452_v27 = vsel %vm4429_vm7, %v4449_v38, %v4451_v28  ;;  %v3973_v40 = vrot.slane %v3971_v21, 3  ;;  %v6008_v31 = vld [vmem:[%s6147_s30 + $0x80] sm:$0xff] }
 0x221   : > { %v3082_v15 = vpop.f32.mrf.mxu1  ;;  %v3977_v35 = vshrl.u32 %v6008_v31, 16  ;;  %v3980_v2 = vshll.u32 %v6008_v31, 16 }
 0x222   : > { %4668 = vst.msk [vmem:[#allocation2] sm:$0xff] %vm319_vm4, %v4632_v5  ;;  %v3166_v11 = vadd.f32 %v3082_v15, %v2792_v60  ;;  %v7650_v39 = vor.u32 %v3973_v40, %v3970_v57 }
 0x223   : > { %v3237_v37 = vld [vmem:[#allocation2 + $0x18] sm:$0xff]  ;;  %v3979_v28 = vrot.slane %v3977_v35, 2  ;;  %v3982_v5 = vrot.slane %v3980_v2, 3 }
 0x224   : > { %v7619_v43 = vpop.f32.mrf.mxu0  ;;  %v3610_v54 = vadd.f32 %v3524_v56, %v3237_v37  ;;  %3202 = vst.msk [vmem:[#allocation2 + $0x20] sm:$0xff] %vm319_vm4, %v3166_v11  ;;  %5538 = vmatmul.msk.bf16.gmra.mxu1 %vm534_vm0, %v2982_v14  ;;  %5640 = vmatmul.msk.bf16.gmra.mxu2 %vm534_vm0, %v3427_v51  ;;  %v7633_v38 = vpop.f32.mrf.mxu3  ;;  %v3975_v36 = vsel %vm3850_vm5, %v3965_v30, %v7650_v39  ;;  %v2795_v11 = vld [vmem:[#allocation2 + $0x38] sm:$0xff] }
 0x225   : > { %v3681_v4 = vld [vmem:[#allocation2 + $0x10] sm:$0xff]  ;;  %v7768_v35 = vld [vmem:[%s6147_s30 + $0x78] sm:$0xff] }
 0x226   : > { %v4188_v47 = vadd.f32 %v7493_v49, %v3681_v4  ;;  %3646 = vst.msk [vmem:[#allocation2 + $0x18] sm:$0xff] %vm319_vm4, %v3610_v54  ;;  %v7710_v54 = vld [vmem:[%s6147_s30 + $0x78] sm:$0xff] }
 0x227   : > { %5844 = vmatmul.msk.bf16.gmra.mxu0 %vm534_vm0, %v4452_v27  ;;  %v4259_v12 = vld [vmem:[#allocation2 + $0x8] sm:$0xff]  ;;  %v3527_v24 = vpop.f32.mrf.mxu2  ;;  %v7704_v27 = vor.u32 %v3982_v5, %v3979_v28  ;;  %v3430_v40 = vrot.slane %v7710_v54, 2  ;;  %v7779_v28 = vld [vmem:[%s6147_s30 + $0x80] sm:$0xff] }
 0x228   : > { %4224 = vst.msk [vmem:[#allocation2 + $0x10] sm:$0xff] %vm319_vm4, %v4188_v47  ;;  %v4633_v1 = vadd.f32 %v7535_v17, %v4259_v12 }
 0x229   : > { %v4707_v49 = vld [vmem:[#allocation2] sm:$0xff]  ;;  %v3084_v34 = vpop.f32.mrf.mxu1  ;;  %5744 = vmatmul.msk.bf16.gmra.mxu3 %vm534_vm0, %v3975_v36  ;;  %v3984_v47 = vsel %vm3850_vm5, %v7650_v39, %v7704_v27 }
 0x22a   : > { %v4743_v62 = vmax.f32 %v4707_v49, 0.0  ;;  %4669 = vst.msk [vmem:[#allocation2 + $0x8] sm:$0xff] %vm319_vm4, %v4633_v1  ;;  %v3167_v17 = vadd.f32 %v3084_v34, %v2793_v48  ;;  %v2796_v36 = vld [vmem:[#allocation2 + $0x40] sm:$0xff] }
 0x22b   : > { %v3238_v33 = vld [vmem:[#allocation2 + $0x20] sm:$0xff] }
 0x22c   : > { %v7653_v8 = vpop.f32.mrf.mxu0  ;;  %4779 = vst.msk [vmem:[%s7642_s19] sm:$0xff] %vm319_vm4, %v4743_v62  ;;  %v3611_v58 = vadd.f32 %v3527_v24, %v3238_v33  ;;  %v7669_v9 = vpop.f32.mrf.mxu3 }
 0x22d   : > { %v3682_v6 = vld [vmem:[#allocation2 + $0x18] sm:$0xff]  ;;  %3203 = vst.msk [vmem:[#allocation2 + $0x28] sm:$0xff] %vm319_vm4, %v3167_v17 }
 0x22e   : > { %v4189_v13 = vadd.f32 %v7522_v0, %v3682_v6  ;;  %3647 = vst.msk [vmem:[#allocation2 + $0x20] sm:$0xff] %vm319_vm4, %v3611_v58  ;;  %v2984_v0 = vsel %vm2959_vm6, %v2981_v16, %v2983_v53  ;;  %v3431_v6 = vsel %vm2959_vm6, %v3428_v25, %v3430_v40 }
 0x22f   : > { %v4260_v45 = vld [vmem:[#allocation2 + $0x10] sm:$0xff]  ;;  %v3529_v59 = vpop.f32.mrf.mxu2 }
 0x230   : > { %4225 = vst.msk [vmem:[#allocation2 + $0x18] sm:$0xff] %vm319_vm4, %v4189_v13  ;;  %v4634_v7 = vadd.f32 %v7565_v29, %v4260_v45 }
 0x231   : > { %v4708_v30 = vld [vmem:[#allocation2 + $0x8] sm:$0xff]  ;;  %v3087_v20 = vpop.f32.mrf.mxu1 }
 0x232   : > { %v4744_v10 = vmax.f32 %v4708_v30, 0.0  ;;  %4670 = vst.msk [vmem:[#allocation2 + $0x10] sm:$0xff] %vm319_vm4, %v4634_v7  ;;  %v3168_v50 = vadd.f32 %v3087_v20, %v2794_v55 }
 0x234   : > { %v7684_v29 = vpop.f32.mrf.mxu0  ;;  %4780 = vst.msk [vmem:[%s7642_s19 + $0x8] sm:$0xff] %vm319_vm4, %v4744_v10  ;;  %v3239_v16 = vld [vmem:[#allocation2 + $0x28] sm:$0xff]  ;;  %5539 = vmatmul.msk.bf16.gmra.mxu1 %vm534_vm0, %v2984_v0  ;;  %5641 = vmatmul.msk.bf16.gmra.mxu2 %vm534_vm0, %v3429_v61  ;;  %v7700_v14 = vpop.f32.mrf.mxu3 }
 0x235   : > { %v3683_v52 = vld [vmem:[#allocation2 + $0x20] sm:$0xff]  ;;  %v3612_v56 = vadd.f32 %v3529_v59, %v3239_v16  ;;  %3204 = vst.msk [vmem:[#allocation2 + $0x30] sm:$0xff] %vm319_vm4, %v3168_v50  ;;  %v6009_v59 = vld [vmem:[%s6147_s30 + $0x88] sm:$0xff] }
 0x236   : > { %v4190_v63 = vadd.f32 %v7550_v44, %v3683_v52  ;;  %v7707_v44 = vld [vmem:[%s6147_s30 + $0x70] sm:$0xff]  ;;  %v3986_v19 = vshrl.u32 %v6009_v59, 16  ;;  %v3989_v25 = vshll.u32 %v6009_v59, 16  ;;  %v2797_v10 = vld [vmem:[#allocation2 + $0x48] sm:$0xff] }
 0x237   : > { %5845 = vmatmul.msk.bf16.gmra.mxu0 %vm534_vm0, %v4454_v42  ;;  %3648 = vst.msk [vmem:[#allocation2 + $0x28] sm:$0xff] %vm319_vm4, %v3612_v56  ;;  %v4261_v60 = vld [vmem:[#allocation2 + $0x18] sm:$0xff]  ;;  %v3532_v15 = vpop.f32.mrf.mxu2  ;;  %v2985_v57 = vrot.slane %v7707_v44, 2  ;;  %v6010_v44 = vld [vmem:[%s6147_s30 + $0x90] sm:$0xff] }
 0x238   : > { %4226 = vst.msk [vmem:[#allocation2 + $0x20] sm:$0xff] %vm319_vm4, %v4190_v63  ;;  %v4635_v51 = vadd.f32 %v7590_v3, %v4261_v60  ;;  %v7719_v3 = vld [vmem:[%s6147_s30 + $0x78] sm:$0xff]  ;;  %v3988_v30 = vrot.slane %v3986_v19, 2  ;;  %v2987_v60 = vrot.slane %v7768_v35, 2  ;;  %v3995_v54 = vshrl.u32 %v6010_v44, 16  ;;  %v7832_v19 = vld [vmem:[%s6147_s30 + $0x88] sm:$0xff] }
 0x239   : > { %v4709_v32 = vld [vmem:[#allocation2 + $0x10] sm:$0xff]  ;;  %v3089_v37 = vpop.f32.mrf.mxu1  ;;  %5745 = vmatmul.msk.bf16.gmra.mxu3 %vm534_vm0, %v3984_v47  ;;  %v4455_v48 = vrot.slane %v7719_v3, 3 }
 0x23a   : > { %v4745_v4 = vmax.f32 %v4709_v32, 0.0  ;;  %4671 = vst.msk [vmem:[#allocation2 + $0x18] sm:$0xff] %vm319_vm4, %v4635_v51  ;;  %v3169_v41 = vadd.f32 %v3089_v37, %v2795_v11  ;;  %v4457_v11 = vrot.slane %v7779_v28, 3  ;;  %v2798_v47 = vld [vmem:[#allocation2 + $0x50] sm:$0xff] }
 0x23b   : > { %v4456_v26 = vsel %vm4429_vm7, %v4453_v18, %v4455_v48  ;;  %v3991_v18 = vrot.slane %v3989_v25, 3 }
 0x23c   : > { %v7713_v21 = vpop.f32.mrf.mxu0  ;;  %4781 = vst.msk [vmem:[%s7642_s19 + $0x10] sm:$0xff] %vm319_vm4, %v4745_v4  ;;  %v3240_v12 = vld [vmem:[#allocation2 + $0x30] sm:$0xff]  ;;  %v7730_v62 = vpop.f32.mrf.mxu3 }
 0x23d   : > { %v3613_v24 = vadd.f32 %v3532_v15, %v3240_v12  ;;  %3205 = vst.msk [vmem:[#allocation2 + $0x38] sm:$0xff] %vm319_vm4, %v3169_v41  ;;  %v7763_v50 = vor.u32 %v3991_v18, %v3988_v30  ;;  %v7840_v30 = vld [vmem:[%s6147_s30 + $0x88] sm:$0xff] }
 0x23e   : > { %v3684_v1 = vld [vmem:[#allocation2 + $0x28] sm:$0xff] }
 0x23f   : > { %v4191_v49 = vadd.f32 %v7579_v46, %v3684_v1  ;;  %3649 = vst.msk [vmem:[#allocation2 + $0x30] sm:$0xff] %vm319_vm4, %v3613_v24  ;;  %v4262_v34 = vld [vmem:[#allocation2 + $0x20] sm:$0xff]  ;;  %v3534_v39 = vpop.f32.mrf.mxu2  ;;  %v2986_v46 = vsel %vm2959_vm6, %v2983_v53, %v2985_v57  ;;  %v3993_v63 = vsel %vm3850_vm5, %v7704_v27, %v7763_v50  ;;  %v2988_v24 = vsel %vm2959_vm6, %v2985_v57, %v2987_v60 }
 0x240   : > { %v4636_v17 = vadd.f32 %v7619_v43, %v4262_v34 }
 0x241   : > { %v4710_v33 = vld [vmem:[#allocation2 + $0x18] sm:$0xff]  ;;  %4227 = vst.msk [vmem:[#allocation2 + $0x28] sm:$0xff] %vm319_vm4, %v4191_v49  ;;  %v3092_v58 = vpop.f32.mrf.mxu1 }
 0x242   : > { %v4746_v13 = vmax.f32 %v4710_v33, 0.0  ;;  %4672 = vst.msk [vmem:[#allocation2 + $0x20] sm:$0xff] %vm319_vm4, %v4636_v17  ;;  %v3170_v43 = vadd.f32 %v3092_v58, %v2796_v36 }
 0x244   : > { %v7745_v45 = vpop.f32.mrf.mxu0  ;;  %4782 = vst.msk [vmem:[%s7642_s19 + $0x18] sm:$0xff] %vm319_vm4, %v4746_v13  ;;  %v3241_v53 = vld [vmem:[#allocation2 + $0x38] sm:$0xff]  ;;  %5540 = vmatmul.msk.bf16.gmra.mxu1 %vm534_vm0, %v2986_v46  ;;  %5642 = vmatmul.msk.bf16.gmra.mxu2 %vm534_vm0, %v3431_v6  ;;  %v7761_v0 = vpop.f32.mrf.mxu3 }
 0x245   : > { %v3614_v7 = vadd.f32 %v3534_v39, %v3241_v53  ;;  %3206 = vst.msk [vmem:[#allocation2 + $0x40] sm:$0xff] %vm319_vm4, %v3170_v43  ;;  %v7829_v53 = vld [vmem:[%s6147_s30 + $0x80] sm:$0xff] }
 0x246   : > { %v3685_v23 = vld [vmem:[#allocation2 + $0x30] sm:$0xff] }
 0x247   : > { %5846 = vmatmul.msk.bf16.gmra.mxu0 %vm534_vm0, %v4456_v26  ;;  %v4192_v55 = vadd.f32 %v7604_v22, %v3685_v23  ;;  %3650 = vst.msk [vmem:[#allocation2 + $0x38] sm:$0xff] %vm319_vm4, %v3614_v7  ;;  %v3537_v20 = vpop.f32.mrf.mxu2  ;;  %v7771_v22 = vld [vmem:[%s6147_s30 + $0x80] sm:$0xff]  ;;  %v2799_v26 = vld [vmem:[#allocation2 + $0x58] sm:$0xff] }
 0x248   : > { %v4263_v61 = vld [vmem:[#allocation2 + $0x28] sm:$0xff]  ;;  %v3432_v15 = vrot.slane %v7771_v22, 2 }
 0x249   : > { %v4711_v42 = vld [vmem:[#allocation2 + $0x20] sm:$0xff]  ;;  %4228 = vst.msk [vmem:[#allocation2 + $0x30] sm:$0xff] %vm319_vm4, %v4192_v55  ;;  %v4637_v31 = vadd.f32 %v7653_v8, %v4263_v61  ;;  %v3094_v16 = vpop.f32.mrf.mxu1  ;;  %5746 = vmatmul.msk.bf16.gmra.mxu3 %vm534_vm0, %v3993_v63  ;;  %v3434_v61 = vrot.slane %v7832_v19, 2 }
 0x24a   : > { %v4747_v2 = vmax.f32 %v4711_v42, 0.0  ;;  %v3171_v52 = vadd.f32 %v3094_v16, %v2797_v10  ;;  %v2800_v63 = vld [vmem:[#allocation2 + $0x60] sm:$0xff] }
 0x24b   : > { %4673 = vst.msk [vmem:[#allocation2 + $0x28] sm:$0xff] %vm319_vm4, %v4637_v31 }
 0x24c   : > { %v7773_v56 = vpop.f32.mrf.mxu0  ;;  %4783 = vst.msk [vmem:[%s7642_s19 + $0x20] sm:$0xff] %vm319_vm4, %v4747_v2  ;;  %v3242_v8 = vld [vmem:[#allocation2 + $0x40] sm:$0xff]  ;;  %v7791_v37 = vpop.f32.mrf.mxu3 }
 0x24d   : > { %v3615_v5 = vadd.f32 %v3537_v20, %v3242_v8  ;;  %3207 = vst.msk [vmem:[#allocation2 + $0x48] sm:$0xff] %vm319_vm4, %v3171_v52  ;;  %v2989_v20 = vrot.slane %v7829_v53, 2 }
 0x24e   : > { %v3686_v51 = vld [vmem:[#allocation2 + $0x38] sm:$0xff] }
 0x24f   : > { %v4193_v27 = vadd.f32 %v7633_v38, %v3686_v51  ;;  %3651 = vst.msk [vmem:[#allocation2 + $0x40] sm:$0xff] %vm319_vm4, %v3615_v5  ;;  %v3539_v32 = vpop.f32.mrf.mxu2  ;;  %v3433_v38 = vsel %vm2959_vm6, %v3430_v40, %v3432_v15  ;;  %v3998_v40 = vshll.u32 %v6010_v44, 16  ;;  %v2990_v5 = vsel %vm2959_vm6, %v2987_v60, %v2989_v20 }
 0x250   : > { %v4264_v4 = vld [vmem:[#allocation2 + $0x30] sm:$0xff] }
 0x251   : > { %4229 = vst.msk [vmem:[#allocation2 + $0x38] sm:$0xff] %vm319_vm4, %v4193_v27  ;;  %v4638_v41 = vadd.f32 %v7684_v29, %v4264_v4  ;;  %v3097_v12 = vpop.f32.mrf.mxu1  ;;  %v4458_v29 = vsel %vm4429_vm7, %v4455_v48, %v4457_v11  ;;  %v3997_v48 = vrot.slane %v3995_v54, 2  ;;  %v4000_v33 = vrot.slane %v3998_v40, 3  ;;  %v6011_v4 = vld [vmem:[%s6147_s30 + $0x98] sm:$0xff] }
 0x252   : > { %v4712_v1 = vld [vmem:[#allocation2 + $0x28] sm:$0xff]  ;;  %v3172_v49 = vadd.f32 %v3097_v12, %v2798_v47  ;;  %v4004_v28 = vshrl.u32 %v6011_v4, 16 }
 0x253   : > { %v4748_v39 = vmax.f32 %v4712_v1, 0.0  ;;  %4674 = vst.msk [vmem:[#allocation2 + $0x30] sm:$0xff] %vm319_vm4, %v4638_v41  ;;  %v7824_v13 = vor.u32 %v4000_v33, %v3997_v48 }
 0x254   : > { %v7805_v34 = vpop.f32.mrf.mxu0  ;;  %v3243_v57 = vld [vmem:[#allocation2 + $0x48] sm:$0xff]  ;;  %3208 = vst.msk [vmem:[#allocation2 + $0x50] sm:$0xff] %vm319_vm4, %v3172_v49  ;;  %5541 = vmatmul.msk.bf16.gmra.mxu1 %vm534_vm0, %v2988_v24  ;;  %5643 = vmatmul.msk.bf16.gmra.mxu2 %vm534_vm0, %v3433_v38  ;;  %v7822_v46 = vpop.f32.mrf.mxu3  ;;  %v4006_v24 = vrot.slane %v4004_v28, 2 }
 0x255   : > { %4784 = vst.msk [vmem:[%s7642_s19 + $0x28] sm:$0xff] %vm319_vm4, %v4748_v39  ;;  %v3616_v17 = vadd.f32 %v3539_v32, %v3243_v57  ;;  %v4002_v23 = vsel %vm3850_vm5, %v7763_v50, %v7824_v13  ;;  %v4459_v50 = vrot.slane %v7840_v30, 3  ;;  %v7888_v39 = vld [vmem:[%s6147_s30 + $0x88] sm:$0xff]  ;;  %v7891_v57 = vld [vmem:[%s6147_s30 + $0x90] sm:$0xff] }
 0x256   : > { %v3687_v3 = vld [vmem:[#allocation2 + $0x40] sm:$0xff] }
 0x257   : > { %5847 = vmatmul.msk.bf16.gmra.mxu0 %vm534_vm0, %v4458_v29  ;;  %v4194_v36 = vadd.f32 %v7669_v9, %v3687_v3  ;;  %3652 = vst.msk [vmem:[#allocation2 + $0x48] sm:$0xff] %vm319_vm4, %v3616_v17  ;;  %v3542_v58 = vpop.f32.mrf.mxu2  ;;  %v2801_v29 = vld [vmem:[#allocation2 + $0x68] sm:$0xff]  ;;  %v7898_v3 = vld [vmem:[%s6147_s30 + $0x90] sm:$0xff] }
 0x258   : > { %v4265_v6 = vld [vmem:[#allocation2 + $0x38] sm:$0xff] }
 0x259   : > { %4230 = vst.msk [vmem:[#allocation2 + $0x40] sm:$0xff] %vm319_vm4, %v4194_v36  ;;  %v4639_v43 = vadd.f32 %v7713_v21, %v4265_v6  ;;  %v3099_v59 = vpop.f32.mrf.mxu1  ;;  %5747 = vmatmul.msk.bf16.gmra.mxu3 %vm534_vm0, %v4002_v23  ;;  %v2991_v6 = vrot.slane %v7888_v39, 2  ;;  %v3751_v23 = vld [vmem:[%s6147_s30 + $0xa0] sm:$0x7] }
 0x25a   : > { %v4713_v9 = vld [vmem:[#allocation2 + $0x30] sm:$0xff]  ;;  %v3173_v25 = vadd.f32 %v3099_v59, %v2799_v26  ;;  %v4461_v59 = vrot.slane %v7898_v3, 3 }
 0x25b   : > { %v4749_v18 = vmax.f32 %v4713_v9, 0.0  ;;  %4675 = vst.msk [vmem:[#allocation2 + $0x38] sm:$0xff] %vm319_vm4, %v4639_v43  ;;  %v3244_v21 = vld [vmem:[#allocation2 + $0x50] sm:$0xff]  ;;  %v3436_v43 = vrot.slane %v7891_v57, 2 }
 0x25c   : > { %v7834_v7 = vpop.f32.mrf.mxu0  ;;  %v3617_v55 = vadd.f32 %v3542_v58, %v3244_v21  ;;  %3209 = vst.msk [vmem:[#allocation2 + $0x58] sm:$0xff] %vm319_vm4, %v3173_v25  ;;  %v7852_v16 = vpop.f32.mrf.mxu3  ;;  %v3830_v21 = vunpack.c.l.b16 %v3751_v23  ;;  %v4462_v53 = vsel %vm4429_vm7, %v4459_v50, %v4461_v59  ;;  %v3306_v23 = vld [vmem:[%s6147_s30 + $0xa0] sm:$0x3] }
 0x25d   : > { %4785 = vst.msk [vmem:[%s7642_s19 + $0x30] sm:$0xff] %vm319_vm4, %v4749_v18 }
 0x25e   : > { %v3688_v10 = vld [vmem:[#allocation2 + $0x48] sm:$0xff]  ;;  %3653 = vst.msk [vmem:[#allocation2 + $0x50] sm:$0xff] %vm319_vm4, %v3617_v55  ;;  %v2802_v55 = vld [vmem:[#allocation2 + $0x70] sm:$0xff] }
 0x25f   : > { %v4195_v42 = vadd.f32 %v7700_v14, %v3688_v10  ;;  %v3544_v31 = vpop.f32.mrf.mxu2  ;;  %v3435_v14 = vsel %vm2959_vm6, %v3432_v15, %v3434_v61  ;;  %v4007_v15 = vshll.u32 %v6011_v4, 16  ;;  %v2803_v4 = vld [vmem:[#allocation2 + $0x78] sm:$0xff] }
 0x260   : > { %v4266_v2 = vld [vmem:[#allocation2 + $0x40] sm:$0xff] }
 0x261   : > { %4231 = vst.msk [vmem:[#allocation2 + $0x48] sm:$0xff] %vm319_vm4, %v4195_v42  ;;  %v4640_v52 = vadd.f32 %v7745_v45, %v4266_v2  ;;  %v3102_v8 = vpop.f32.mrf.mxu1  ;;  %v4460_v45 = vsel %vm4429_vm7, %v4457_v11, %v4459_v50  ;;  %v4009_v38 = vrot.slane %v4007_v15, 3  ;;  %v3437_v42 = vsel %vm2959_vm6, %v3434_v61, %v3436_v43 }
 0x262   : > { %v4714_v51 = vld [vmem:[#allocation2 + $0x38] sm:$0xff]  ;;  %v3174_v27 = vadd.f32 %v3102_v8, %v2800_v63 }
 0x263   : > { %v4750_v35 = vmax.f32 %v4714_v51, 0.0  ;;  %4676 = vst.msk [vmem:[#allocation2 + $0x40] sm:$0xff] %vm319_vm4, %v4640_v52  ;;  %v3245_v60 = vld [vmem:[#allocation2 + $0x58] sm:$0xff]  ;;  %v3849_v52 = vpack.c.b16 %v3830_v21, %v3830_v21  ;;  %v4330_v21 = vld [vmem:[%s6147_s30 + $0xa0] sm:$0x7] }
 0x264   : > { %v7866_v32 = vpop.f32.mrf.mxu0  ;;  %v3618_v41 = vadd.f32 %v3544_v31, %v3245_v60  ;;  %3210 = vst.msk [vmem:[#allocation2 + $0x60] sm:$0xff] %vm319_vm4, %v3174_v27  ;;  %5542 = vmatmul.msk.bf16.gmra.mxu1 %vm534_vm0, %v2990_v5  ;;  %5644 = vmatmul.msk.bf16.gmra.mxu2 %vm534_vm0, %v3435_v14  ;;  %v7883_v12 = vpop.f32.mrf.mxu3 }
 0x265   : > { %4786 = vst.msk [vmem:[%s7642_s19 + $0x38] sm:$0xff] %vm319_vm4, %v4750_v35  ;;  %v3689_v22 = vld [vmem:[#allocation2 + $0x50] sm:$0xff]  ;;  %v4013_v30 = vshrl.u32 %v3849_v52, 16  ;;  %v4016_v61 = vshll.u32 %v3849_v52, 16  ;;  %v2805_v52 = vld [vmem:[#allocation2 + $0x88] sm:$0xff] }
 0x266   : > { %v4196_v11 = vadd.f32 %v7730_v62, %v3689_v22  ;;  %3654 = vst.msk [vmem:[#allocation2 + $0x58] sm:$0xff] %vm319_vm4, %v3618_v41  ;;  %v7893_v62 = vor.u32 %v4009_v38, %v4006_v24  ;;  %v7947_v41 = vld [vmem:[%s6147_s30 + $0x90] sm:$0xff]  ;;  %v7950_v22 = vld [vmem:[%s6147_s30 + $0x98] sm:$0xff] }
 0x267   : > { %5848 = vmatmul.msk.bf16.gmra.mxu0 %vm534_vm0, %v4460_v45  ;;  %v3547_v47 = vpop.f32.mrf.mxu2  ;;  %v4015_v51 = vrot.slane %v4013_v30, 2  ;;  %v4018_v27 = vrot.slane %v4016_v61, 3  ;;  %v7958_v24 = vld [vmem:[%s6147_s30 + $0x98] sm:$0xff] }
 0x268   : > { %4232 = vst.msk [vmem:[#allocation2 + $0x50] sm:$0xff] %vm319_vm4, %v4196_v11  ;;  %v4267_v1 = vld [vmem:[#allocation2 + $0x48] sm:$0xff]  ;;  %v4011_v33 = vsel %vm3850_vm5, %v7824_v13, %v7893_v62 }
 0x269   : > { %v4641_v49 = vadd.f32 %v7773_v56, %v4267_v1  ;;  %v3104_v44 = vpop.f32.mrf.mxu1  ;;  %5748 = vmatmul.msk.bf16.gmra.mxu3 %vm534_vm0, %v4011_v33  ;;  %v4019_v28 = vor.u32 %v4018_v27, %v4015_v51 }
 0x26a   : > { %v4715_v54 = vld [vmem:[#allocation2 + $0x40] sm:$0xff]  ;;  %v3175_v40 = vadd.f32 %v3104_v44, %v2801_v29  ;;  %v2993_v29 = vrot.slane %v7947_v41, 2  ;;  %v3438_v44 = vrot.slane %v7950_v22, 2 }
 0x26b   : > { %v4751_v48 = vmax.f32 %v4715_v54, 0.0  ;;  %4677 = vst.msk [vmem:[#allocation2 + $0x48] sm:$0xff] %vm319_vm4, %v4641_v49  ;;  %v3246_v56 = vld [vmem:[#allocation2 + $0x60] sm:$0xff] }
 0x26c   : > { %v7895_v17 = vpop.f32.mrf.mxu0  ;;  %v3619_v36 = vadd.f32 %v3547_v47, %v3246_v56  ;;  %3211 = vst.msk [vmem:[#allocation2 + $0x68] sm:$0xff] %vm319_vm4, %v3175_v40  ;;  %v7913_v25 = vpop.f32.mrf.mxu3 }
 0x26d   : > { %4787 = vst.msk [vmem:[%s7642_s19 + $0x40] sm:$0xff] %vm319_vm4, %v4751_v48  ;;  %v3690_v58 = vld [vmem:[#allocation2 + $0x58] sm:$0xff] }
 0x26e   : > { %v4197_v26 = vadd.f32 %v7761_v0, %v3690_v58  ;;  %3655 = vst.msk [vmem:[#allocation2 + $0x60] sm:$0xff] %vm319_vm4, %v3619_v36  ;;  %v2992_v0 = vsel %vm2959_vm6, %v2989_v20, %v2991_v6  ;;  %v2804_v36 = vld [vmem:[#allocation2 + $0x80] sm:$0xff] }
 0x26f   : > { %v4268_v9 = vld [vmem:[#allocation2 + $0x50] sm:$0xff]  ;;  %v3549_v13 = vpop.f32.mrf.mxu2 }
 0x270   : > { %4233 = vst.msk [vmem:[#allocation2 + $0x58] sm:$0xff] %vm319_vm4, %v4197_v26  ;;  %v4642_v18 = vadd.f32 %v7805_v34, %v4268_v9  ;;  %v3439_v26 = vsel %vm2959_vm6, %v3436_v43, %v3438_v44 }
 0x271   : > { %v3107_v10 = vpop.f32.mrf.mxu1 }
 0x272   : > { %v4716_v31 = vld [vmem:[#allocation2 + $0x48] sm:$0xff]  ;;  %4678 = vst.msk [vmem:[#allocation2 + $0x50] sm:$0xff] %vm319_vm4, %v4642_v18  ;;  %v3176_v34 = vadd.f32 %v3107_v10, %v2802_v55 }
 0x273   : > { %v4752_v20 = vmax.f32 %v4716_v31, 0.0  ;;  %v3247_v63 = vld [vmem:[#allocation2 + $0x68] sm:$0xff] }
 0x274   : > { %v7929_v2 = vpop.f32.mrf.mxu0  ;;  %v3620_v8 = vadd.f32 %v3549_v13, %v3247_v63  ;;  %3212 = vst.msk [vmem:[#allocation2 + $0x70] sm:$0xff] %vm319_vm4, %v3176_v34  ;;  %5543 = vmatmul.msk.bf16.gmra.mxu1 %vm534_vm0, %v2992_v0  ;;  %5645 = vmatmul.msk.bf16.gmra.mxu2 %vm534_vm0, %v3437_v42  ;;  %v3385_v0 = vunpack.c.l.b16 %v3306_v23 }
 0x275   : > { %4788 = vst.msk [vmem:[%s7642_s19 + $0x48] sm:$0xff] %vm319_vm4, %v4752_v20  ;;  %v3691_v19 = vld [vmem:[#allocation2 + $0x60] sm:$0xff] }
 0x276   : > { %v4198_v50 = vadd.f32 %v7791_v37, %v3691_v19  ;;  %3656 = vst.msk [vmem:[#allocation2 + $0x68] sm:$0xff] %vm319_vm4, %v3620_v8  ;;  %v7952_v37 = vpop.f32.mrf.mxu3  ;;  %v3404_v8 = vpack.c.b16 %v3385_v0, %v3385_v0 }
 0x277   : > { %5849 = vmatmul.msk.bf16.gmra.mxu0 %vm534_vm0, %v4462_v53  ;;  %v4269_v5 = vld [vmem:[#allocation2 + $0x58] sm:$0xff]  ;;  %v3552_v14 = vpop.f32.mrf.mxu2 }
 0x278   : > { %4234 = vst.msk [vmem:[#allocation2 + $0x60] sm:$0xff] %vm319_vm4, %v4198_v50  ;;  %v4643_v45 = vadd.f32 %v7834_v7, %v4269_v5  ;;  %v4020_v7 = vsel %vm3850_vm5, %v7893_v62, %v4019_v28  ;;  %v4463_v62 = vrot.slane %v7958_v24, 3 }
 0x279   : > { %v4717_v35 = vld [vmem:[#allocation2 + $0x50] sm:$0xff]  ;;  %v3109_v60 = vpop.f32.mrf.mxu1  ;;  %5749 = vmatmul.msk.bf16.gmra.mxu3 %vm534_vm0, %v4020_v7 }
 0x27a   : > { %v4753_v15 = vmax.f32 %v4717_v35, 0.0  ;;  %4679 = vst.msk [vmem:[#allocation2 + $0x58] sm:$0xff] %vm319_vm4, %v4643_v45  ;;  %v3177_v11 = vadd.f32 %v3109_v60, %v2803_v4  ;;  %v4464_v39 = vsel %vm4429_vm7, %v4461_v59, %v4463_v62  ;;  %v4409_v59 = vunpack.c.l.b16 %v4330_v21  ;;  %v2808_v21 = vld [vmem:[#allocation2 + $0xa0] sm:$0xff] }
 0x27b   : > { %v3248_v38 = vld [vmem:[#allocation2 + $0x70] sm:$0xff] }
 0x27c   : > { %v7955_v47 = vpop.f32.mrf.mxu0  ;;  %4789 = vst.msk [vmem:[%s7642_s19 + $0x50] sm:$0xff] %vm319_vm4, %v4753_v15  ;;  %v3621_v1 = vadd.f32 %v3552_v14, %v3248_v38  ;;  %v4428_v61 = vpack.c.b16 %v4409_v59, %v4409_v59 }
 0x27d   : > { %v3692_v49 = vld [vmem:[#allocation2 + $0x68] sm:$0xff]  ;;  %3213 = vst.msk [vmem:[#allocation2 + $0x78] sm:$0xff] %vm319_vm4, %v3177_v11  ;;  %v2806_v11 = vld [vmem:[#allocation2 + $0x90] sm:$0xff] }
 0x27e   : > { %v4199_v54 = vadd.f32 %v7822_v46, %v3692_v49  ;;  %3657 = vst.msk [vmem:[#allocation2 + $0x70] sm:$0xff] %vm319_vm4, %v3621_v1  ;;  %v2994_v46 = vsel %vm2959_vm6, %v2991_v6, %v2993_v29  ;;  %v7993_v6 = vpop.f32.mrf.mxu3  ;;  %v4465_v45 = vrot.slane %v4428_v61, 3 }
 0x27f   : > { %v4270_v40 = vld [vmem:[#allocation2 + $0x60] sm:$0xff]  ;;  %v3554_v48 = vpop.f32.mrf.mxu2 }
 0x280   : > { %4235 = vst.msk [vmem:[#allocation2 + $0x68] sm:$0xff] %vm319_vm4, %v4199_v54  ;;  %v4644_v56 = vadd.f32 %v7866_v32, %v4270_v40  ;;  %v2860_v32 = vld [vmem:[%s6147_s30 + $0x98] sm:$0x3] }
 0x281   : > { %v4718_v33 = vld [vmem:[#allocation2 + $0x58] sm:$0xff]  ;;  %v3112_v58 = vpop.f32.mrf.mxu1  ;;  %v2939_v10 = vunpack.c.l.b16 %v2860_v32 }
 0x282   : > { %v4754_v9 = vmax.f32 %v4718_v33, 0.0  ;;  %4680 = vst.msk [vmem:[#allocation2 + $0x60] sm:$0xff] %vm319_vm4, %v4644_v56  ;;  %v3178_v13 = vadd.f32 %v3112_v58, %v2804_v36  ;;  %v2807_v33 = vld [vmem:[#allocation2 + $0x98] sm:$0xff] }
 0x283   : > { %v2958_v63 = vpack.c.b16 %v2939_v10, %v2939_v10 }
 0x284   : > { %v7986_v18 = vpop.f32.mrf.mxu0  ;;  %4790 = vst.msk [vmem:[%s7642_s19 + $0x58] sm:$0xff] %vm319_vm4, %v4754_v9  ;;  %v3249_v57 = vld [vmem:[#allocation2 + $0x78] sm:$0xff]  ;;  %5544 = vmatmul.msk.bf16.gmra.mxu1 %vm534_vm0, %v2994_v46  ;;  %5646 = vmatmul.msk.bf16.gmra.mxu2 %vm534_vm0, %v3439_v26 }
 0x285   : > { %v3693_v43 = vld [vmem:[#allocation2 + $0x70] sm:$0xff]  ;;  %v3622_v55 = vadd.f32 %v3554_v48, %v3249_v57  ;;  %3214 = vst.msk [vmem:[#allocation2 + $0x80] sm:$0xff] %vm319_vm4, %v3178_v13  ;;  %v2995_v14 = vrot.slane %v2958_v63, 2 }
 0x286   : > { %v4200_v3 = vadd.f32 %v7852_v16, %v3693_v43  ;;  %v8012_v51 = vpop.f32.mrf.mxu3 }
 0x287   : > { %5850 = vmatmul.msk.bf16.gmra.mxu0 %vm534_vm0, %v4464_v39  ;;  %3658 = vst.msk [vmem:[#allocation2 + $0x78] sm:$0xff] %vm319_vm4, %v3622_v55  ;;  %v4271_v42 = vld [vmem:[#allocation2 + $0x68] sm:$0xff]  ;;  %v3557_v31 = vpop.f32.mrf.mxu2  ;;  %v2996_v7 = vsel %vm2959_vm6, %v2993_v29, %v2995_v14 }
 0x288   : > { %4236 = vst.msk [vmem:[#allocation2 + $0x70] sm:$0xff] %vm319_vm4, %v4200_v3  ;;  %v4645_v34 = vadd.f32 %v7895_v17, %v4271_v42  ;;  %v3440_v17 = vrot.slane %v3404_v8, 2 }
 0x289   : > { %v4719_v53 = vld [vmem:[#allocation2 + $0x60] sm:$0xff]  ;;  %v3114_v20 = vpop.f32.mrf.mxu1 }
 0x28a   : > { %v4755_v19 = vmax.f32 %v4719_v53, 0.0  ;;  %4681 = vst.msk [vmem:[#allocation2 + $0x68] sm:$0xff] %vm319_vm4, %v4645_v34  ;;  %v3179_v30 = vadd.f32 %v3114_v20, %v2805_v52  ;;  %v2809_v52 = vld [vmem:[#allocation2 + $0xa8] sm:$0xff] }
 0x28c   : > { %v8007_v16 = vpop.f32.mrf.mxu0  ;;  %4791 = vst.msk [vmem:[%s7642_s19 + $0x60] sm:$0xff] %vm319_vm4, %v4755_v19  ;;  %v3250_v50 = vld [vmem:[#allocation2 + $0x80] sm:$0xff] }
 0x28d   : > { %v3623_v5 = vadd.f32 %v3557_v31, %v3250_v50  ;;  %3215 = vst.msk [vmem:[#allocation2 + $0x88] sm:$0xff] %vm319_vm4, %v3179_v30 }
 0x28e   : > { %v3694_v27 = vld [vmem:[#allocation2 + $0x78] sm:$0xff] }
 0x28f   : > { %v4201_v4 = vadd.f32 %v7883_v12, %v3694_v27  ;;  %3659 = vst.msk [vmem:[#allocation2 + $0x80] sm:$0xff] %vm319_vm4, %v3623_v5  ;;  %v4272_v35 = vld [vmem:[#allocation2 + $0x70] sm:$0xff]  ;;  %v3559_v60 = vpop.f32.mrf.mxu2  ;;  %v3441_v12 = vsel %vm2959_vm6, %v3438_v44, %v3440_v17  ;;  %v8038_v44 = vpop.f32.mrf.mxu3 }
 0x290   : > { %v4646_v28 = vadd.f32 %v7929_v2, %v4272_v35  ;;  %v4466_v2 = vsel %vm4429_vm7, %v4463_v62, %v4465_v45  ;;  %v2810_v45 = vld [vmem:[#allocation2 + $0xb0] sm:$0xff] }
 0x291   : > { %v4720_v15 = vld [vmem:[#allocation2 + $0x68] sm:$0xff]  ;;  %4237 = vst.msk [vmem:[#allocation2 + $0x78] sm:$0xff] %vm319_vm4, %v4201_v4  ;;  %v3117_v38 = vpop.f32.mrf.mxu1 }
 0x292   : > { %v4756_v1 = vmax.f32 %v4720_v15, 0.0  ;;  %4682 = vst.msk [vmem:[#allocation2 + $0x70] sm:$0xff] %vm319_vm4, %v4646_v28  ;;  %v3180_v49 = vadd.f32 %v3117_v38, %v2806_v11 }
 0x294   : > { %v8025_v54 = vpop.f32.mrf.mxu0  ;;  %4792 = vst.msk [vmem:[%s7642_s19 + $0x68] sm:$0xff] %vm319_vm4, %v4756_v1  ;;  %v3251_v40 = vld [vmem:[#allocation2 + $0x88] sm:$0xff]  ;;  %5545 = vmatmul.msk.bf16.gmra.mxu1 %vm534_vm0, %v2996_v7  ;;  %5647 = vmatmul.msk.bf16.gmra.mxu2 %vm534_vm0, %v3441_v12 }
 0x295   : > { %v3624_v41 = vadd.f32 %v3559_v60, %v3251_v40  ;;  %3216 = vst.msk [vmem:[#allocation2 + $0x90] sm:$0xff] %vm319_vm4, %v3180_v49 }
 0x296   : > { %v3695_v22 = vld [vmem:[#allocation2 + $0x80] sm:$0xff] }
 0x297   : > { %5851 = vmatmul.msk.bf16.gmra.mxu0 %vm534_vm0, %v4466_v2  ;;  %v4202_v29 = vadd.f32 %v7913_v25, %v3695_v22  ;;  %3660 = vst.msk [vmem:[#allocation2 + $0x88] sm:$0xff] %vm319_vm4, %v3624_v41  ;;  %v3562_v24 = vpop.f32.mrf.mxu2  ;;  %v8052_v43 = vpop.f32.mrf.mxu3  ;;  %v2811_v2 = vld [vmem:[#allocation2 + $0xb8] sm:$0xff] }
 0x298   : > { %v4273_v62 = vld [vmem:[#allocation2 + $0x78] sm:$0xff] }
 0x299   : > { %v4721_v48 = vld [vmem:[#allocation2 + $0x70] sm:$0xff]  ;;  %4238 = vst.msk [vmem:[#allocation2 + $0x80] sm:$0xff] %vm319_vm4, %v4202_v29  ;;  %v4647_v56 = vadd.f32 %v7955_v47, %v4273_v62  ;;  %v3119_v36 = vpop.f32.mrf.mxu1 }
 0x29a   : > { %v4757_v58 = vmax.f32 %v4721_v48, 0.0  ;;  %v3181_v46 = vadd.f32 %v3119_v36, %v2807_v33 }
 0x29b   : > { %4683 = vst.msk [vmem:[#allocation2 + $0x78] sm:$0xff] %vm319_vm4, %v4647_v56 }
 0x29c   : > { %v8042_v26 = vpop.f32.mrf.mxu0  ;;  %4793 = vst.msk [vmem:[%s7642_s19 + $0x70] sm:$0xff] %vm319_vm4, %v4757_v58  ;;  %v3252_v25 = vld [vmem:[#allocation2 + $0x90] sm:$0xff] }
 0x29d   : > { %v3625_v9 = vadd.f32 %v3562_v24, %v3252_v25  ;;  %3217 = vst.msk [vmem:[#allocation2 + $0x98] sm:$0xff] %vm319_vm4, %v3181_v46 }
 0x29e   : > { %v3696_v13 = vld [vmem:[#allocation2 + $0x88] sm:$0xff] }
 0x29f   : > { %v4203_v32 = vadd.f32 %v7952_v37, %v3696_v13  ;;  %3661 = vst.msk [vmem:[#allocation2 + $0x90] sm:$0xff] %vm319_vm4, %v3625_v9  ;;  %v3564_v47 = vpop.f32.mrf.mxu2  ;;  %v4151_v61 = vpop.f32.mrf.mxu3 }
 0x2a0   : > { %v4274_v23 = vld [vmem:[#allocation2 + $0x80] sm:$0xff] }
 0x2a1   : > { %4239 = vst.msk [vmem:[#allocation2 + $0x88] sm:$0xff] %vm319_vm4, %v4203_v32  ;;  %v4648_v39 = vadd.f32 %v7986_v18, %v4274_v23  ;;  %v3122_v57 = vpop.f32.mrf.mxu1 }
 0x2a2   : > { %v4722_v55 = vld [vmem:[#allocation2 + $0x78] sm:$0xff]  ;;  %v3182_v10 = vadd.f32 %v3122_v57, %v2808_v21 }
 0x2a3   : > { %v4758_v3 = vmax.f32 %v4722_v55, 0.0  ;;  %4684 = vst.msk [vmem:[#allocation2 + $0x80] sm:$0xff] %vm319_vm4, %v4648_v39 }
 0x2a4   : > { %v8054_v0 = vpop.f32.mrf.mxu0  ;;  %v3253_v37 = vld [vmem:[#allocation2 + $0x98] sm:$0xff]  ;;  %3218 = vst.msk [vmem:[#allocation2 + $0xa0] sm:$0xff] %vm319_vm4, %v3182_v10 }
 0x2a5   : > { %4794 = vst.msk [vmem:[%s7642_s19 + $0x78] sm:$0xff] %vm319_vm4, %v4758_v3  ;;  %v3626_v59 = vadd.f32 %v3564_v47, %v3253_v37 }
 0x2a6   : > { %v3697_v42 = vld [vmem:[#allocation2 + $0x90] sm:$0xff] }
 0x2a7   : > { %v4204_v18 = vadd.f32 %v7993_v6, %v3697_v42  ;;  %3662 = vst.msk [vmem:[#allocation2 + $0x98] sm:$0xff] %vm319_vm4, %v3626_v59  ;;  %v3567_v31 = vpop.f32.mrf.mxu2  ;;  %v4153_v38 = vpop.f32.mrf.mxu3 }
 0x2a8   : > { %v4275_v34 = vld [vmem:[#allocation2 + $0x88] sm:$0xff] }
 0x2a9   : > { %4240 = vst.msk [vmem:[#allocation2 + $0x90] sm:$0xff] %vm319_vm4, %v4204_v18  ;;  %v4649_v53 = vadd.f32 %v8007_v16, %v4275_v34  ;;  %v3124_v20 = vpop.f32.mrf.mxu1 }
 0x2aa   : > { %v4723_v63 = vld [vmem:[#allocation2 + $0x80] sm:$0xff]  ;;  %v3183_v8 = vadd.f32 %v3124_v20, %v2809_v52 }
 0x2ab   : > { %v4759_v19 = vmax.f32 %v4723_v63, 0.0  ;;  %4685 = vst.msk [vmem:[#allocation2 + $0x88] sm:$0xff] %vm319_vm4, %v4649_v53  ;;  %v3254_v30 = vld [vmem:[#allocation2 + $0xa0] sm:$0xff] }
 0x2ac   : > { %v3627_v50 = vadd.f32 %v3567_v31, %v3254_v30  ;;  %3219 = vst.msk [vmem:[#allocation2 + $0xa8] sm:$0xff] %vm319_vm4, %v3183_v8  ;;  %v8066_v6 = vpop.f32.mrf.mxu0  ;;  %v2814_v30 = vld [vmem:[#allocation2 + $0xd0] sm:$0xff] }
 0x2ad   : > { %4795 = vst.msk [vmem:[%s7642_s19 + $0x80] sm:$0xff] %vm319_vm4, %v4759_v19 }
 0x2ae   : > { %v3698_v5 = vld [vmem:[#allocation2 + $0x98] sm:$0xff]  ;;  %3663 = vst.msk [vmem:[#allocation2 + $0xa0] sm:$0xff] %vm319_vm4, %v3627_v50 }
 0x2af   : > { %v4205_v16 = vadd.f32 %v8012_v51, %v3698_v5  ;;  %v3569_v14 = vpop.f32.mrf.mxu2  ;;  %v4156_v36 = vpop.f32.mrf.mxu3 }
 0x2b0   : > { %v4276_v17 = vld [vmem:[#allocation2 + $0x90] sm:$0xff] }
 0x2b1   : > { %4241 = vst.msk [vmem:[#allocation2 + $0x98] sm:$0xff] %vm319_vm4, %v4205_v16  ;;  %v4650_v27 = vadd.f32 %v8025_v54, %v4276_v17  ;;  %v3127_v4 = vpop.f32.mrf.mxu1 }
 0x2b2   : > { %v4724_v35 = vld [vmem:[#allocation2 + $0x88] sm:$0xff]  ;;  %v3184_v60 = vadd.f32 %v3127_v4, %v2810_v45 }
 0x2b3   : > { %v4760_v28 = vmax.f32 %v4724_v35, 0.0  ;;  %4686 = vst.msk [vmem:[#allocation2 + $0x90] sm:$0xff] %vm319_vm4, %v4650_v27  ;;  %v3255_v15 = vld [vmem:[#allocation2 + $0xa8] sm:$0xff] }
 0x2b4   : > { %v3628_v11 = vadd.f32 %v3569_v14, %v3255_v15  ;;  %3220 = vst.msk [vmem:[#allocation2 + $0xb0] sm:$0xff] %vm319_vm4, %v3184_v60  ;;  %v4597_v12 = vpop.f32.mrf.mxu0  ;;  %v2815_v15 = vld [vmem:[#allocation2 + $0xd8] sm:$0xff] }
 0x2b5   : > { %4796 = vst.msk [vmem:[%s7642_s19 + $0x88] sm:$0xff] %vm319_vm4, %v4760_v28  ;;  %v3699_v51 = vld [vmem:[#allocation2 + $0xa0] sm:$0xff] }
 0x2b6   : > { %v4206_v7 = vadd.f32 %v8038_v44, %v3699_v51  ;;  %3664 = vst.msk [vmem:[#allocation2 + $0xa8] sm:$0xff] %vm319_vm4, %v3628_v11 }
 0x2b7   : > { %v3572_v1 = vpop.f32.mrf.mxu2  ;;  %v4158_v37 = vpop.f32.mrf.mxu3 }
 0x2b8   : > { %4242 = vst.msk [vmem:[#allocation2 + $0xa0] sm:$0xff] %vm319_vm4, %v4206_v7  ;;  %v4277_v49 = vld [vmem:[#allocation2 + $0x98] sm:$0xff] }
 0x2b9   : > { %v4651_v54 = vadd.f32 %v8042_v26, %v4277_v49  ;;  %v3129_v40 = vpop.f32.mrf.mxu1  ;;  %v2812_v26 = vld [vmem:[#allocation2 + $0xc0] sm:$0xff] }
 0x2ba   : > { %v4725_v41 = vld [vmem:[#allocation2 + $0x90] sm:$0xff]  ;;  %v3185_v22 = vadd.f32 %v3129_v40, %v2811_v2 }
 0x2bb   : > { %v4761_v29 = vmax.f32 %v4725_v41, 0.0  ;;  %4687 = vst.msk [vmem:[#allocation2 + $0x98] sm:$0xff] %vm319_vm4, %v4651_v54  ;;  %v3256_v24 = vld [vmem:[#allocation2 + $0xb0] sm:$0xff] }
 0x2bc   : > { %v3629_v62 = vadd.f32 %v3572_v1, %v3256_v24  ;;  %3221 = vst.msk [vmem:[#allocation2 + $0xb8] sm:$0xff] %vm319_vm4, %v3185_v22  ;;  %v4599_v46 = vpop.f32.mrf.mxu0  ;;  %v2816_v24 = vld [vmem:[#allocation2 + $0xe0] sm:$0xff] }
 0x2bd   : > { %4797 = vst.msk [vmem:[%s7642_s19 + $0x90] sm:$0xff] %vm319_vm4, %v4761_v29  ;;  %v3700_v44 = vld [vmem:[#allocation2 + $0xa8] sm:$0xff] }
 0x2be   : > { %v4207_v48 = vadd.f32 %v8052_v43, %v3700_v44  ;;  %3665 = vst.msk [vmem:[#allocation2 + $0xb0] sm:$0xff] %vm319_vm4, %v3629_v62 }
 0x2bf   : > { %v4278_v56 = vld [vmem:[#allocation2 + $0xa0] sm:$0xff]  ;;  %v3574_v33 = vpop.f32.mrf.mxu2  ;;  %v4161_v5 = vpop.f32.mrf.mxu3 }
 0x2c0   : > { %4243 = vst.msk [vmem:[#allocation2 + $0xa8] sm:$0xff] %vm319_vm4, %v4207_v48  ;;  %v4652_v58 = vadd.f32 %v8054_v0, %v4278_v56  ;;  %v2813_v0 = vld [vmem:[#allocation2 + $0xc8] sm:$0xff] }
 0x2c1   : > { %v3132_v25 = vpop.f32.mrf.mxu1 }
 0x2c2   : > { %v4726_v9 = vld [vmem:[#allocation2 + $0x98] sm:$0xff]  ;;  %4688 = vst.msk [vmem:[#allocation2 + $0xa0] sm:$0xff] %vm319_vm4, %v4652_v58  ;;  %v3186_v13 = vadd.f32 %v3132_v25, %v2812_v26 }
 0x2c3   : > { %v4762_v32 = vmax.f32 %v4726_v9, 0.0  ;;  %v3257_v47 = vld [vmem:[#allocation2 + $0xb8] sm:$0xff] }
 0x2c4   : > { %v3630_v23 = vadd.f32 %v3574_v33, %v3257_v47  ;;  %3222 = vst.msk [vmem:[#allocation2 + $0xc0] sm:$0xff] %vm319_vm4, %v3186_v13  ;;  %v4602_v18 = vpop.f32.mrf.mxu0  ;;  %v2817_v47 = vld [vmem:[#allocation2 + $0xe8] sm:$0xff] }
 0x2c5   : > { %4798 = vst.msk [vmem:[%s7642_s19 + $0x98] sm:$0xff] %vm319_vm4, %v4762_v32  ;;  %v3701_v39 = vld [vmem:[#allocation2 + $0xb0] sm:$0xff] }
 0x2c6   : > { %v4208_v21 = vadd.f32 %v4151_v61, %v3701_v39  ;;  %3666 = vst.msk [vmem:[#allocation2 + $0xb8] sm:$0xff] %vm319_vm4, %v3630_v23 }
 0x2c7   : > { %v4279_v57 = vld [vmem:[#allocation2 + $0xa8] sm:$0xff]  ;;  %v3577_v43 = vpop.f32.mrf.mxu2  ;;  %v4163_v1 = vpop.f32.mrf.mxu3 }
 0x2c8   : > { %4244 = vst.msk [vmem:[#allocation2 + $0xb0] sm:$0xff] %vm319_vm4, %v4208_v21  ;;  %v4653_v55 = vadd.f32 %v8066_v6, %v4279_v57 }
 0x2c9   : > { %v4727_v10 = vld [vmem:[#allocation2 + $0xa0] sm:$0xff]  ;;  %v3134_v3 = vpop.f32.mrf.mxu1 }
 0x2ca   : > { %v4763_v59 = vmax.f32 %v4727_v10, 0.0  ;;  %4689 = vst.msk [vmem:[#allocation2 + $0xa8] sm:$0xff] %vm319_vm4, %v4653_v55  ;;  %v3187_v42 = vadd.f32 %v3134_v3, %v2813_v0 }
 0x2cb   : > { %v3258_v31 = vld [vmem:[#allocation2 + $0xc0] sm:$0xff] }
 0x2cc   : > { %4799 = vst.msk [vmem:[%s7642_s19 + $0xa0] sm:$0xff] %vm319_vm4, %v4763_v59  ;;  %v3631_v34 = vadd.f32 %v3577_v43, %v3258_v31  ;;  %v4604_v14 = vpop.f32.mrf.mxu0  ;;  %v2818_v59 = vld [vmem:[#allocation2 + $0xf0] sm:$0xff] }
 0x2cd   : > { %v3702_v53 = vld [vmem:[#allocation2 + $0xb8] sm:$0xff]  ;;  %3223 = vst.msk [vmem:[#allocation2 + $0xc8] sm:$0xff] %vm319_vm4, %v3187_v42 }
 0x2ce   : > { %v4209_v52 = vadd.f32 %v4153_v38, %v3702_v53  ;;  %3667 = vst.msk [vmem:[#allocation2 + $0xc0] sm:$0xff] %vm319_vm4, %v3631_v34 }
 0x2cf   : > { %v4280_v20 = vld [vmem:[#allocation2 + $0xb0] sm:$0xff]  ;;  %v3579_v63 = vpop.f32.mrf.mxu2  ;;  %v4166_v26 = vpop.f32.mrf.mxu3 }
 0x2d0   : > { %4245 = vst.msk [vmem:[#allocation2 + $0xb8] sm:$0xff] %vm319_vm4, %v4209_v52  ;;  %v4654_v8 = vadd.f32 %v4597_v12, %v4280_v20 }
 0x2d1   : > { %v4728_v19 = vld [vmem:[#allocation2 + $0xa8] sm:$0xff]  ;;  %v3137_v61 = vpop.f32.mrf.mxu1 }
 0x2d2   : > { %v4764_v50 = vmax.f32 %v4728_v19, 0.0  ;;  %4690 = vst.msk [vmem:[#allocation2 + $0xb0] sm:$0xff] %vm319_vm4, %v4654_v8  ;;  %v3188_v6 = vadd.f32 %v3137_v61, %v2814_v30 }
 0x2d4   : > { %4800 = vst.msk [vmem:[%s7642_s19 + $0xa8] sm:$0xff] %vm319_vm4, %v4764_v50  ;;  %v3259_v16 = vld [vmem:[#allocation2 + $0xc8] sm:$0xff]  ;;  %v4607_v54 = vpop.f32.mrf.mxu0 }
 0x2d5   : > { %v3703_v17 = vld [vmem:[#allocation2 + $0xc0] sm:$0xff]  ;;  %v3632_v27 = vadd.f32 %v3579_v63, %v3259_v16  ;;  %3224 = vst.msk [vmem:[#allocation2 + $0xd0] sm:$0xff] %vm319_vm4, %v3188_v6  ;;  %v2819_v6 = vld [vmem:[#allocation2 + $0xf8] sm:$0xff] }
 0x2d6   : > { %v4210_v45 = vadd.f32 %v4156_v36, %v3703_v17 }
 0x2d7   : > { %3668 = vst.msk [vmem:[#allocation2 + $0xc8] sm:$0xff] %vm319_vm4, %v3632_v27  ;;  %v4281_v4 = vld [vmem:[#allocation2 + $0xb8] sm:$0xff]  ;;  %v3582_v35 = vpop.f32.mrf.mxu2 }
 0x2d8   : > { %4246 = vst.msk [vmem:[#allocation2 + $0xc0] sm:$0xff] %vm319_vm4, %v4210_v45  ;;  %v4655_v60 = vadd.f32 %v4599_v46, %v4281_v4 }
 0x2d9   : > { %v4729_v28 = vld [vmem:[#allocation2 + $0xb0] sm:$0xff]  ;;  %v3139_v11 = vpop.f32.mrf.mxu1 }
 0x2da   : > { %v4765_v51 = vmax.f32 %v4729_v28, 0.0  ;;  %4691 = vst.msk [vmem:[#allocation2 + $0xb8] sm:$0xff] %vm319_vm4, %v4655_v60  ;;  %v3189_v38 = vadd.f32 %v3139_v11, %v2815_v15 }
 0x2dc   : > { %4801 = vst.msk [vmem:[%s7642_s19 + $0xb0] sm:$0xff] %vm319_vm4, %v4765_v51  ;;  %v3260_v7 = vld [vmem:[#allocation2 + $0xd0] sm:$0xff]  ;;  %v4609_v9 = vpop.f32.mrf.mxu0 }
 0x2dd   : > { %v3633_v12 = vadd.f32 %v3582_v35, %v3260_v7  ;;  %3225 = vst.msk [vmem:[#allocation2 + $0xd8] sm:$0xff] %vm319_vm4, %v3189_v38  ;;  %v2820_v38 = vld [vmem:[#allocation2 + $0x100] sm:$0xff] }
 0x2de   : > { %v3704_v49 = vld [vmem:[#allocation2 + $0xc8] sm:$0xff] }
 0x2df   : > { %v4211_v2 = vadd.f32 %v4158_v37, %v3704_v49  ;;  %3669 = vst.msk [vmem:[#allocation2 + $0xd0] sm:$0xff] %vm319_vm4, %v3633_v12  ;;  %v4282_v40 = vld [vmem:[#allocation2 + $0xc0] sm:$0xff]  ;;  %v3584_v41 = vpop.f32.mrf.mxu2 }
 0x2e0   : > { %v4656_v22 = vadd.f32 %v4602_v18, %v4282_v40  ;;  %v4168_v18 = vpop.f32.mrf.mxu3 }
 0x2e1   : > { %v4730_v29 = vld [vmem:[#allocation2 + $0xb8] sm:$0xff]  ;;  %4247 = vst.msk [vmem:[#allocation2 + $0xc8] sm:$0xff] %vm319_vm4, %v4211_v2  ;;  %v3142_v62 = vpop.f32.mrf.mxu1 }
 0x2e2   : > { %v4766_v44 = vmax.f32 %v4730_v29, 0.0  ;;  %4692 = vst.msk [vmem:[#allocation2 + $0xc0] sm:$0xff] %vm319_vm4, %v4656_v22  ;;  %v3190_v48 = vadd.f32 %v3142_v62, %v2816_v24 }
 0x2e4   : > { %4802 = vst.msk [vmem:[%s7642_s19 + $0xb8] sm:$0xff] %vm319_vm4, %v4766_v44  ;;  %v3261_v56 = vld [vmem:[#allocation2 + $0xd8] sm:$0xff]  ;;  %v4612_v53 = vpop.f32.mrf.mxu0 }
 0x2e5   : > { %v3634_v33 = vadd.f32 %v3584_v41, %v3261_v56  ;;  %3226 = vst.msk [vmem:[#allocation2 + $0xe0] sm:$0xff] %vm319_vm4, %v3190_v48  ;;  %v2821_v48 = vld [vmem:[#allocation2 + $0x108] sm:$0xff] }
 0x2e6   : > { %v3705_v36 = vld [vmem:[#allocation2 + $0xd0] sm:$0xff] }
 0x2e7   : > { %v4212_v58 = vadd.f32 %v4161_v5, %v3705_v36  ;;  %3670 = vst.msk [vmem:[#allocation2 + $0xd8] sm:$0xff] %vm319_vm4, %v3634_v33  ;;  %v3587_v46 = vpop.f32.mrf.mxu2 }
 0x2e8   : > { %v4283_v25 = vld [vmem:[#allocation2 + $0xc8] sm:$0xff]  ;;  %v4171_v45 = vpop.f32.mrf.mxu3 }
 0x2e9   : > { %v4731_v13 = vld [vmem:[#allocation2 + $0xc0] sm:$0xff]  ;;  %4248 = vst.msk [vmem:[#allocation2 + $0xd0] sm:$0xff] %vm319_vm4, %v4212_v58  ;;  %v4657_v32 = vadd.f32 %v4604_v14, %v4283_v25  ;;  %v3144_v23 = vpop.f32.mrf.mxu1 }
 0x2ea   : > { %v4767_v39 = vmax.f32 %v4731_v13, 0.0  ;;  %v3191_v21 = vadd.f32 %v3144_v23, %v2817_v47 }
 0x2eb   : > { %4693 = vst.msk [vmem:[#allocation2 + $0xc8] sm:$0xff] %vm319_vm4, %v4657_v32 }
 0x2ec   : > { %4803 = vst.msk [vmem:[%s7642_s19 + $0xc0] sm:$0xff] %vm319_vm4, %v4767_v39  ;;  %v3262_v57 = vld [vmem:[#allocation2 + $0xe0] sm:$0xff]  ;;  %v4614_v35 = vpop.f32.mrf.mxu0 }
 0x2ed   : > { %v3635_v43 = vadd.f32 %v3587_v46, %v3262_v57  ;;  %3227 = vst.msk [vmem:[#allocation2 + $0xe8] sm:$0xff] %vm319_vm4, %v3191_v21  ;;  %v2822_v21 = vld [vmem:[#allocation2 + $0x110] sm:$0xff] }
 0x2ee   : > { %v3706_v55 = vld [vmem:[#allocation2 + $0xd8] sm:$0xff] }
 0x2ef   : > { %v4213_v10 = vadd.f32 %v4163_v1, %v3706_v55  ;;  %3671 = vst.msk [vmem:[#allocation2 + $0xe0] sm:$0xff] %vm319_vm4, %v3635_v43  ;;  %v3589_v0 = vpop.f32.mrf.mxu2 }
 0x2f0   : > { %v4284_v3 = vld [vmem:[#allocation2 + $0xd0] sm:$0xff]  ;;  %v4173_v41 = vpop.f32.mrf.mxu3 }
 0x2f1   : > { %4249 = vst.msk [vmem:[#allocation2 + $0xd8] sm:$0xff] %vm319_vm4, %v4213_v10  ;;  %v4658_v37 = vadd.f32 %v4607_v54, %v4284_v3  ;;  %v3147_v42 = vpop.f32.mrf.mxu1 }
 0x2f2   : > { %v4732_v31 = vld [vmem:[#allocation2 + $0xc8] sm:$0xff]  ;;  %v3192_v34 = vadd.f32 %v3147_v42, %v2818_v59 }
 0x2f3   : > { %v4768_v52 = vmax.f32 %v4732_v31, 0.0  ;;  %4694 = vst.msk [vmem:[#allocation2 + $0xd0] sm:$0xff] %vm319_vm4, %v4658_v37 }
 0x2f4   : > { %v3263_v20 = vld [vmem:[#allocation2 + $0xe8] sm:$0xff]  ;;  %3228 = vst.msk [vmem:[#allocation2 + $0xf0] sm:$0xff] %vm319_vm4, %v3192_v34  ;;  %v4617_v29 = vpop.f32.mrf.mxu0 }
 0x2f5   : > { %4804 = vst.msk [vmem:[%s7642_s19 + $0xc8] sm:$0xff] %vm319_vm4, %v4768_v52  ;;  %v3636_v63 = vadd.f32 %v3589_v0, %v3263_v20 }
 0x2f6   : > { %v3707_v8 = vld [vmem:[#allocation2 + $0xe0] sm:$0xff] }
 0x2f7   : > { %v4214_v19 = vadd.f32 %v4166_v26, %v3707_v8  ;;  %3672 = vst.msk [vmem:[#allocation2 + $0xe8] sm:$0xff] %vm319_vm4, %v3636_v63  ;;  %v3592_v30 = vpop.f32.mrf.mxu2 }
 0x2f8   : > { %v4285_v61 = vld [vmem:[#allocation2 + $0xd8] sm:$0xff]  ;;  %v4176_v32 = vpop.f32.mrf.mxu3 }
 0x2f9   : > { %4250 = vst.msk [vmem:[#allocation2 + $0xe0] sm:$0xff] %vm319_vm4, %v4214_v19  ;;  %v4659_v50 = vadd.f32 %v4609_v9, %v4285_v61  ;;  %v3149_v5 = vpop.f32.mrf.mxu1 }
 0x2fa   : > { %v4733_v16 = vld [vmem:[#allocation2 + $0xd0] sm:$0xff]  ;;  %v3193_v14 = vadd.f32 %v3149_v5, %v2819_v6 }
 0x2fb   : > { %v4769_v17 = vmax.f32 %v4733_v16, 0.0  ;;  %4695 = vst.msk [vmem:[#allocation2 + $0xd8] sm:$0xff] %vm319_vm4, %v4659_v50  ;;  %v3264_v27 = vld [vmem:[#allocation2 + $0xf0] sm:$0xff] }
 0x2fc   : > { %v3637_v4 = vadd.f32 %v3592_v30, %v3264_v27  ;;  %3229 = vst.msk [vmem:[#allocation2 + $0xf8] sm:$0xff] %vm319_vm4, %v3193_v14  ;;  %v4619_v39 = vpop.f32.mrf.mxu0 }
 0x2fd   : > { %4805 = vst.msk [vmem:[%s7642_s19 + $0xd0] sm:$0xff] %vm319_vm4, %v4769_v17 }
 0x2fe   : > { %v3708_v60 = vld [vmem:[#allocation2 + $0xe8] sm:$0xff]  ;;  %3673 = vst.msk [vmem:[#allocation2 + $0xf0] sm:$0xff] %vm319_vm4, %v3637_v4 }
 0x2ff   : > { %v4215_v28 = vadd.f32 %v4168_v18, %v3708_v60  ;;  %v3594_v15 = vpop.f32.mrf.mxu2 }
 0x300   : > { %v4286_v11 = vld [vmem:[#allocation2 + $0xe0] sm:$0xff]  ;;  %v4178_v34 = vpop.f32.mrf.mxu3 }
 0x301   : > { %4251 = vst.msk [vmem:[#allocation2 + $0xe8] sm:$0xff] %vm319_vm4, %v4215_v28  ;;  %v4660_v51 = vadd.f32 %v4612_v53, %v4286_v11  ;;  %v3152_v7 = vpop.f32.mrf.mxu1  ;;  %v2823_v53 = vld [vmem:[#allocation2 + $0x118] sm:$0xff] }
 0x302   : > { %v4734_v12 = vld [vmem:[#allocation2 + $0xd8] sm:$0xff]  ;;  %v3194_v1 = vadd.f32 %v3152_v7, %v2820_v38 }
 0x303   : > { %v4770_v49 = vmax.f32 %v4734_v12, 0.0  ;;  %4696 = vst.msk [vmem:[#allocation2 + $0xe0] sm:$0xff] %vm319_vm4, %v4660_v51  ;;  %v3265_v54 = vld [vmem:[#allocation2 + $0xf8] sm:$0xff] }
 0x304   : > { %v3638_v2 = vadd.f32 %v3594_v15, %v3265_v54  ;;  %3230 = vst.msk [vmem:[#allocation2 + $0x100] sm:$0xff] %vm319_vm4, %v3194_v1  ;;  %v4622_v8 = vpop.f32.mrf.mxu0 }
 0x305   : > { %4806 = vst.msk [vmem:[%s7642_s19 + $0xd8] sm:$0xff] %vm319_vm4, %v4770_v49  ;;  %v3709_v40 = vld [vmem:[#allocation2 + $0xf0] sm:$0xff] }
 0x306   : > { %v4216_v22 = vadd.f32 %v4171_v45, %v3709_v40  ;;  %3674 = vst.msk [vmem:[#allocation2 + $0xf8] sm:$0xff] %vm319_vm4, %v3638_v2 }
 0x307   : > { %v3597_v24 = vpop.f32.mrf.mxu2 }
 0x308   : > { %4252 = vst.msk [vmem:[#allocation2 + $0xf0] sm:$0xff] %vm319_vm4, %v4216_v22  ;;  %v4287_v62 = vld [vmem:[#allocation2 + $0xe8] sm:$0xff]  ;;  %v4181_v27 = vpop.f32.mrf.mxu3 }
 0x309   : > { %v4661_v44 = vadd.f32 %v4614_v35, %v4287_v62  ;;  %v3154_v56 = vpop.f32.mrf.mxu1 }
 0x30a   : > { %v4735_v33 = vld [vmem:[#allocation2 + $0xe0] sm:$0xff]  ;;  %v3195_v36 = vadd.f32 %v3154_v56, %v2821_v48 }
 0x30b   : > { %v4771_v58 = vmax.f32 %v4735_v33, 0.0  ;;  %4697 = vst.msk [vmem:[#allocation2 + $0xe8] sm:$0xff] %vm319_vm4, %v4661_v44  ;;  %v3266_v46 = vld [vmem:[#allocation2 + $0x100] sm:$0xff] }
 0x30c   : > { %v3639_v26 = vadd.f32 %v3597_v24, %v3266_v46  ;;  %3231 = vst.msk [vmem:[#allocation2 + $0x108] sm:$0xff] %vm319_vm4, %v3195_v36  ;;  %v4624_v35 = vpop.f32.mrf.mxu0 }
 0x30d   : > { %4807 = vst.msk [vmem:[%s7642_s19 + $0xe0] sm:$0xff] %vm319_vm4, %v4771_v58  ;;  %v3710_v25 = vld [vmem:[#allocation2 + $0xf8] sm:$0xff] }
 0x30e   : > { %v4217_v9 = vadd.f32 %v4173_v41, %v3710_v25  ;;  %3675 = vst.msk [vmem:[#allocation2 + $0x100] sm:$0xff] %vm319_vm4, %v3639_v26 }
 0x30f   : > { %v4288_v13 = vld [vmem:[#allocation2 + $0xf0] sm:$0xff]  ;;  %v3599_v23 = vpop.f32.mrf.mxu2 }
 0x310   : > { %4253 = vst.msk [vmem:[#allocation2 + $0xf8] sm:$0xff] %vm319_vm4, %v4217_v9  ;;  %v4662_v47 = vadd.f32 %v4617_v29, %v4288_v13  ;;  %v4183_v1 = vpop.f32.mrf.mxu3 }
 0x311   : > { %v3157_v57 = vpop.f32.mrf.mxu1 }
 0x312   : > { %v4736_v43 = vld [vmem:[#allocation2 + $0xe8] sm:$0xff]  ;;  %4698 = vst.msk [vmem:[#allocation2 + $0xf0] sm:$0xff] %vm319_vm4, %v4662_v47  ;;  %v3196_v55 = vadd.f32 %v3157_v57, %v2822_v21 }
 0x313   : > { %v4772_v10 = vmax.f32 %v4736_v43, 0.0  ;;  %v3267_v0 = vld [vmem:[#allocation2 + $0x108] sm:$0xff] }
 0x314   : > { %v3640_v3 = vadd.f32 %v3599_v23, %v3267_v0  ;;  %3232 = vst.msk [vmem:[#allocation2 + $0x110] sm:$0xff] %vm319_vm4, %v3196_v55  ;;  %v4627_v49 = vpop.f32.mrf.mxu0 }
 0x315   : > { %4808 = vst.msk [vmem:[%s7642_s19 + $0xe8] sm:$0xff] %vm319_vm4, %v4772_v10  ;;  %v3711_v37 = vld [vmem:[#allocation2 + $0x100] sm:$0xff] }
 0x316   : > { %v4218_v59 = vadd.f32 %v4176_v32, %v3711_v37  ;;  %3676 = vst.msk [vmem:[#allocation2 + $0x108] sm:$0xff] %vm319_vm4, %v3640_v3 }
 0x317   : > { %v4289_v42 = vld [vmem:[#allocation2 + $0xf8] sm:$0xff]  ;;  %v3602_v63 = vpop.f32.mrf.mxu2 }
 0x318   : > { %4254 = vst.msk [vmem:[#allocation2 + $0x100] sm:$0xff] %vm319_vm4, %v4218_v59  ;;  %v4663_v18 = vadd.f32 %v4619_v39, %v4289_v42 }
 0x319   : > { %v4737_v31 = vld [vmem:[#allocation2 + $0xf0] sm:$0xff]  ;;  %v3159_v52 = vpop.f32.mrf.mxu1 }
 0x31a   : > { %v4773_v20 = vmax.f32 %v4737_v31, 0.0  ;;  %4699 = vst.msk [vmem:[#allocation2 + $0xf8] sm:$0xff] %vm319_vm4, %v4663_v18  ;;  %v3197_v19 = vadd.f32 %v3159_v52, %v2823_v53 }
 0x31b   : > { %v3268_v30 = vld [vmem:[#allocation2 + $0x110] sm:$0xff] }
 0x31c   : > { %4809 = vst.msk [vmem:[%s7642_s19 + $0xf0] sm:$0xff] %vm319_vm4, %v4773_v20  ;;  %v3641_v61 = vadd.f32 %v3602_v63, %v3268_v30  ;;  %v4629_v24 = vpop.f32.mrf.mxu0 }
 0x31d   : > { %v3712_v50 = vld [vmem:[#allocation2 + $0x108] sm:$0xff]  ;;  %3233 = vst.msk [vmem:[#allocation2 + $0x118] sm:$0xff] %vm319_vm4, %v3197_v19 }
 0x31e   : > { %v4219_v6 = vadd.f32 %v4178_v34, %v3712_v50  ;;  %3677 = vst.msk [vmem:[#allocation2 + $0x110] sm:$0xff] %vm319_vm4, %v3641_v61 }
 0x31f   : > { %v4290_v5 = vld [vmem:[#allocation2 + $0x100] sm:$0xff]  ;;  %v3604_v4 = vpop.f32.mrf.mxu2 }
 0x320   : > { %4255 = vst.msk [vmem:[#allocation2 + $0x108] sm:$0xff] %vm319_vm4, %v4219_v6  ;;  %v4664_v16 = vadd.f32 %v4622_v8, %v4290_v5 }
 0x321   : > { %v4738_v14 = vld [vmem:[#allocation2 + $0xf8] sm:$0xff] }
 0x322   : > { %v4774_v17 = vmax.f32 %v4738_v14, 0.0  ;;  %4700 = vst.msk [vmem:[#allocation2 + $0x100] sm:$0xff] %vm319_vm4, %v4664_v16 }
 0x324   : > { %4810 = vst.msk [vmem:[%s7642_s19 + $0xf8] sm:$0xff] %vm319_vm4, %v4774_v17  ;;  %v3269_v45 = vld [vmem:[#allocation2 + $0x118] sm:$0xff] }
 0x325   : > { %v3713_v60 = vld [vmem:[#allocation2 + $0x110] sm:$0xff]  ;;  %v3642_v28 = vadd.f32 %v3604_v4, %v3269_v45 }
 0x326   : > { %v4220_v15 = vadd.f32 %v4181_v27, %v3713_v60 }
 0x327   : > { %3678 = vst.msk [vmem:[#allocation2 + $0x118] sm:$0xff] %vm319_vm4, %v3642_v28  ;;  %v4291_v11 = vld [vmem:[#allocation2 + $0x108] sm:$0xff] }
 0x328   : > { %4256 = vst.msk [vmem:[#allocation2 + $0x110] sm:$0xff] %vm319_vm4, %v4220_v15  ;;  %v4665_v51 = vadd.f32 %v4624_v35, %v4291_v11 }
 0x329   : > { %v4739_v38 = vld [vmem:[#allocation2 + $0x100] sm:$0xff] }
 0x32a   : > { %v4775_v7 = vmax.f32 %v4739_v38, 0.0  ;;  %4701 = vst.msk [vmem:[#allocation2 + $0x108] sm:$0xff] %vm319_vm4, %v4665_v51 }
 0x32c   : > { %4811 = vst.msk [vmem:[%s7642_s19 + $0x100] sm:$0xff] %vm319_vm4, %v4775_v7 }
 0x32e   : > { %v3714_v12 = vld [vmem:[#allocation2 + $0x118] sm:$0xff] }
 0x32f   : > { %v4221_v54 = vadd.f32 %v4183_v1, %v3714_v12  ;;  %v4292_v2 = vld [vmem:[#allocation2 + $0x110] sm:$0xff] }
 0x330   : > { %v4666_v40 = vadd.f32 %v4627_v49, %v4292_v2 }
 0x331   : > { %v4740_v41 = vld [vmem:[#allocation2 + $0x108] sm:$0xff]  ;;  %4257 = vst.msk [vmem:[#allocation2 + $0x118] sm:$0xff] %vm319_vm4, %v4221_v54 }
 0x332   : > { %v4776_v22 = vmax.f32 %v4740_v41, 0.0  ;;  %4702 = vst.msk [vmem:[#allocation2 + $0x110] sm:$0xff] %vm319_vm4, %v4666_v40 }
 0x334   : > { %4812 = vst.msk [vmem:[%s7642_s19 + $0x108] sm:$0xff] %vm319_vm4, %v4776_v22 }
 0x338   : > { %v4293_v29 = vld [vmem:[#allocation2 + $0x118] sm:$0xff] }
 0x339   : > { %v4741_v62 = vld [vmem:[#allocation2 + $0x110] sm:$0xff]  ;;  %v4667_v44 = vadd.f32 %v4629_v24, %v4293_v29 }
 0x33a   : > { %v4777_v48 = vmax.f32 %v4741_v62, 0.0 }
 0x33b   : > { %4703 = vst.msk [vmem:[#allocation2 + $0x118] sm:$0xff] %vm319_vm4, %v4667_v44 }
 0x33c   : > { %4813 = vst.msk [vmem:[%s7642_s19 + $0x110] sm:$0xff] %vm319_vm4, %v4777_v48 }
 0x342   : > { %v4742_v56 = vld [vmem:[#allocation2 + $0x118] sm:$0xff] }
 0x343   : > { %v4778_v33 = vmax.f32 %v4742_v56, 0.0 }
 0x345   : > { %4814 = vst.msk [vmem:[%s7642_s19 + $0x118] sm:$0xff] %vm319_vm4, %v4778_v33 }
 0x346 PF: > { %s13_s14 = sadd.s32 1, %s6086_s14   ;;  %s8194_s12 = smov %s6082_s13 }
 0x347   : > { %p10_p6 = scmp.ge.s32.totalorder %s13_s14, 4   ;;  %s8195_s13 = smov %s8197_s15 }
 0x349   :  { %12 = sbr.rel (!%p10_p6) target bundleno = 2 (0x2), region = 84 }

</bundles_post_ra>
